<compile_context>
chip_gen: v5e
topology: v5e:2x2
jax: 0.10.0
libtpu: 0.0.40
codegen_flags: <defaults>
</compile_context>

<pallas_src>
import jax
import jax.numpy as jnp
from jax import lax
from jax.experimental import pallas as pl
from jax.experimental.pallas import tpu as pltpu


# ----------------------------- Pallas kernel ------------------------------ #
def snpdfc3_kernel(x_ref, emb_ref, w1_ref, b1_ref, w2_ref, b2_ref,
                   w7_ref, b7_ref, out_ref):
    neg_slope = 0.2

    # linear1 + LeakyReLU(0.2).  x arrives batch-major (tb, F); contracting
    # both last dims lets Mosaic handle the layout (no wrapper x.T pass) and
    # h comes out feature-major (F, tb) with the batch on the lane axis.
    x_bf = x_ref[...].astype(jnp.bfloat16)                        # in-kernel cast
    h = lax.dot_general(w1_ref[...], x_bf,
                        dimension_numbers=(((1,), (1,)), ((), ())),
                        preferred_element_type=jnp.float32)       # (F, tb) f32
    h = h + b1_ref[...]                                           # (F,1) lane bcast
    h = jnp.maximum(h, neg_slope * h)                             # LeakyReLU(0.2)

    # linear2 + LeakyReLU(0.2)
    h = jnp.dot(w2_ref[...], h.astype(jnp.bfloat16),
                preferred_element_type=jnp.float32)               # (F, tb) f32
    h = h + b2_ref[...]
    h = jnp.maximum(h, neg_slope * h)

    # l7 + class-conditional projection, fused:
    #   out[i] = sum_j (w7[j] + l_y(y_i)[j]) * h[i, j] + b7
    # emb tile is already feature-major bf16; upcast + add w7 column (VPU),
    # multiply + sublane reduce (XLU) -> lane-dense (1, tb) row.
    proj = emb_ref[...].astype(jnp.float32) + w7_ref[...]         # (F, tb) f32
    out = jnp.sum(h * proj, axis=0, keepdims=True)                # (1, tb)
    out_ref[...] = (out + b7_ref[0]).astype(out_ref.dtype)


# ------------------------------- wrapper ----------------------------------- #
def snpdfc3_forward(x, params, y=None, emb_table=None, *, tb=None):
    """SNPDFC3 forward (decoder_only path).

    x: [B, F] activations (f32 or bf16).
    y: optional [B] int class ids; emb_table: [num_classes, F] l_y weight
    (ideally stored bf16 so the gather yields bf16 rows with no extra pass).
    """
    B, F = x.shape
    w1, b1, w2, b2, w7, b7 = params      # W: (out,in); b: (out,); w7: (1,F)

    # l_y(y) gather, done feature-major: the (F, B) slab falls straight out of
    # the gather — no (B,F)->(F,B) transpose pass, half DMA when table is bf16.
    if y is not None:
        assert emb_table is not None
        emb_fm = jnp.take(emb_table.astype(jnp.bfloat16).T, y, axis=1)  # (F, B)
    else:
        emb_fm = jnp.zeros((F, B), jnp.bfloat16)

    # Batch-tile policy: multiples of 256 keep the MXU N-dim full on v6e/v7x
    # (128 is enough on v5e); prefer >= 4 grid steps (>= 2 per v7x TensorCore)
    # so each tile's input DMA hides behind the previous tile's compute.
    if tb is None:
        tb = 256
        for cand in (512, 1024):
            if B >= 4 * cand:
                tb = cand
    tb = max(128, min(tb, pl.cdiv(B, 128) * 128))
    n_blk = pl.cdiv(B, tb)
    Bp = n_blk * tb
    pad = Bp - B
    if pad:
        x = jnp.pad(x, ((0, pad), (0, 0)))
        emb_fm = jnp.pad(emb_fm, ((0, 0), (0, pad)))

    w1b = w1.astype(jnp.bfloat16)
    w2b = w2.astype(jnp.bfloat16)
    b1c = b1.reshape(F, 1).astype(jnp.float32)
    b2c = b2.reshape(F, 1).astype(jnp.float32)
    w7c = w7.reshape(F, 1).astype(jnp.float32)
    b7c = b7.reshape(1).astype(jnp.float32)

    rep = lambda i: (0, 0)   # resident params: constant block index -> no re-DMA
    # TODO(synk): for F >~ 2k on v7x, add pipeline_mode=pl.Buffered(1) to the
    # resident specs below (single-buffer) to save the unused second buffer.

    out_row = pl.pallas_call(
        snpdfc3_kernel,
        out_shape=jax.ShapeDtypeStruct((1, Bp), jnp.float32),
        grid_spec=pltpu.PrefetchScalarGridSpec(
            num_scalar_prefetch=0,
            grid=(n_blk,),
            in_specs=[
                pl.BlockSpec((tb, F), lambda i: (i, 0)),   # x tile, batch-major
                pl.BlockSpec((F, tb), lambda i: (0, i)),   # l_y(y)^T tile (bf16)
                pl.BlockSpec((F, F), rep),                 # W1 (bf16), resident
                pl.BlockSpec((F, 1), rep),                 # b1 (f32)
                pl.BlockSpec((F, F), rep),                 # W2 (bf16), resident
                pl.BlockSpec((F, 1), rep),                 # b2 (f32)
                pl.BlockSpec((F, 1), rep),                 # w7 column (f32)
                pl.BlockSpec(memory_space=pltpu.SMEM),     # b7 scalar
            ],
            out_specs=pl.BlockSpec((1, tb), lambda i: (0, i)),  # lane-dense row
        ),
        compiler_params=pltpu.CompilerParams(
            dimension_semantics=("parallel",)),   # batch tiles split across TCs
    )(x, emb_fm, w1b, b1c, w2b, b2c, w7c, b7c)

    return out_row[:, :B].reshape(B, 1)


# --------------------------- parameter setup ------------------------------ #
def spectral_normalize(w, key, n_iter=1, eps=1e-12):
    """PyTorch-style spectral norm: W / sigma, one power iteration, fixed u."""
    u = jax.random.normal(key, (w.shape[0],), dtype=w.dtype)
    u = u / (jnp.linalg.norm(u) + eps)
    v = None
    for _ in range(n_iter):
        v = w.T @ u
        v = v / (jnp.linalg.norm(v) + eps)
        u = w @ v
        u = u / (jnp.linalg.norm(u) + eps)
    sigma = u @ (w @ v)
    return w / sigma


def make_params(key, num_features, num_classes):
    F = num_features
    ks = jax.random.split(key, 10)

    def linear_init(kw, fan_in, fan_out):
        bound = 1.0 / jnp.sqrt(fan_in)
        return jax.random.uniform(kw, (fan_out, fan_in), minval=-bound,
                                  maxval=bound, dtype=jnp.float32)

    w1 = spectral_normalize(linear_init(ks[0], F, F), ks[1])
    b1 = jax.random.uniform(ks[2], (F,), minval=-1.0 / jnp.sqrt(F),
                            maxval=1.0 / jnp.sqrt(F), dtype=jnp.float32)
    w2 = spectral_normalize(linear_init(ks[3], F, F), ks[4])
    b2 = jax.random.uniform(ks[5], (F,), minval=-1.0 / jnp.sqrt(F),
                            maxval=1.0 / jnp.sqrt(F), dtype=jnp.float32)
    # l7: xavier_uniform init, then spectral norm
    xav = jnp.sqrt(6.0 / (F + 1))
    w7 = spectral_normalize(
        jax.random.uniform(ks[6], (1, F), minval=-xav, maxval=xav,
                           dtype=jnp.float32), ks[7])
    b7 = jnp.zeros((1,), dtype=jnp.float32)
    # l_y: embedding (num_classes, F), xavier_uniform, spectral norm
    xav_e = jnp.sqrt(6.0 / (num_classes + F))
    emb = spectral_normalize(
        jax.random.uniform(ks[8], (num_classes, F), minval=-xav_e, maxval=xav_e,
                           dtype=jnp.float32), ks[9])

    return (w1, b1, w2, b2, w7, b7), emb


# ------------------------------- reference -------------------------------- #
def reference_forward(x, params, emb_rows):
    """Plain-JAX reference with the kernel's numeric scheme (bf16 matmul
    operands / bf16 embedding rows, f32 accumulation)."""
    w1, b1, w2, b2, w7, b7 = params
    h = jnp.dot(x.astype(jnp.bfloat16), w1.astype(jnp.bfloat16).T,
                preferred_element_type=jnp.float32) + b1
    h = jnp.maximum(h, 0.2 * h)
    h = jnp.dot(h.astype(jnp.bfloat16), w2.astype(jnp.bfloat16).T,
                preferred_element_type=jnp.float32) + b2
    h = jnp.maximum(h, 0.2 * h)
    out = h @ w7.T + b7
    out = out + jnp.sum(emb_rows.astype(jnp.float32) * h, axis=1, keepdims=True)
    return out


# --------------------------------- main ----------------------------------- #
if __name__ == "__main__":
    # F = 256 aligns K/N with the 256-wide v6e/v7x MXU tiles; B = 1024 with
    # tb = 256 -> grid (4,): even (both v7x TensorCores loaded) and 2 steps
    # per core, so each tile's DMA overlaps the previous tile's compute.
    B, F, NUM_CLASSES = 1024, 256, 10

    key = jax.random.PRNGKey(0)
    k_x, k_y, k_p = jax.random.split(key, 3)

    x = jax.random.normal(k_x, (B, F), dtype=jnp.float32)
    y = jax.random.randint(k_y, (B,), 0, NUM_CLASSES)

    params, emb_table = make_params(k_p, F, NUM_CLASSES)
    emb_table = emb_table.astype(jnp.bfloat16)   # store l_y in bf16: halves emb DMA
    # TODO(synk): encoder is an arbitrary external module; decoder_only path used.

    fwd = jax.jit(snpdfc3_forward)
    out = jax.block_until_ready(fwd(x, params, y, emb_table))

    ref = reference_forward(x, params, emb_table[y])
    assert out.shape == (B, 1)
    assert jnp.allclose(out, ref, atol=1e-2, rtol=1e-2), float(
        jnp.max(jnp.abs(out - ref)))

    print("KERNEL_OK")
</pallas_src>

<mosaic_0001>
module attributes {stable_mosaic.version = 11 : i64} {
  func.func @snpdfc3_kernel(%arg0: i32, %arg1: memref<256x256xf32, #tpu.memory_space<vmem>>, %arg2: memref<256x256xbf16, #tpu.memory_space<vmem>>, %arg3: memref<256x256xbf16, #tpu.memory_space<vmem>>, %arg4: memref<256x1xf32, #tpu.memory_space<vmem>>, %arg5: memref<256x256xbf16, #tpu.memory_space<vmem>>, %arg6: memref<256x1xf32, #tpu.memory_space<vmem>>, %arg7: memref<256x1xf32, #tpu.memory_space<vmem>>, %arg8: memref<1xf32, #tpu.memory_space<smem>>, %arg9: memref<1x256xf32, #tpu.memory_space<vmem>>) attributes {dimension_semantics = [#tpu.dimension_semantics<parallel>], iteration_bounds = array<i64: 4>, scalar_prefetch = 0 : i64, scratch_operands = 0 : i64, tpu.core_type = #tpu.core_type<tc>, window_params = [{transform_indices = @transform_0, window_bounds = array<i64: 256, 256>}, {transform_indices = @transform_1, window_bounds = array<i64: 256, 256>}, {pipeline_mode = #tpu.pipeline_mode<synchronous>, transform_indices = @transform_2, window_bounds = array<i64: 256, 256>}, {pipeline_mode = #tpu.pipeline_mode<synchronous>, transform_indices = @transform_3, window_bounds = array<i64: 256, 1>}, {pipeline_mode = #tpu.pipeline_mode<synchronous>, transform_indices = @transform_4, window_bounds = array<i64: 256, 256>}, {pipeline_mode = #tpu.pipeline_mode<synchronous>, transform_indices = @transform_5, window_bounds = array<i64: 256, 1>}, {pipeline_mode = #tpu.pipeline_mode<synchronous>, transform_indices = @transform_6, window_bounds = array<i64: 256, 1>}, {transform_indices = @transform_7, window_bounds = array<i64: 1>}, {transform_indices = @transform_8, window_bounds = array<i64: 1, 256>}]} {
    %c0 = arith.constant 0 : index
    %c0_0 = arith.constant 0 : index
    %0 = vector.load %arg1[%c0, %c0_0] : memref<256x256xf32, #tpu.memory_space<vmem>>, vector<256x256xf32>
    %1 = arith.truncf %0 : vector<256x256xf32> to vector<256x256xbf16>
    %c0_1 = arith.constant 0 : index
    %c0_2 = arith.constant 0 : index
    %2 = vector.load %arg3[%c0_1, %c0_2] : memref<256x256xbf16, #tpu.memory_space<vmem>>, vector<256x256xbf16>
    %cst = arith.constant dense<0.000000e+00> : vector<256x256xf32>
    %3 = tpu.matmul %2, %1, %cst {dimension_numbers = #tpu.dot_dimension_numbers<[1], [1], [0], [0], [0, 0, 1, 0], [], []>} : vector<256x256xbf16>, vector<256x256xbf16>, vector<256x256xf32> -> vector<256x256xf32>
    %c0_3 = arith.constant 0 : index
    %c0_4 = arith.constant 0 : index
    %4 = vector.load %arg4[%c0_3, %c0_4] : memref<256x1xf32, #tpu.memory_space<vmem>>, vector<256x1xf32>
    %5 = vector.broadcast %4 : vector<256x1xf32> to vector<256x256xf32>
    %6 = arith.addf %3, %5 : vector<256x256xf32>
    %cst_5 = arith.constant 2.000000e-01 : f32
    %7 = vector.broadcast %cst_5 : f32 to vector<256x256xf32>
    %8 = arith.mulf %7, %6 : vector<256x256xf32>
    %9 = arith.maximumf %6, %8 : vector<256x256xf32>
    %c0_6 = arith.constant 0 : index
    %c0_7 = arith.constant 0 : index
    %10 = vector.load %arg5[%c0_6, %c0_7] : memref<256x256xbf16, #tpu.memory_space<vmem>>, vector<256x256xbf16>
    %11 = arith.truncf %9 : vector<256x256xf32> to vector<256x256xbf16>
    %cst_8 = arith.constant dense<0.000000e+00> : vector<256x256xf32>
    %12 = tpu.matmul %10, %11, %cst_8 {dimension_numbers = #tpu.dot_dimension_numbers<[1], [0], [0], [1], [0, 0, 1, 1], [], []>} : vector<256x256xbf16>, vector<256x256xbf16>, vector<256x256xf32> -> vector<256x256xf32>
    %c0_9 = arith.constant 0 : index
    %c0_10 = arith.constant 0 : index
    %13 = vector.load %arg6[%c0_9, %c0_10] : memref<256x1xf32, #tpu.memory_space<vmem>>, vector<256x1xf32>
    %14 = vector.broadcast %13 : vector<256x1xf32> to vector<256x256xf32>
    %15 = arith.addf %12, %14 : vector<256x256xf32>
    %cst_11 = arith.constant 2.000000e-01 : f32
    %16 = vector.broadcast %cst_11 : f32 to vector<256x256xf32>
    %17 = arith.mulf %16, %15 : vector<256x256xf32>
    %18 = arith.maximumf %15, %17 : vector<256x256xf32>
    %c0_12 = arith.constant 0 : index
    %c0_13 = arith.constant 0 : index
    %19 = vector.load %arg2[%c0_12, %c0_13] : memref<256x256xbf16, #tpu.memory_space<vmem>>, vector<256x256xbf16>
    %20 = arith.extf %19 : vector<256x256xbf16> to vector<256x256xf32>
    %c0_14 = arith.constant 0 : index
    %c0_15 = arith.constant 0 : index
    %21 = vector.load %arg7[%c0_14, %c0_15] : memref<256x1xf32, #tpu.memory_space<vmem>>, vector<256x1xf32>
    %22 = vector.broadcast %21 : vector<256x1xf32> to vector<256x256xf32>
    %23 = arith.addf %20, %22 : vector<256x256xf32>
    %24 = arith.mulf %18, %23 : vector<256x256xf32>
    %cst_16 = arith.constant dense<0.000000e+00> : vector<256xf32>
    %25 = vector.multi_reduction <add>, %24, %cst_16 [0] : vector<256x256xf32> to vector<256xf32>
    %26 = vector.shape_cast %25 : vector<256xf32> to vector<1x256xf32>
    %c0_17 = arith.constant 0 : index
    %27 = memref.load %arg8[%c0_17] : memref<1xf32, #tpu.memory_space<smem>>
    %28 = vector.broadcast %27 : f32 to vector<1x256xf32>
    %29 = arith.addf %26, %28 : vector<1x256xf32>
    %c0_18 = arith.constant 0 : index
    %c0_19 = arith.constant 0 : index
    %30 = vector.load %arg9[%c0_18, %c0_19] : memref<1x256xf32, #tpu.memory_space<vmem>>, vector<1x256xf32>
    tpu.vector_store %arg9[%c0_18, %c0_19], %29 {strides = array<i32>} : memref<1x256xf32, #tpu.memory_space<vmem>>, vector<1x256xf32>,
    return
  }
  func.func @transform_0(%arg0: i32) -> (i32, i32) {
    %c0_i32 = arith.constant 0 : i32
    %c0_i32_0 = arith.constant 0 : i32
    return %arg0, %c0_i32 : i32, i32
  }
  func.func @transform_1(%arg0: i32) -> (i32, i32) {
    %c0_i32 = arith.constant 0 : i32
    %c0_i32_0 = arith.constant 0 : i32
    return %c0_i32, %arg0 : i32, i32
  }
  func.func @transform_2(%arg0: i32) -> (i32, i32) {
    %c0_i32 = arith.constant 0 : i32
    %c0_i32_0 = arith.constant 0 : i32
    %c0_i32_1 = arith.constant 0 : i32
    return %c0_i32, %c0_i32_0 : i32, i32
  }
  func.func @transform_3(%arg0: i32) -> (i32, i32) {
    %c0_i32 = arith.constant 0 : i32
    %c0_i32_0 = arith.constant 0 : i32
    %c0_i32_1 = arith.constant 0 : i32
    return %c0_i32, %c0_i32_0 : i32, i32
  }
  func.func @transform_4(%arg0: i32) -> (i32, i32) {
    %c0_i32 = arith.constant 0 : i32
    %c0_i32_0 = arith.constant 0 : i32
    %c0_i32_1 = arith.constant 0 : i32
    return %c0_i32, %c0_i32_0 : i32, i32
  }
  func.func @transform_5(%arg0: i32) -> (i32, i32) {
    %c0_i32 = arith.constant 0 : i32
    %c0_i32_0 = arith.constant 0 : i32
    %c0_i32_1 = arith.constant 0 : i32
    return %c0_i32, %c0_i32_0 : i32, i32
  }
  func.func @transform_6(%arg0: i32) -> (i32, i32) {
    %c0_i32 = arith.constant 0 : i32
    %c0_i32_0 = arith.constant 0 : i32
    %c0_i32_1 = arith.constant 0 : i32
    return %c0_i32, %c0_i32_0 : i32, i32
  }
  func.func @transform_7(%arg0: i32) -> i32 {
    %c0_i32 = arith.constant 0 : i32
    %c0_i32_0 = arith.constant 0 : i32
    return %c0_i32 : i32
  }
  func.func @transform_8(%arg0: i32) -> (i32, i32) {
    %c0_i32 = arith.constant 0 : i32
    %c0_i32_0 = arith.constant 0 : i32
    return %c0_i32, %arg0 : i32, i32
  }
}

</mosaic_0001>

<bundles_post_ra>
// kernel: snpdfc3_forward.1
= control target key start
LH: loop header
LB: loop body
LE: loop exit
PB: predicated region body
PF: predicated region fallthrough
CT: control target
= control target key end

     0   :  { %s5049_s0 = inlined_call_operand.vmem [shape: f32[1024,256], index: 0, kind: input, shape index: {}]   ;;  %s5050_s1 = inlined_call_operand.vmem [shape: bf16[256,1024], index: 1, kind: input, shape index: {}]   ;;  %s5051_s2 = inlined_call_operand.vmem [shape: bf16[256,256], index: 2, kind: input, shape index: {}]   ;;  %s5052_s3 = inlined_call_operand.vmem [shape: f32[256,1], index: 3, kind: input, shape index: {}]   ;;  %s5053_s4 = inlined_call_operand.vmem [shape: bf16[256,256], index: 4, kind: input, shape index: {}]   ;;  %s5054_s5 = inlined_call_operand.vmem [shape: f32[256,1], index: 5, kind: input, shape index: {}]   ;;  %s5055_s6 = inlined_call_operand.vmem [shape: f32[256,1], index: 6, kind: input, shape index: {}]   ;;  %s5056_s7 = inlined_call_operand.<no memory space> [shape: f32[1], index: 7, kind: input, shape index: {}]   ;;  %s5057_s8 = inlined_call_operand.hbm [shape: f32[1,1024], index: 8, kind: output, shape index: {}]  }
   0x1   :  { %13 = sst [smem:[#allocation2]] %s5056_s7 }
   0x2   :  { %14 = vsyncpa [#allocation5], 0 }
   0x3   :  { %16 = vsyncpa [#allocation5 + $0x1], 0  ;;  %s3448_s29 = smov 0   ;;  %s3450_s30 = smov 0  }
   0x4   :  { %s3452_s9 = smov 0   ;;  %s3454_s10 = smov 0  }
   0x5 LB: > { %s3469_s7 = sadd.s32 4294967295, %s3397_s10   ;;  %s2954_s11 = sadd.s32 4294967294, %s3397_s10   ;;  %s3397_s10 = sphi %s3454_s10, %s5143_s10   ;;  %s3393_s9 = sphi %s3452_s9, %s5142_s9   ;;  %s3389_s30 = sphi %s3450_s30, %s5141_s30   ;;  %s3385_s29 = sphi %s3448_s29, %s5140_s29  }
   0x6   : > { %s3473_s12 = sadd.s32 1, %s3397_s10   ;;  %s55_s13 = sadd.s32 1, %s3393_s9 }
   0x7   : > { %s52_s14 = ssub.s32 %s3397_s10, %s3473_s12  ;;  %p62_p0 = scmp.ne.s32.totalorder %s3393_s9, %s3389_s30 }
   0x8   : > { %p53_p1 = scmp.eq.s32.totalorder %s52_s14, 0  ;;  %p63_p2 = scmp.eq.s32.totalorder %s3397_s10, 0 }
   0x9   : > { %p218_p3 = scmp.eq.s32.totalorder %s3469_s7, 3  ;;  %p223_p4 = scmp.ne.s32.totalorder %s3389_s30, %s3385_s29 }
   0xa   : > { %s3485_s15 = scalar_select %p53_p1, %s3393_s9, %s55_s13  }
   0xb   : > { %p64_p5 = por %p63_p2, %p62_p0  ;;  %p3487_p6 = por %p218_p3, %p62_p0 }
   0xc   : > { %p224_p7 = scmp.eq.s32.totalorder %s2954_s11, 3  ;;  %p2956_p9 = scmp.ge.s32.totalorder %s3397_s10, 4 }
   0xe   : > { %p3491_p8 = por %p224_p7, %p223_p4  ;;  %258 = sbr.rel (%p2956_p9) target bundleno = 55 (0x37), region = 40 }
  0x13   : > { %271 = sbr.rel (!%p64_p5) target bundleno = 55 (0x37), region = 48  ;;  %s273_s18 = sand.u32 (%p64_p5), 1, %s3393_s9  }
  0x14   : > { %s3226_s19 = sshll.u32 (%p64_p5), %s3397_s10, 3  ;;  %s2957_s20 = sshll.u32 (%p64_p5), %s273_s18, 8 }
  0x15   : > { %s3501_s23 = scalar_lea.vmem (%p64_p5), %s5050_s1, %s3226_s19  ;;  %s3506_s24 = scalar_lea.vmem (%p64_p5), [#allocation3], %s2957_s20 }
  0x16   : > { %v369_v0 = vld [vmem:[%s3501_s23] sm:$0xff] (%p64_p5) }
  0x17   : > { %v371_v1 = vld [vmem:[%s3501_s23 + $0x20] sm:$0xff] (%p64_p5)  ;;  %370 = vst [vmem:[%s3506_s24] sm:$0xff] (%p64_p5), %v369_v0 }
  0x18   : > { %v373_v2 = vld [vmem:[%s3501_s23 + $0x40] sm:$0xff]  ;;  %372 = vst [vmem:[%s3506_s24 + $0x8] sm:$0xff] %v371_v1 }
  0x19   : > { %v375_v3 = vld [vmem:[%s3501_s23 + $0x60] sm:$0xff]  ;;  %374 = vst [vmem:[%s3506_s24 + $0x10] sm:$0xff] %v373_v2 }
  0x1a   : > { %v377_v4 = vld [vmem:[%s3501_s23 + $0x80] sm:$0xff]  ;;  %376 = vst [vmem:[%s3506_s24 + $0x18] sm:$0xff] %v375_v3 }
  0x1b   : > { %v379_v5 = vld [vmem:[%s3501_s23 + $0xa0] sm:$0xff]  ;;  %378 = vst [vmem:[%s3506_s24 + $0x20] sm:$0xff] %v377_v4 }
  0x1c   : > { %v381_v6 = vld [vmem:[%s3501_s23 + $0xc0] sm:$0xff]  ;;  %380 = vst [vmem:[%s3506_s24 + $0x28] sm:$0xff] %v379_v5 }
  0x1d   : > { %v383_v7 = vld [vmem:[%s3501_s23 + $0xe0] sm:$0xff]  ;;  %382 = vst [vmem:[%s3506_s24 + $0x30] sm:$0xff] %v381_v6 }
  0x1e   : > { %v385_v8 = vld [vmem:[%s3501_s23 + $0x100] sm:$0xff]  ;;  %384 = vst [vmem:[%s3506_s24 + $0x38] sm:$0xff] %v383_v7 }
  0x1f   : > { %v387_v9 = vld [vmem:[%s3501_s23 + $0x120] sm:$0xff]  ;;  %386 = vst [vmem:[%s3506_s24 + $0x40] sm:$0xff] %v385_v8 }
  0x20   : > { %v389_v10 = vld [vmem:[%s3501_s23 + $0x140] sm:$0xff]  ;;  %388 = vst [vmem:[%s3506_s24 + $0x48] sm:$0xff] %v387_v9 }
  0x21   : > { %v391_v11 = vld [vmem:[%s3501_s23 + $0x160] sm:$0xff]  ;;  %390 = vst [vmem:[%s3506_s24 + $0x50] sm:$0xff] %v389_v10 }
  0x22   : > { %v393_v12 = vld [vmem:[%s3501_s23 + $0x180] sm:$0xff]  ;;  %392 = vst [vmem:[%s3506_s24 + $0x58] sm:$0xff] %v391_v11 }
  0x23   : > { %v395_v13 = vld [vmem:[%s3501_s23 + $0x1a0] sm:$0xff]  ;;  %394 = vst [vmem:[%s3506_s24 + $0x60] sm:$0xff] %v393_v12 }
  0x24   : > { %v397_v14 = vld [vmem:[%s3501_s23 + $0x1c0] sm:$0xff]  ;;  %396 = vst [vmem:[%s3506_s24 + $0x68] sm:$0xff] %v395_v13 }
  0x25   : > { %v399_v15 = vld [vmem:[%s3501_s23 + $0x1e0] sm:$0xff]  ;;  %398 = vst [vmem:[%s3506_s24 + $0x70] sm:$0xff] %v397_v14 }
  0x26   : > { %v401_v16 = vld [vmem:[%s3501_s23 + $0x200] sm:$0xff]  ;;  %400 = vst [vmem:[%s3506_s24 + $0x78] sm:$0xff] %v399_v15 }
  0x27   : > { %v403_v17 = vld [vmem:[%s3501_s23 + $0x220] sm:$0xff]  ;;  %402 = vst [vmem:[%s3506_s24 + $0x80] sm:$0xff] %v401_v16 }
  0x28   : > { %v405_v18 = vld [vmem:[%s3501_s23 + $0x240] sm:$0xff]  ;;  %404 = vst [vmem:[%s3506_s24 + $0x88] sm:$0xff] %v403_v17 }
  0x29   : > { %v407_v19 = vld [vmem:[%s3501_s23 + $0x260] sm:$0xff]  ;;  %406 = vst [vmem:[%s3506_s24 + $0x90] sm:$0xff] %v405_v18 }
  0x2a   : > { %v409_v20 = vld [vmem:[%s3501_s23 + $0x280] sm:$0xff]  ;;  %408 = vst [vmem:[%s3506_s24 + $0x98] sm:$0xff] %v407_v19 }
  0x2b   : > { %v411_v21 = vld [vmem:[%s3501_s23 + $0x2a0] sm:$0xff]  ;;  %410 = vst [vmem:[%s3506_s24 + $0xa0] sm:$0xff] %v409_v20 }
  0x2c   : > { %v413_v22 = vld [vmem:[%s3501_s23 + $0x2c0] sm:$0xff]  ;;  %412 = vst [vmem:[%s3506_s24 + $0xa8] sm:$0xff] %v411_v21 }
  0x2d   : > { %v415_v23 = vld [vmem:[%s3501_s23 + $0x2e0] sm:$0xff]  ;;  %414 = vst [vmem:[%s3506_s24 + $0xb0] sm:$0xff] %v413_v22 }
  0x2e   : > { %v417_v24 = vld [vmem:[%s3501_s23 + $0x300] sm:$0xff]  ;;  %416 = vst [vmem:[%s3506_s24 + $0xb8] sm:$0xff] %v415_v23 }
  0x2f   : > { %v419_v25 = vld [vmem:[%s3501_s23 + $0x320] sm:$0xff]  ;;  %418 = vst [vmem:[%s3506_s24 + $0xc0] sm:$0xff] %v417_v24 }
  0x30   : > { %v421_v26 = vld [vmem:[%s3501_s23 + $0x340] sm:$0xff]  ;;  %420 = vst [vmem:[%s3506_s24 + $0xc8] sm:$0xff] %v419_v25 }
  0x31   : > { %v423_v27 = vld [vmem:[%s3501_s23 + $0x360] sm:$0xff]  ;;  %422 = vst [vmem:[%s3506_s24 + $0xd0] sm:$0xff] %v421_v26 }
  0x32   : > { %v425_v28 = vld [vmem:[%s3501_s23 + $0x380] sm:$0xff]  ;;  %424 = vst [vmem:[%s3506_s24 + $0xd8] sm:$0xff] %v423_v27 }
  0x33   : > { %v427_v29 = vld [vmem:[%s3501_s23 + $0x3a0] sm:$0xff]  ;;  %426 = vst [vmem:[%s3506_s24 + $0xe0] sm:$0xff] %v425_v28 }
  0x34   : > { %v429_v30 = vld [vmem:[%s3501_s23 + $0x3c0] sm:$0xff]  ;;  %428 = vst [vmem:[%s3506_s24 + $0xe8] sm:$0xff] %v427_v29 }
  0x35   : > { %v431_v31 = vld [vmem:[%s3501_s23 + $0x3e0] sm:$0xff]  ;;  %430 = vst [vmem:[%s3506_s24 + $0xf0] sm:$0xff] %v429_v30 }
  0x36   : > { %432 = vst [vmem:[%s3506_s24 + $0xf8] sm:$0xff] %v431_v31 }
  0x37 PF: > { %p2960_p10 = scmp.ge.s32.totalorder %s3397_s10, 1  ;;  %p437_p11 = scmp.lt.s32.totalorder %s3397_s10, 5 }
  0x39   : > { %p438_p12 = pnand %p2960_p10, %p437_p11 }
  0x3b   : > { %441 = sbr.rel (%p438_p12) target bundleno = 968 (0x3c8), region = 86 }
  0x40   : > { %s2963_s25 = sshll.u32 %s3469_s7, 5  ;;  %v3399_v32 = vmov 0   ;;  %v620_v33 = vld [vmem:[%s5052_s3] sm:$0xff]  ;;  %v622_v34 = vld [vmem:[%s5052_s3 + $0x10] sm:$0xff]  ;;  %v621_v6 = vld [vmem:[%s5052_s3 + $0x8] sm:$0xff]  ;;  %s4600_s18 = sand.u32 1, %s3389_s30  }
  0x41   : > { %p484_p13 = scmp.lt.s32.totalorder %s2963_s25, 127  ;;  %3332 = vset.pattern.permute.xlu0 %v3399_v32  ;;  %3333 = vset.pattern.permute.xlu1 %v3399_v32  ;;  %v623_v7 = vld [vmem:[%s5052_s3 + $0x18] sm:$0xff]  ;;  %v626_v17 = vld [vmem:[%s5052_s3 + $0x30] sm:$0xff]  ;;  %v624_v24 = vld [vmem:[%s5052_s3 + $0x20] sm:$0xff]  ;;  %s2961_s19 = sshll.u32 %s4600_s18, 8  ;;  %vm2853_vm0 = vcmask 1040384  }
  0x42   : > { %654 = vperm.xlu0 %3332, %v620_v33   ;;  %664 = vperm.xlu1 %3333, %v622_v34   ;;  %v627_v18 = vld [vmem:[%s5052_s3 + $0x38] sm:$0xff]  ;;  %v630_v33 = vld [vmem:[%s5052_s3 + $0x50] sm:$0xff]  ;;  %s4611_s20 = scalar_lea.vmem [#allocation3], %s2961_s19 }
  0x43   : > { %s5145_s25 = smov (!%p484_p13, %s2963_s25), 127  ;;  %3334 = vset.pattern.permute.xlu2 %v3399_v32  ;;  %v629_v32 = vld [vmem:[%s5052_s3 + $0x48] sm:$0xff] }
  0x44   : > { %s3227_s26 = sshll.u32 %s5145_s25, 4  ;;  %674 = vperm.xlu2 %3334, %v624_v24   ;;  %s2962_s25 = sshll.u32 %s4600_s18, 1 }
  0x45   : > { %s3575_s11 = scalar_lea.vmem %s5049_s0, %s3227_s26  ;;  %s3223_s26 = sshll.u32 %s3469_s7, 1 }
  0x46   : > { %v520_v35 = vld [vmem:[%s3575_s11 + $0xe0] sm:$0xff]  ;;  %v522_v36 = vld [vmem:[%s3575_s11 + $0xf0] sm:$0xff]  ;;  %v553_v40 = vld [vmem:[%s3575_s11 + $0x1e8] sm:$0xff]  ;;  %s2872_s28 = scalar_lea.hbm %s5057_s8, %s3223_s26  ;;  %s482_s13 = scalar_lea.vmem [#allocation4], %s2962_s25 }
  0x47   : > { %v552_v37 = vld [vmem:[%s3575_s11 + $0x1e0] sm:$0xff]  ;;  %v570_v38 = vpack.c.bf16 %v522_v36, %v520_v35  ;;  %v554_v39 = vld [vmem:[%s3575_s11 + $0x1f0] sm:$0xff]  ;;  %v555_v41 = vld [vmem:[%s3575_s11 + $0x1f8] sm:$0xff]  ;;  %s2874_s14 = sshll.u32 %s482_s13, 4  ;;  %s2876_s19 = sshll.u32 %s2872_s28, 4  ;;  %s2875_s14 = int_to_ptr.vmem [resolvable:$true] %s2874_s14  ;;  %s2877_s19 = int_to_ptr.hbm [resolvable:$true] %s2876_s19 }
  0x48   : > { %v586_v42 = vpack.c.bf16 %v554_v39, %v552_v37  ;;  %v587_v43 = vpack.c.bf16 %v555_v41, %v553_v40  ;;  %v521_v44 = vld [vmem:[%s3575_s11 + $0xe8] sm:$0xff]  ;;  %v523_v45 = vld [vmem:[%s3575_s11 + $0xf8] sm:$0xff]  ;;  %v516_v47 = vld [vmem:[%s3575_s11 + $0xc0] sm:$0xff]  ;;  %s2862_s7 = scalar_lea.sflag [#allocation5], %s4600_s18  ;;  %s3349_s21 = sshra.s32 %s2877_s19, 4  ;;  %s3350_s21 = int_to_ptr.hbm [resolvable:$true] %s3349_s21 }
  0x49   : > { %972 = vmatpush.bf16.xpose.msra.mxu0 %v570_v38  ;;  %v571_v46 = vpack.c.bf16 %v523_v45, %v521_v44  ;;  %v518_v48 = vld [vmem:[%s3575_s11 + $0xd0] sm:$0xff]  ;;  %v548_v49 = vld [vmem:[%s3575_s11 + $0x1c0] sm:$0xff]  ;;  %v549_v51 = vld [vmem:[%s3575_s11 + $0x1c8] sm:$0xff]  ;;  %s3351_s22 = scalar_lea.hbm %s3350_s21, 2  ;;  %p3356_p3 = scmp.lt.s32.totalorder %s3350_s21, %s5057_s8 }
  0x4a   : > { %1150 = vmatpush.bf16.xpose.msra.mxu2 %v586_v42  ;;  %1239 = vmatpush.bf16.xpose.msra.mxu3 %v587_v43  ;;  %v550_v50 = vld [vmem:[%s3575_s11 + $0x1d0] sm:$0xff]  ;;  %v551_v52 = vld [vmem:[%s3575_s11 + $0x1d8] sm:$0xff]  ;;  %v517_v53 = vld [vmem:[%s3575_s11 + $0xc8] sm:$0xff]  ;;  %v568_v55 = vpack.c.bf16 %v518_v48, %v516_v47  ;;  %p3352_p0 = scmp.ne.s32.totalorder %s3350_s21, %s3351_s22 }
  0x4b   : > { %1061 = vmatpush.bf16.xpose.msra.mxu1 %v571_v46  ;;  %v519_v54 = vld [vmem:[%s3575_s11 + $0xd8] sm:$0xff]  ;;  %v584_v56 = vpack.c.bf16 %v550_v50, %v548_v49  ;;  %v585_v57 = vpack.c.bf16 %v551_v52, %v549_v51  ;;  %v512_v59 = vld [vmem:[%s3575_s11 + $0xa0] sm:$0xff]  ;;  %v514_v60 = vld [vmem:[%s3575_s11 + $0xb0] sm:$0xff]  ;;  %659 = vperm.xlu0 %3332, %v621_v6  }
  0x4c   : > { %v569_v58 = vpack.c.bf16 %v519_v54, %v517_v53  ;;  %v544_v61 = vld [vmem:[%s3575_s11 + $0x1a0] sm:$0xff]  ;;  %v546_v62 = vld [vmem:[%s3575_s11 + $0x1b0] sm:$0xff]  ;;  %v545_v63 = vld [vmem:[%s3575_s11 + $0x1a8] sm:$0xff]  ;;  %v566_v3 = vpack.c.bf16 %v514_v60, %v512_v59  ;;  %669 = vperm.xlu1 %3333, %v623_v7   ;;  %p3353_p1 = pnand %p3352_p0, %p3487_p6 }
  0x4d   : > { %v547_v0 = vld [vmem:[%s3575_s11 + $0x1b8] sm:$0xff]  ;;  %v513_v1 = vld [vmem:[%s3575_s11 + $0xa8] sm:$0xff]  ;;  %v582_v4 = vpack.c.bf16 %v546_v62, %v544_v61  ;;  %v508_v9 = vld [vmem:[%s3575_s11 + $0x80] sm:$0xff] }
  0x4e   : > { %v515_v2 = vld [vmem:[%s3575_s11 + $0xb8] sm:$0xff]  ;;  %v583_v5 = vpack.c.bf16 %v547_v0, %v545_v63  ;;  %v510_v10 = vld [vmem:[%s3575_s11 + $0x90] sm:$0xff]  ;;  %v540_v11 = vld [vmem:[%s3575_s11 + $0x180] sm:$0xff]  ;;  %p3354_p2 = pneg %p3353_p1 }
  0x4f   : > { %v567_v8 = vpack.c.bf16 %v515_v2, %v513_v1  ;;  %v542_v12 = vld [vmem:[%s3575_s11 + $0x190] sm:$0xff]  ;;  %v541_v13 = vld [vmem:[%s3575_s11 + $0x188] sm:$0xff]  ;;  %v543_v14 = vld [vmem:[%s3575_s11 + $0x198] sm:$0xff]  ;;  %v564_v19 = vpack.c.bf16 %v510_v10, %v508_v9 }
  0x50   : > { %v509_v15 = vld [vmem:[%s3575_s11 + $0x88] sm:$0xff]  ;;  %v511_v16 = vld [vmem:[%s3575_s11 + $0x98] sm:$0xff]  ;;  %v580_v20 = vpack.c.bf16 %v542_v12, %v540_v11  ;;  %v581_v21 = vpack.c.bf16 %v543_v14, %v541_v13  ;;  %v504_v23 = vld [vmem:[%s3575_s11 + $0x60] sm:$0xff] }
  0x51   : > { %973 = vmatpush.bf16.xpose.msra.mxu0 %v568_v55  ;;  %v565_v22 = vpack.c.bf16 %v511_v16, %v509_v15  ;;  %v506_v25 = vld [vmem:[%s3575_s11 + $0x70] sm:$0xff]  ;;  %v536_v26 = vld [vmem:[%s3575_s11 + $0x160] sm:$0xff]  ;;  %v537_v28 = vld [vmem:[%s3575_s11 + $0x168] sm:$0xff] }
  0x52   : > { %1151 = vmatpush.bf16.xpose.msra.mxu2 %v584_v56  ;;  %1240 = vmatpush.bf16.xpose.msra.mxu3 %v585_v57  ;;  %v538_v27 = vld [vmem:[%s3575_s11 + $0x170] sm:$0xff]  ;;  %v539_v29 = vld [vmem:[%s3575_s11 + $0x178] sm:$0xff]  ;;  %v505_v30 = vld [vmem:[%s3575_s11 + $0x68] sm:$0xff]  ;;  %v562_v34 = vpack.c.bf16 %v506_v25, %v504_v23 }
  0x53   : > { %1062 = vmatpush.bf16.xpose.msra.mxu1 %v569_v58  ;;  %684 = vperm.xlu0 %3332, %v626_v17   ;;  %v507_v31 = vld [vmem:[%s3575_s11 + $0x78] sm:$0xff]  ;;  %v578_v35 = vpack.c.bf16 %v538_v27, %v536_v26  ;;  %v579_v36 = vpack.c.bf16 %v539_v29, %v537_v28  ;;  %v500_v38 = vld [vmem:[%s3575_s11 + $0x40] sm:$0xff]  ;;  %v625_v39 = vld [vmem:[%s5052_s3 + $0x28] sm:$0xff] }
  0x54   : > { %689 = vperm.xlu1 %3333, %v627_v18   ;;  %v563_v37 = vpack.c.bf16 %v507_v31, %v505_v30  ;;  %v502_v40 = vld [vmem:[%s3575_s11 + $0x50] sm:$0xff]  ;;  %v532_v41 = vld [vmem:[%s3575_s11 + $0x140] sm:$0xff]  ;;  %v533_v43 = vld [vmem:[%s3575_s11 + $0x148] sm:$0xff]  ;;  %679 = vperm.xlu2 %3334, %v625_v39  }
  0x55   : > { %v534_v42 = vld [vmem:[%s3575_s11 + $0x150] sm:$0xff]  ;;  %v535_v44 = vld [vmem:[%s3575_s11 + $0x158] sm:$0xff]  ;;  %v501_v45 = vld [vmem:[%s3575_s11 + $0x48] sm:$0xff]  ;;  %v560_v49 = vpack.c.bf16 %v502_v40, %v500_v38 }
  0x56   : > { %v503_v46 = vld [vmem:[%s3575_s11 + $0x58] sm:$0xff]  ;;  %v632_v47 = vld [vmem:[%s5052_s3 + $0x60] sm:$0xff]  ;;  %v633_v48 = vld [vmem:[%s5052_s3 + $0x68] sm:$0xff]  ;;  %v576_v50 = vpack.c.bf16 %v534_v42, %v532_v41  ;;  %v577_v51 = vpack.c.bf16 %v535_v44, %v533_v43 }
  0x57   : > { %v561_v52 = vpack.c.bf16 %v503_v46, %v501_v45  ;;  %v496_v53 = vld [vmem:[%s3575_s11 + $0x20] sm:$0xff]  ;;  %v498_v55 = vld [vmem:[%s3575_s11 + $0x30] sm:$0xff]  ;;  %v529_v58 = vld [vmem:[%s3575_s11 + $0x128] sm:$0xff] }
  0x58   : > { %v628_v54 = vld [vmem:[%s5052_s3 + $0x40] sm:$0xff]  ;;  %v530_v57 = vld [vmem:[%s3575_s11 + $0x130] sm:$0xff]  ;;  %v531_v59 = vld [vmem:[%s3575_s11 + $0x138] sm:$0xff]  ;;  %v558_v0 = vpack.c.bf16 %v498_v55, %v496_v53 }
  0x59   : > { %974 = vmatpush.bf16.xpose.msra.mxu0 %v566_v3  ;;  %v528_v56 = vld [vmem:[%s3575_s11 + $0x120] sm:$0xff]  ;;  %v497_v60 = vld [vmem:[%s3575_s11 + $0x28] sm:$0xff]  ;;  %v499_v61 = vld [vmem:[%s3575_s11 + $0x38] sm:$0xff]  ;;  %v575_v2 = vpack.c.bf16 %v531_v59, %v529_v58 }
  0x5a   : > { %1152 = vmatpush.bf16.xpose.msra.mxu2 %v582_v4  ;;  %1241 = vmatpush.bf16.xpose.msra.mxu3 %v583_v5  ;;  %v635_v62 = vld [vmem:[%s5052_s3 + $0x78] sm:$0xff]  ;;  %v650_v63 = vld [vmem:[%s5052_s3 + $0xf0] sm:$0xff]  ;;  %v574_v1 = vpack.c.bf16 %v530_v57, %v528_v56  ;;  %v559_v3 = vpack.c.bf16 %v499_v61, %v497_v60  ;;  %v492_v4 = vld [vmem:[%s3575_s11] sm:$0xff] }
  0x5b   : > { %1063 = vmatpush.bf16.xpose.msra.mxu1 %v567_v8  ;;  %699 = vperm.xlu0 %3332, %v629_v32   ;;  %v631_v5 = vld [vmem:[%s5052_s3 + $0x58] sm:$0xff]  ;;  %v494_v6 = vld [vmem:[%s3575_s11 + $0x10] sm:$0xff]  ;;  %v524_v7 = vld [vmem:[%s3575_s11 + $0x100] sm:$0xff] }
  0x5c   : > { %704 = vperm.xlu1 %3333, %v630_v33   ;;  %694 = vperm.xlu2 %3334, %v628_v54   ;;  %v526_v8 = vld [vmem:[%s3575_s11 + $0x110] sm:$0xff]  ;;  %v525_v9 = vld [vmem:[%s3575_s11 + $0x108] sm:$0xff]  ;;  %v527_v10 = vld [vmem:[%s3575_s11 + $0x118] sm:$0xff]  ;;  %v556_v15 = vpack.c.bf16 %v494_v6, %v492_v4 }
  0x5d   : > { %v493_v11 = vld [vmem:[%s3575_s11 + $0x8] sm:$0xff]  ;;  %v495_v12 = vld [vmem:[%s3575_s11 + $0x18] sm:$0xff]  ;;  %v648_v13 = vld [vmem:[%s5052_s3 + $0xe0] sm:$0xff]  ;;  %v572_v16 = vpack.c.bf16 %v526_v8, %v524_v7  ;;  %v573_v17 = vpack.c.bf16 %v527_v10, %v525_v9 }
  0x5e   : > { %v649_v14 = vld [vmem:[%s5052_s3 + $0xe8] sm:$0xff]  ;;  %v557_v18 = vpack.c.bf16 %v495_v12, %v493_v11  ;;  %v647_v25 = vld [vmem:[%s5052_s3 + $0xd8] sm:$0xff]  ;;  %v644_v26 = vld [vmem:[%s5052_s3 + $0xc0] sm:$0xff] }
  0x5f   : > { %v2970_v23 = vld [vmem:[%s5051_s2 + $0x8] sm:$0xf0]  ;;  %v651_v28 = vld [vmem:[%s5052_s3 + $0xf8] sm:$0xff]  ;;  %v642_v29 = vld [vmem:[%s5052_s3 + $0xb0] sm:$0xff] }
  0x60   : > { %v643_v30 = vld [vmem:[%s5052_s3 + $0xb8] sm:$0xff]  ;;  %v2976_v31 = vld [vmem:[%s5051_s2 + $0x10] sm:$0xf]  ;;  %v645_v40 = vld [vmem:[%s5052_s3 + $0xc8] sm:$0xff] }
  0x61   : > { %975 = vmatpush.bf16.xpose.msra.mxu0 %v564_v19  ;;  %v2968_v19 = vld [vmem:[%s5051_s2] sm:$0xf]  ;;  %v3231_v32 = vld [vmem:[%s5051_s2 + $0x14] sm:$0xf0]  ;;  %v646_v33 = vld [vmem:[%s5052_s3 + $0xd0] sm:$0xff] }
  0x62   : > { %1153 = vmatpush.bf16.xpose.msra.mxu2 %v580_v20  ;;  %1242 = vmatpush.bf16.xpose.msra.mxu3 %v581_v21  ;;  %v3229_v20 = vld [vmem:[%s5051_s2 + $0x4] sm:$0xf0]  ;;  %v634_v21 = vld [vmem:[%s5052_s3 + $0x70] sm:$0xff]  ;;  %v636_v41 = vld [vmem:[%s5052_s3 + $0x80] sm:$0xff] }
  0x63   : > { %1064 = vmatpush.bf16.xpose.msra.mxu1 %v565_v22  ;;  %714 = vperm.xlu0 %3332, %v632_v47   ;;  %v3228_v22 = vld [vmem:[%s5051_s2 + $0x4] sm:$0xf]  ;;  %v2969_v24 = vor.u32 %v3229_v20, %v2968_v19  ;;  %v638_v38 = vld [vmem:[%s5052_s3 + $0x90] sm:$0xff]  ;;  %v637_v42 = vld [vmem:[%s5052_s3 + $0x88] sm:$0xff] }
  0x64   : > { %719 = vperm.xlu1 %3333, %v633_v48   ;;  %709 = vperm.xlu2 %3334, %v631_v5   ;;  %v2973_v27 = vor.u32 %v3228_v22, %v2970_v23  ;;  %v2984_v43 = vld [vmem:[%s5051_s2 + $0x20] sm:$0xf]  ;;  %v3233_v44 = vld [vmem:[%s5051_s2 + $0x24] sm:$0xf0]  ;;  %v3232_v46 = vld [vmem:[%s5051_s2 + $0x24] sm:$0xf] }
  0x65   : > { %v640_v45 = vld [vmem:[%s5052_s3 + $0xa0] sm:$0xff]  ;;  %v2986_v47 = vld [vmem:[%s5051_s2 + $0x28] sm:$0xf0]  ;;  %v2985_v48 = vor.u32 %v3233_v44, %v2984_v43  ;;  %v2992_v55 = vld [vmem:[%s5051_s2 + $0x30] sm:$0xf] }
  0x66   : > { %v1524_v53 = vld [vmem:[%s5054_s5 + $0x20] sm:$0xff]  ;;  %v1525_v54 = vld [vmem:[%s5054_s5 + $0x28] sm:$0xff]  ;;  %v3235_v56 = vld [vmem:[%s5051_s2 + $0x34] sm:$0xf0] }
  0x67   : > { %v1520_v57 = vld [vmem:[%s5054_s5] sm:$0xff]  ;;  %v3234_v58 = vld [vmem:[%s5051_s2 + $0x34] sm:$0xf]  ;;  %v2994_v59 = vld [vmem:[%s5051_s2 + $0x38] sm:$0xf0]  ;;  %v2993_v60 = vor.u32 %v3235_v56, %v2992_v55 }
  0x68   : > { %v1527_v61 = vld [vmem:[%s5054_s5 + $0x38] sm:$0xff]  ;;  %v3237_v4 = vld [vmem:[%s5051_s2 + $0x44] sm:$0xf0]  ;;  %v1526_v5 = vld [vmem:[%s5054_s5 + $0x30] sm:$0xff] }
  0x69   : > { %976 = vmatpush.bf16.xpose.msra.mxu0 %v562_v34  ;;  %v3230_v34 = vld [vmem:[%s5051_s2 + $0x14] sm:$0xf]  ;;  %v3236_v6 = vld [vmem:[%s5051_s2 + $0x44] sm:$0xf]  ;;  %v3002_v7 = vld [vmem:[%s5051_s2 + $0x48] sm:$0xf0] }
  0x6a   : > { %1154 = vmatpush.bf16.xpose.msra.mxu2 %v578_v35  ;;  %1243 = vmatpush.bf16.xpose.msra.mxu3 %v579_v36  ;;  %v2978_v35 = vld [vmem:[%s5051_s2 + $0x18] sm:$0xf0]  ;;  %v2977_v36 = vor.u32 %v3231_v32, %v2976_v31  ;;  %v1533_v9 = vld [vmem:[%s5054_s5 + $0x68] sm:$0xff]  ;;  %v1534_v10 = vld [vmem:[%s5054_s5 + $0x70] sm:$0xff]  ;;  %v3005_v11 = vor.u32 %v3236_v6, %v3002_v7 }
  0x6b   : > { %1065 = vmatpush.bf16.xpose.msra.mxu1 %v563_v37  ;;  %729 = vperm.xlu0 %3332, %v635_v62   ;;  %v641_v37 = vld [vmem:[%s5052_s3 + $0xa8] sm:$0xff]  ;;  %v2981_v39 = vor.u32 %v3230_v34, %v2978_v35  ;;  %v1528_v62 = vld [vmem:[%s5054_s5 + $0x40] sm:$0xff]  ;;  %v3010_v19 = vld [vmem:[%s5051_s2 + $0x58] sm:$0xf0] }
  0x6c   : > { %804 = vperm.xlu1 %3333, %v650_v63   ;;  %724 = vperm.xlu2 %3334, %v634_v21   ;;  %v2997_v63 = vor.u32 %v3234_v58, %v2994_v59  ;;  %v1529_v12 = vld [vmem:[%s5054_s5 + $0x48] sm:$0xff]  ;;  %v1539_v21 = vld [vmem:[%s5054_s5 + $0x98] sm:$0xff]  ;;  %v1540_v22 = vld [vmem:[%s5054_s5 + $0xa0] sm:$0xff] }
  0x6d   : > { %v3018_v31 = vld [vmem:[%s5051_s2 + $0x68] sm:$0xf0]  ;;  %v1546_v34 = vld [vmem:[%s5054_s5 + $0xd0] sm:$0xff]  ;;  %v3026_v43 = vld [vmem:[%s5051_s2 + $0x78] sm:$0xf0] }
  0x6e   : > { %v3034_v55 = vld [vmem:[%s5051_s2 + $0x88] sm:$0xf0]  ;;  %v2458_v59 = vld [vmem:[%s5055_s6 + $0x30] sm:$0xff] }
  0x6f   : > { %v2457_v58 = vld [vmem:[%s5055_s6 + $0x28] sm:$0xff] }
  0x71   : > { %977 = vmatpush.bf16.xpose.msra.mxu0 %v560_v49  ;;  %v1521_v49 = vld [vmem:[%s5054_s5 + $0x8] sm:$0xff] }
  0x72   : > { %1155 = vmatpush.bf16.xpose.msra.mxu2 %v576_v50  ;;  %1244 = vmatpush.bf16.xpose.msra.mxu3 %v577_v51  ;;  %v1522_v50 = vld [vmem:[%s5054_s5 + $0x10] sm:$0xff]  ;;  %v2989_v51 = vor.u32 %v3232_v46, %v2986_v47  ;;  %v2452_v46 = vld [vmem:[%s5055_s6] sm:$0xff] }
  0x73   : > { %1066 = vmatpush.bf16.xpose.msra.mxu1 %v561_v52  ;;  %794 = vperm.xlu0 %3332, %v648_v13   ;;  %v639_v52 = vld [vmem:[%s5052_s3 + $0x98] sm:$0xff]  ;;  %v1536_v13 = vld [vmem:[%s5054_s5 + $0x80] sm:$0xff] }
  0x74   : > { %799 = vperm.xlu1 %3333, %v649_v14   ;;  %809 = vperm.xlu2 %3334, %v651_v28   ;;  %v1537_v14 = vld [vmem:[%s5054_s5 + $0x88] sm:$0xff] }
  0x75   : > { %v3241_v28 = vld [vmem:[%s5051_s2 + $0x64] sm:$0xf0] }
  0x79   : > { %978 = vmatpush.bf16.xpose.msra.mxu0 %v558_v0  ;;  %v1523_v0 = vld [vmem:[%s5054_s5 + $0x18] sm:$0xff] }
  0x7a   : > { %1156 = vmatpush.bf16.xpose.msra.mxu2 %v574_v1  ;;  %1245 = vmatpush.bf16.xpose.msra.mxu3 %v575_v2  ;;  %v1530_v1 = vld [vmem:[%s5054_s5 + $0x50] sm:$0xff]  ;;  %v1531_v2 = vld [vmem:[%s5054_s5 + $0x58] sm:$0xff] }
  0x7b   : > { %1067 = vmatpush.bf16.xpose.msra.mxu1 %v559_v3  ;;  %789 = vperm.xlu0 %3332, %v647_v25   ;;  %v3000_v3 = vld [vmem:[%s5051_s2 + $0x40] sm:$0xf]  ;;  %v1542_v25 = vld [vmem:[%s5054_s5 + $0xb0] sm:$0xff] }
  0x7c   : > { %774 = vperm.xlu1 %3333, %v644_v26   ;;  %784 = vperm.xlu2 %3334, %v646_v33   ;;  %v3001_v8 = vor.u32 %v3237_v4, %v3000_v3  ;;  %v1543_v26 = vld [vmem:[%s5054_s5 + $0xb8] sm:$0xff]  ;;  %v1545_v33 = vld [vmem:[%s5054_s5 + $0xc8] sm:$0xff]  ;;  %v2460_v4 = vld [vmem:[%s5055_s6 + $0x40] sm:$0xff] }
  0x81   : > { %979 = vmatpush.bf16.xpose.msra.mxu0 %v556_v15  ;;  %v3008_v15 = vld [vmem:[%s5051_s2 + $0x50] sm:$0xf] }
  0x82   : > { %1157 = vmatpush.bf16.xpose.msra.mxu2 %v572_v16  ;;  %1246 = vmatpush.bf16.xpose.msra.mxu3 %v573_v17  ;;  %v3239_v16 = vld [vmem:[%s5051_s2 + $0x54] sm:$0xf0]  ;;  %v1532_v17 = vld [vmem:[%s5054_s5 + $0x60] sm:$0xff] }
  0x83   : > { %1068 = vmatpush.bf16.xpose.msra.mxu1 %v557_v18  ;;  %764 = vperm.xlu0 %3332, %v642_v29   ;;  %v3238_v18 = vld [vmem:[%s5051_s2 + $0x54] sm:$0xf]  ;;  %v3009_v20 = vor.u32 %v3239_v16, %v3008_v15  ;;  %v3247_v15 = vld [vmem:[%s5051_s2 + $0x94] sm:$0xf0]  ;;  %v2456_v16 = vld [vmem:[%s5055_s6 + $0x20] sm:$0xff] }
  0x84   : > { %769 = vperm.xlu1 %3333, %v643_v30   ;;  %779 = vperm.xlu2 %3334, %v645_v40   ;;  %v3013_v23 = vor.u32 %v3238_v18, %v3010_v19  ;;  %v1538_v29 = vld [vmem:[%s5054_s5 + $0x90] sm:$0xff]  ;;  %v3240_v30 = vld [vmem:[%s5051_s2 + $0x64] sm:$0xf]  ;;  %v3243_v40 = vld [vmem:[%s5051_s2 + $0x74] sm:$0xf0] }
  0x85   : > { %v3021_v35 = vor.u32 %v3240_v30, %v3018_v31  ;;  %v3246_v19 = vld [vmem:[%s5051_s2 + $0x94] sm:$0xf] }
  0x88   : > { %980 = vmatmul.bf16.vlgmr.msra.gmra.mxu0 %v2969_v24 }
  0x89   : > { %1158 = vmatmul.bf16.vlgmr.msra.gmra.mxu2 %v2969_v24  ;;  %1247 = vmatmul.bf16.vlgmr.msra.gmra.mxu3 %v2973_v27  ;;  %v1535_v24 = vld [vmem:[%s5054_s5 + $0x78] sm:$0xff] }
  0x8a   : > { %1069 = vmatmul.bf16.vlgmr.msra.gmra.mxu1 %v2973_v27  ;;  %v3016_v27 = vld [vmem:[%s5051_s2 + $0x60] sm:$0xf] }
  0x8b   : > { %759 = vperm.xlu0 %3332, %v641_v37   ;;  %v3017_v32 = vor.u32 %v3241_v28, %v3016_v27  ;;  %v1548_v37 = vld [vmem:[%s5054_s5 + $0xe0] sm:$0xff] }
  0x8c   : > { %744 = vperm.xlu1 %3333, %v638_v38   ;;  %754 = vperm.xlu2 %3334, %v640_v45   ;;  %v1549_v38 = vld [vmem:[%s5054_s5 + $0xe8] sm:$0xff]  ;;  %v1551_v45 = vld [vmem:[%s5054_s5 + $0xf8] sm:$0xff] }
  0x93   : > { %734 = vperm.xlu0 %3332, %v636_v41   ;;  %v1544_v41 = vld [vmem:[%s5054_s5 + $0xc0] sm:$0xff] }
  0x94   : > { %739 = vperm.xlu1 %3333, %v637_v42   ;;  %749 = vperm.xlu2 %3334, %v639_v52   ;;  %v3242_v42 = vld [vmem:[%s5051_s2 + $0x74] sm:$0xf]  ;;  %v3245_v52 = vld [vmem:[%s5051_s2 + $0x84] sm:$0xf0] }
  0x95   : > { %v3029_v47 = vor.u32 %v3242_v42, %v3026_v43  ;;  %v2466_v43 = vld [vmem:[%s5055_s6 + $0x70] sm:$0xff] }
  0x98   : > { %985 = vmatmul.bf16.gmra.mxu0 %v2977_v36 }
  0x99   : > { %1163 = vmatmul.bf16.gmra.mxu2 %v2977_v36  ;;  %1252 = vmatmul.bf16.gmra.mxu3 %v2981_v39  ;;  %v1541_v36 = vld [vmem:[%s5054_s5 + $0xa8] sm:$0xff] }
  0x9a   : > { %1074 = vmatmul.bf16.gmra.mxu1 %v2981_v39  ;;  %v3024_v39 = vld [vmem:[%s5051_s2 + $0x70] sm:$0xf] }
  0x9b   : > { %1559 = vperm.xlu0 %3332, %v1521_v49   ;;  %v3025_v44 = vor.u32 %v3243_v40, %v3024_v39  ;;  %v2454_v49 = vld [vmem:[%s5055_s6 + $0x10] sm:$0xff] }
  0x9c   : > { %1564 = vperm.xlu1 %3333, %v1522_v50   ;;  %1554 = vperm.xlu2 %3334, %v1520_v57   ;;  %v2455_v50 = vld [vmem:[%s5055_s6 + $0x18] sm:$0xff] }
  0xa3   : > { %1574 = vperm.xlu0 %3332, %v1524_v53   ;;  %v1550_v53 = vld [vmem:[%s5054_s5 + $0xf0] sm:$0xff] }
  0xa4   : > { %1579 = vperm.xlu1 %3333, %v1525_v54   ;;  %1569 = vperm.xlu2 %3334, %v1523_v0   ;;  %v3244_v54 = vld [vmem:[%s5051_s2 + $0x84] sm:$0xf] }
  0xa8   : > { %990 = vmatmul.bf16.gmra.mxu0 %v2985_v48 }
  0xa9   : > { %1168 = vmatmul.bf16.gmra.mxu2 %v2985_v48  ;;  %1257 = vmatmul.bf16.gmra.mxu3 %v2989_v51  ;;  %v1547_v48 = vld [vmem:[%s5054_s5 + $0xd8] sm:$0xff] }
  0xaa   : > { %1079 = vmatmul.bf16.gmra.mxu1 %v2989_v51  ;;  %v3032_v51 = vld [vmem:[%s5051_s2 + $0x80] sm:$0xf] }
  0xab   : > { %1589 = vperm.xlu0 %3332, %v1527_v61   ;;  %v3033_v57 = vor.u32 %v3245_v52, %v3032_v51  ;;  %v3037_v61 = vor.u32 %v3244_v54, %v3034_v55  ;;  %v3048_v54 = vld [vmem:[%s5051_s2 + $0xa0] sm:$0xf]  ;;  %v3249_v55 = vld [vmem:[%s5051_s2 + $0xa4] sm:$0xf0] }
  0xac   : > { %1594 = vperm.xlu1 %3333, %v1528_v62   ;;  %1584 = vperm.xlu2 %3334, %v1526_v5   ;;  %v2461_v5 = vld [vmem:[%s5055_s6 + $0x48] sm:$0xff] }
  0xb3   : > { %1604 = vperm.xlu0 %3332, %v1530_v1   ;;  %v2453_v1 = vld [vmem:[%s5055_s6 + $0x8] sm:$0xff] }
  0xb4   : > { %1609 = vperm.xlu1 %3333, %v1531_v2   ;;  %1599 = vperm.xlu2 %3334, %v1529_v12   ;;  %v655_v56 = vpop.permute.xlu0 %654 }
  0xb8   : > { %995 = vmatmul.bf16.gmra.mxu0 %v2993_v60 }
  0xb9   : > { %1173 = vmatmul.bf16.gmra.mxu2 %v2993_v60  ;;  %1262 = vmatmul.bf16.gmra.mxu3 %v2997_v63 }
  0xba   : > { %1084 = vmatmul.bf16.gmra.mxu1 %v2997_v63 }
  0xbb   : > { %1619 = vperm.xlu0 %3332, %v1533_v9  }
  0xbc   : > { %1624 = vperm.xlu1 %3333, %v1534_v10   ;;  %1614 = vperm.xlu2 %3334, %v1532_v17  }
  0xbd   : > { %v660_v6 = vpop.permute.xlu0 %659 }
  0xc3   : > { %1634 = vperm.xlu0 %3332, %v1536_v13  }
  0xc4   : > { %1639 = vperm.xlu1 %3333, %v1537_v14   ;;  %1629 = vperm.xlu2 %3334, %v1535_v24   ;;  %v3040_v14 = vld [vmem:[%s5051_s2 + $0x90] sm:$0xf] }
  0xc5   : > { %v3041_v24 = vor.u32 %v3247_v15, %v3040_v14  ;;  %v2465_v14 = vld [vmem:[%s5055_s6 + $0x68] sm:$0xff] }
  0xc8   : > { %1000 = vmatmul.bf16.gmra.mxu0 %v3001_v8 }
  0xc9   : > { %1178 = vmatmul.bf16.gmra.mxu2 %v3001_v8  ;;  %1267 = vmatmul.bf16.gmra.mxu3 %v3005_v11 }
  0xca   : > { %1089 = vmatmul.bf16.gmra.mxu1 %v3005_v11 }
  0xcb   : > { %1649 = vperm.xlu0 %3332, %v1539_v21   ;;  %v665_v21 = vpop.permute.xlu1 %664 }
  0xcc   : > { %1654 = vperm.xlu1 %3333, %v1540_v22   ;;  %1644 = vperm.xlu2 %3334, %v1538_v29  }
  0xd3   : > { %1664 = vperm.xlu0 %3332, %v1542_v25   ;;  %v2463_v25 = vld [vmem:[%s5055_s6 + $0x58] sm:$0xff] }
  0xd4   : > { %1669 = vperm.xlu1 %3333, %v1543_v26   ;;  %1659 = vperm.xlu2 %3334, %v1541_v36   ;;  %v2464_v26 = vld [vmem:[%s5055_s6 + $0x60] sm:$0xff] }
  0xd8   : > { %1005 = vmatmul.bf16.gmra.mxu0 %v3009_v20 }
  0xd9   : > { %1183 = vmatmul.bf16.gmra.mxu2 %v3009_v20  ;;  %1272 = vmatmul.bf16.gmra.mxu3 %v3013_v23  ;;  %v3042_v20 = vld [vmem:[%s5051_s2 + $0x98] sm:$0xf0] }
  0xda   : > { %1094 = vmatmul.bf16.gmra.mxu1 %v3013_v23  ;;  %v3045_v30 = vor.u32 %v3246_v19, %v3042_v20  ;;  %v2472_v19 = vld [vmem:[%s5055_s6 + $0xa0] sm:$0xff]  ;;  %v2473_v20 = vld [vmem:[%s5055_s6 + $0xa8] sm:$0xff] }
  0xdb   : > { %1679 = vperm.xlu0 %3332, %v1545_v33  }
  0xdc   : > { %1684 = vperm.xlu1 %3333, %v1546_v34   ;;  %1674 = vperm.xlu2 %3334, %v1544_v41  }
  0xe3   : > { %1694 = vperm.xlu0 %3332, %v1548_v37  }
  0xe4   : > { %1699 = vperm.xlu1 %3333, %v1549_v38   ;;  %1689 = vperm.xlu2 %3334, %v1547_v48   ;;  %v2459_v38 = vld [vmem:[%s5055_s6 + $0x38] sm:$0xff] }
  0xe8   : > { %1010 = vmatmul.bf16.gmra.mxu0 %v3017_v32 }
  0xe9   : > { %1188 = vmatmul.bf16.gmra.mxu2 %v3017_v32  ;;  %1277 = vmatmul.bf16.gmra.mxu3 %v3021_v35 }
  0xea   : > { %1099 = vmatmul.bf16.gmra.mxu1 %v3021_v35 }
  0xeb   : > { %1709 = vperm.xlu0 %3332, %v1551_v45   ;;  %v670_v45 = vpop.permute.xlu1 %669 }
  0xec   : > { %2486 = vperm.xlu1 %3333, %v2452_v46   ;;  %1704 = vperm.xlu2 %3334, %v1550_v53  }
  0xf3   : > { %2496 = vperm.xlu0 %3332, %v2454_v49  }
  0xf4   : > { %2501 = vperm.xlu1 %3333, %v2455_v50   ;;  %2491 = vperm.xlu2 %3334, %v2453_v1   ;;  %v2469_v1 = vld [vmem:[%s5055_s6 + $0x88] sm:$0xff] }
  0xf8   : > { %1015 = vmatmul.bf16.gmra.mxu0 %v3025_v44 }
  0xf9   : > { %1193 = vmatmul.bf16.gmra.mxu2 %v3025_v44  ;;  %1282 = vmatmul.bf16.gmra.mxu3 %v3029_v47  ;;  %v2467_v44 = vld [vmem:[%s5055_s6 + $0x78] sm:$0xff] }
  0xfa   : > { %1104 = vmatmul.bf16.gmra.mxu1 %v3029_v47 }
  0xfb   : > { %2511 = vperm.xlu0 %3332, %v2457_v58  }
  0xfc   : > { %2516 = vperm.xlu1 %3333, %v2458_v59   ;;  %2506 = vperm.xlu2 %3334, %v2456_v16   ;;  %v3248_v59 = vld [vmem:[%s5051_s2 + $0xa4] sm:$0xf] }
 0x103   : > { %2526 = vperm.xlu0 %3332, %v2460_v4  }
 0x104   : > { %2531 = vperm.xlu1 %3333, %v2461_v5   ;;  %2521 = vperm.xlu2 %3334, %v2459_v38  }
 0x105   : > { %v981_v60 = vpop.f32.mrf.mxu0 }
 0x106   : > { %v982_v62 = vadd.f32 %v981_v60, %v655_v56  ;;  %v3050_v60 = vld [vmem:[%s5051_s2 + $0xa8] sm:$0xf0] }
 0x107   : > { %v1070_v63 = vpop.f32.mrf.mxu1 }
 0x108   : > { %v1071_v0 = vadd.f32 %v1070_v63, %v982_v62  ;;  %1020 = vmatmul.bf16.gmra.mxu0 %v3033_v57 }
 0x109   : > { %1198 = vmatmul.bf16.gmra.mxu2 %v3033_v57  ;;  %1287 = vmatmul.bf16.gmra.mxu3 %v3037_v61 }
 0x10a   : > { %1109 = vmatmul.bf16.gmra.mxu1 %v3037_v61  ;;  %v1328_v9 = vmul.f32 0.2, %v1071_v0  ;;  %v675_v61 = vpop.permute.xlu2 %674 }
 0x10b   : > { %2541 = vperm.xlu0 %3332, %v2463_v25  }
 0x10c   : > { %v1159_v2 = vpop.f32.mrf.mxu2  ;;  %v1248_v3 = vpop.f32.mrf.mxu3  ;;  %v1392_v17 = vmax.f32 %v1071_v0, %v1328_v9  ;;  %2546 = vperm.xlu1 %3333, %v2464_v26   ;;  %v3049_v0 = vor.u32 %v3249_v55, %v3048_v54 }
 0x10d   : > { %v1160_v7 = vadd.f32 %v1159_v2, %v655_v56  ;;  %v983_v8 = vpop.f32.mrf.mxu0  ;;  %v2462_v56 = vld [vmem:[%s5055_s6 + $0x50] sm:$0xff] }
 0x10e   : > { %v984_v10 = vadd.f32 %v983_v8, %v660_v6  ;;  %2536 = vperm.xlu2 %3334, %v2462_v56   ;;  %v2470_v2 = vld [vmem:[%s5055_s6 + $0x90] sm:$0xff]  ;;  %v2471_v56 = vld [vmem:[%s5055_s6 + $0x98] sm:$0xff] }
 0x10f   : > { %v1249_v11 = vadd.f32 %v1248_v3, %v1160_v7  ;;  %v1072_v12 = vpop.f32.mrf.mxu1 }
 0x110   : > { %v1073_v13 = vadd.f32 %v1072_v12, %v984_v10 }
 0x111   : > { %v1329_v33 = vmul.f32 0.2, %v1249_v11 }
 0x112   : > { %v1330_v18 = vmul.f32 0.2, %v1073_v13 }
 0x113   : > { %v1393_v39 = vmax.f32 %v1249_v11, %v1329_v33  ;;  %2556 = vperm.xlu0 %3332, %v2466_v43   ;;  %v2468_v33 = vld [vmem:[%s5055_s6 + $0x80] sm:$0xff] }
 0x114   : > { %v1161_v22 = vpop.f32.mrf.mxu2  ;;  %v1250_v23 = vpop.f32.mrf.mxu3  ;;  %v1394_v27 = vmax.f32 %v1073_v13, %v1330_v18  ;;  %2561 = vperm.xlu1 %3333, %v2467_v44  }
 0x115   : > { %v1162_v28 = vadd.f32 %v1161_v22, %v660_v6  ;;  %v986_v29 = vpop.f32.mrf.mxu0  ;;  %v3053_v6 = vor.u32 %v3248_v59, %v3050_v60  ;;  %v685_v44 = vpop.permute.xlu0 %684 }
 0x116   : > { %v987_v31 = vadd.f32 %v986_v29, %v665_v21  ;;  %v3986_v32 = vpack.c.bf16 %v1394_v27, %v1392_v17  ;;  %2551 = vperm.xlu2 %3334, %v2465_v14  }
 0x117   : > { %v1251_v34 = vadd.f32 %v1250_v23, %v1162_v28  ;;  %v1075_v35 = vpop.f32.mrf.mxu1 }
 0x118   : > { %v1076_v36 = vadd.f32 %v1075_v35, %v987_v31  ;;  %1025 = vmatmul.bf16.gmra.mxu0 %v3041_v24  ;;  %v3251_v31 = vld [vmem:[%s5051_s2 + $0xb4] sm:$0xf0] }
 0x119   : > { %v1331_v37 = vmul.f32 0.2, %v1251_v34  ;;  %1203 = vmatmul.bf16.gmra.mxu2 %v3041_v24  ;;  %1292 = vmatmul.bf16.gmra.mxu3 %v3045_v30 }
 0x11a   : > { %1114 = vmatmul.bf16.gmra.mxu1 %v3045_v30  ;;  %v1332_v49 = vmul.f32 0.2, %v1076_v36  ;;  %v3056_v30 = vld [vmem:[%s5051_s2 + $0xb0] sm:$0xf] }
 0x11b   : > { %v1395_v40 = vmax.f32 %v1251_v34, %v1331_v37  ;;  %2571 = vperm.xlu0 %3332, %v2469_v1   ;;  %v3058_v37 = vld [vmem:[%s5051_s2 + $0xb8] sm:$0xf0] }
 0x11c   : > { %v1164_v41 = vpop.f32.mrf.mxu2  ;;  %v1253_v42 = vpop.f32.mrf.mxu3  ;;  %v1396_v57 = vmax.f32 %v1076_v36, %v1332_v49  ;;  %2576 = vperm.xlu1 %3333, %v2470_v2   ;;  %v3250_v36 = vld [vmem:[%s5051_s2 + $0xb4] sm:$0xf] }
 0x11d   : > { %v1165_v46 = vadd.f32 %v1164_v41, %v665_v21  ;;  %v988_v47 = vpop.f32.mrf.mxu0  ;;  %v3997_v48 = vpack.c.bf16 %v1395_v40, %v1393_v39  ;;  %v680_v21 = vpop.permute.xlu2 %679  ;;  %v3057_v40 = vor.u32 %v3251_v31, %v3056_v30  ;;  %v2475_v41 = vld [vmem:[%s5055_s6 + $0xb8] sm:$0xff] }
 0x11e   : > { %v989_v50 = vadd.f32 %v988_v47, %v670_v45  ;;  %2566 = vperm.xlu2 %3334, %v2468_v33   ;;  %v3061_v47 = vor.u32 %v3250_v36, %v3058_v37  ;;  %v2477_v37 = vld [vmem:[%s5055_s6 + $0xc8] sm:$0xff] }
 0x11f   : > { %v1254_v51 = vadd.f32 %v1253_v42, %v1165_v46  ;;  %v1077_v52 = vpop.f32.mrf.mxu1  ;;  %v2476_v42 = vld [vmem:[%s5055_s6 + $0xc0] sm:$0xff] }
 0x120   : > { %v1078_v53 = vadd.f32 %v1077_v52, %v989_v50 }
 0x121   : > { %v1333_v9 = vmul.f32 0.2, %v1254_v51 }
 0x122   : > { %v1334_v58 = vmul.f32 0.2, %v1078_v53 }
 0x123   : > { %v1397_v15 = vmax.f32 %v1254_v51, %v1333_v9  ;;  %2586 = vperm.xlu0 %3332, %v2472_v19  }
 0x124   : > { %v1166_v62 = vpop.f32.mrf.mxu2  ;;  %v1255_v63 = vpop.f32.mrf.mxu3  ;;  %v1398_v3 = vmax.f32 %v1078_v53, %v1334_v58  ;;  %2591 = vperm.xlu1 %3333, %v2473_v20   ;;  %v2481_v20 = vld [vmem:[%s5055_s6 + $0xe8] sm:$0xff] }
 0x125   : > { %v1167_v4 = vadd.f32 %v1166_v62, %v670_v45  ;;  %v991_v5 = vpop.f32.mrf.mxu0  ;;  %v2479_v62 = vld [vmem:[%s5055_s6 + $0xd8] sm:$0xff] }
 0x126   : > { %v992_v7 = vadd.f32 %v991_v5, %v675_v61  ;;  %v4020_v8 = vpack.c.bf16 %v1398_v3, %v1396_v57  ;;  %2581 = vperm.xlu2 %3334, %v2471_v56   ;;  %v4067_v5 = vpop.permute.xlu0 %699 }
 0x127   : > { %v1256_v10 = vadd.f32 %v1255_v63, %v1167_v4  ;;  %v1080_v11 = vpop.f32.mrf.mxu1  ;;  %v690_v63 = vpop.permute.xlu1 %689 }
 0x128   : > { %v1081_v12 = vadd.f32 %v1080_v11, %v992_v7  ;;  %1030 = vmatmul.bf16.gmra.mxu0 %v3049_v0  ;;  %v3253_v11 = vld [vmem:[%s5051_s2 + $0xc4] sm:$0xf0] }
 0x129   : > { %v1335_v13 = vmul.f32 0.2, %v1256_v10  ;;  %1208 = vmatmul.bf16.gmra.mxu2 %v3049_v0  ;;  %1297 = vmatmul.bf16.gmra.mxu3 %v3053_v6 }
 0x12a   : > { %1119 = vmatmul.bf16.gmra.mxu1 %v3053_v6  ;;  %v1336_v25 = vmul.f32 0.2, %v1081_v12 }
 0x12b   : > { %v1399_v16 = vmax.f32 %v1256_v10, %v1335_v13  ;;  %2601 = vperm.xlu0 %3332, %v2475_v41   ;;  %v3064_v10 = vld [vmem:[%s5051_s2 + $0xc0] sm:$0xf] }
 0x12c   : > { %v1169_v17 = vpop.f32.mrf.mxu2  ;;  %v1258_v18 = vpop.f32.mrf.mxu3  ;;  %v1400_v34 = vmax.f32 %v1081_v12, %v1336_v25  ;;  %2606 = vperm.xlu1 %3333, %v2476_v42   ;;  %v2474_v12 = vld [vmem:[%s5055_s6 + $0xb0] sm:$0xff]  ;;  %v3065_v19 = vor.u32 %v3253_v11, %v3064_v10  ;;  %v3082_v10 = vld [vmem:[%s5051_s2 + $0xe8] sm:$0xf0] }
 0x12d   : > { %v1170_v22 = vadd.f32 %v1169_v17, %v675_v61  ;;  %v993_v23 = vpop.f32.mrf.mxu0  ;;  %v4031_v24 = vpack.c.bf16 %v1399_v16, %v1397_v15  ;;  %v2478_v61 = vld [vmem:[%s5055_s6 + $0xd0] sm:$0xff]  ;;  %v3252_v15 = vld [vmem:[%s5051_s2 + $0xc4] sm:$0xf]  ;;  %v3066_v16 = vld [vmem:[%s5051_s2 + $0xc8] sm:$0xf0] }
 0x12e   : > { %v994_v26 = vadd.f32 %v993_v23, %v680_v21  ;;  %2596 = vperm.xlu2 %3334, %v2474_v12   ;;  %v695_v23 = vpop.permute.xlu2 %694 }
 0x12f   : > { %v1259_v27 = vadd.f32 %v1258_v18, %v1170_v22  ;;  %v1082_v28 = vpop.f32.mrf.mxu1 }
 0x130   : > { %v1083_v29 = vadd.f32 %v1082_v28, %v994_v26 }
 0x131   : > { %v1337_v51 = vmul.f32 0.2, %v1259_v27 }
 0x132   : > { %v1338_v35 = vmul.f32 0.2, %v1083_v29 }
 0x133   : > { %v1401_v57 = vmax.f32 %v1259_v27, %v1337_v51  ;;  %2616 = vperm.xlu0 %3332, %v2478_v61   ;;  %v3069_v27 = vor.u32 %v3252_v15, %v3066_v16  ;;  %v2480_v51 = vld [vmem:[%s5055_s6 + $0xe0] sm:$0xff]  ;;  %v4130_v61 = vpop.permute.xlu1 %704 }
 0x134   : > { %v1171_v38 = vpop.f32.mrf.mxu2  ;;  %v1260_v39 = vpop.f32.mrf.mxu3  ;;  %v1402_v43 = vmax.f32 %v1083_v29, %v1338_v35  ;;  %2621 = vperm.xlu1 %3333, %v2479_v62   ;;  %v2483_v62 = vld [vmem:[%s5055_s6 + $0xf8] sm:$0xff] }
 0x135   : > { %v1172_v45 = vadd.f32 %v1171_v38, %v680_v21  ;;  %v996_v46 = vpop.f32.mrf.mxu0  ;;  %v2482_v21 = vld [vmem:[%s5055_s6 + $0xf0] sm:$0xff]  ;;  %v4094_v35 = vpop.permute.xlu0 %714 }
 0x136   : > { %v997_v49 = vadd.f32 %v996_v46, %v685_v44  ;;  %v4054_v50 = vpack.c.bf16 %v1402_v43, %v1400_v34  ;;  %2611 = vperm.xlu2 %3334, %v2477_v37  }
 0x137   : > { %v1261_v52 = vadd.f32 %v1260_v39, %v1172_v45  ;;  %v1085_v53 = vpop.f32.mrf.mxu1 }
 0x138   : > { %v1086_v54 = vadd.f32 %v1085_v53, %v997_v49  ;;  %1035 = vmatmul.bf16.gmra.mxu0 %v3057_v40  ;;  %v3255_v49 = vld [vmem:[%s5051_s2 + $0xd4] sm:$0xf0]  ;;  %v3074_v53 = vld [vmem:[%s5051_s2 + $0xd8] sm:$0xf0] }
 0x139   : > { %v1339_v55 = vmul.f32 0.2, %v1261_v52  ;;  %1213 = vmatmul.bf16.gmra.mxu2 %v3057_v40  ;;  %1302 = vmatmul.bf16.gmra.mxu3 %v3061_v47 }
 0x13a   : > { %1124 = vmatmul.bf16.gmra.mxu1 %v3061_v47  ;;  %v1340_v3 = vmul.f32 0.2, %v1086_v54  ;;  %v3072_v47 = vld [vmem:[%s5051_s2 + $0xd0] sm:$0xf] }
 0x13b   : > { %v1403_v58 = vmax.f32 %v1261_v52, %v1339_v55  ;;  %2631 = vperm.xlu0 %3332, %v2481_v20   ;;  %v3254_v52 = vld [vmem:[%s5051_s2 + $0xd4] sm:$0xf]  ;;  %v720_v11 = vpop.permute.xlu1 %719 }
 0x13c   : > { %v1174_v59 = vpop.f32.mrf.mxu2  ;;  %v1263_v60 = vpop.f32.mrf.mxu3  ;;  %v1404_v13 = vmax.f32 %v1086_v54, %v1340_v3  ;;  %2636 = vperm.xlu1 %3333, %v2482_v21  }
 0x13d   : > { %v1175_v0 = vadd.f32 %v1174_v59, %v685_v44  ;;  %v998_v1 = vpop.f32.mrf.mxu0  ;;  %v4065_v2 = vpack.c.bf16 %v1403_v58, %v1401_v57  ;;  %v4122_v54 = vpop.permute.xlu0 %729  ;;  %v3073_v57 = vor.u32 %v3255_v49, %v3072_v47  ;;  %v3077_v59 = vor.u32 %v3254_v52, %v3074_v53 }
 0x13e   : > { %v999_v4 = vadd.f32 %v998_v1, %v690_v63  ;;  %2626 = vperm.xlu2 %3334, %v2480_v51  }
 0x13f   : > { %v1264_v6 = vadd.f32 %v1263_v60, %v1175_v0  ;;  %v1087_v7 = vpop.f32.mrf.mxu1 }
 0x140   : > { %v1088_v9 = vadd.f32 %v1087_v7, %v999_v4  ;;  %v3257_v7 = vld [vmem:[%s5051_s2 + $0xe4] sm:$0xf0] }
 0x141   : > { %v1341_v30 = vmul.f32 0.2, %v1264_v6 }
 0x142   : > { %v1342_v14 = vmul.f32 0.2, %v1088_v9 }
 0x143   : > { %v1405_v38 = vmax.f32 %v1264_v6, %v1341_v30  ;;  %v3080_v6 = vld [vmem:[%s5051_s2 + $0xe0] sm:$0xf]  ;;  %v3258_v30 = vld [vmem:[%s5051_s2 + $0xf4] sm:$0xf] }
 0x144   : > { %v1176_v17 = vpop.f32.mrf.mxu2  ;;  %v1265_v18 = vpop.f32.mrf.mxu3  ;;  %v1406_v22 = vmax.f32 %v1088_v9, %v1342_v14  ;;  %v3256_v9 = vld [vmem:[%s5051_s2 + $0xe4] sm:$0xf]  ;;  %v3081_v14 = vor.u32 %v3257_v7, %v3080_v6 }
 0x145   : > { %v1177_v25 = vadd.f32 %v1176_v17, %v690_v63  ;;  %v1001_v26 = vpop.f32.mrf.mxu0  ;;  %v4139_v1 = vpop.permute.xlu0 %794  ;;  %v3085_v16 = vor.u32 %v3256_v9, %v3082_v10 }
 0x146   : > { %v1002_v28 = vadd.f32 %v1001_v26, %v695_v23  ;;  %v4090_v29 = vpack.c.bf16 %v1406_v22, %v1404_v13  ;;  %2641 = vperm.xlu2 %3334, %v2483_v62   ;;  %v4161_v22 = vpop.permute.xlu1 %804 }
 0x147   : > { %v1266_v31 = vadd.f32 %v1265_v18, %v1177_v25  ;;  %v1090_v33 = vpop.f32.mrf.mxu1 }
 0x148   : > { %v4092_v34 = vadd.f32 %v1090_v33, %v1002_v28  ;;  %1040 = vmatmul.bf16.gmra.mxu0 %v3065_v19  ;;  %v3259_v28 = vld [vmem:[%s5051_s2 + $0xf4] sm:$0xf0] }
 0x149   : > { %v1343_v36 = vmul.f32 0.2, %v1266_v31  ;;  %1218 = vmatmul.bf16.gmra.mxu2 %v3065_v19  ;;  %1307 = vmatmul.bf16.gmra.mxu3 %v3069_v27  ;;  %v710_v19 = vpop.permute.xlu2 %709 }
 0x14a   : > { %1129 = vmatmul.bf16.gmra.mxu1 %v3069_v27  ;;  %v3088_v27 = vld [vmem:[%s5051_s2 + $0xf0] sm:$0xf] }
 0x14b   : > { %v1407_v39 = vmax.f32 %v1266_v31, %v1343_v36  ;;  %v3090_v31 = vld [vmem:[%s5051_s2 + $0xf8] sm:$0xf0]  ;;  %v3089_v37 = vor.u32 %v3259_v28, %v3088_v27 }
 0x14c   : > { %v1179_v40 = vpop.f32.mrf.mxu2  ;;  %v1268_v41 = vpop.f32.mrf.mxu3 }
 0x14d   : > { %v1180_v42 = vadd.f32 %v1179_v40, %v695_v23  ;;  %v4099_v43 = vpop.f32.mrf.mxu0  ;;  %v4101_v44 = vpack.c.bf16 %v1407_v39, %v1405_v38  ;;  %v4157_v17 = vpop.permute.xlu0 %789  ;;  %v3093_v40 = vor.u32 %v3258_v30, %v3090_v31 }
 0x14f   : > { %v4103_v45 = vadd.f32 %v1268_v41, %v1180_v42  ;;  %v4105_v46 = vpop.f32.mrf.mxu1  ;;  %v4177_v42 = vpop.permute.xlu1 %799 }
 0x151   : > { %v725_v38 = vpop.permute.xlu2 %724 }
 0x154   : > { %v4124_v55 = vpop.f32.mrf.mxu2  ;;  %v4126_v56 = vpop.f32.mrf.mxu3 }
 0x155   : > { %v1006_v58 = vpop.f32.mrf.mxu0  ;;  %v4163_v26 = vpop.permute.xlu0 %764 }
 0x157   : > { %v4128_v60 = vpop.f32.mrf.mxu1  ;;  %v4187_v31 = vpop.permute.xlu1 %774 }
 0x158   : > { %1045 = vmatmul.bf16.gmra.mxu0 %v3073_v57 }
 0x159   : > { %1223 = vmatmul.bf16.gmra.mxu2 %v3073_v57  ;;  %1312 = vmatmul.bf16.gmra.mxu3 %v3077_v59  ;;  %v1007_v57 = vadd.f32 %v1006_v58, %v4130_v61 }
 0x15a   : > { %1134 = vmatmul.bf16.gmra.mxu1 %v3077_v59 }
 0x15c   : > { %v4135_v63 = vpop.f32.mrf.mxu2  ;;  %v4137_v0 = vpop.f32.mrf.mxu3 }
 0x15d   : > { %v1008_v3 = vpop.f32.mrf.mxu0  ;;  %v4180_v53 = vpop.permute.xlu0 %759 }
 0x15e   : > { %v1009_v6 = vadd.f32 %v1008_v3, %v710_v19 }
 0x15f   : > { %v1097_v4 = vpop.f32.mrf.mxu1 }
 0x160   : > { %v1098_v58 = vadd.f32 %v1097_v4, %v1009_v6 }
 0x164   : > { %v4153_v12 = vpop.f32.mrf.mxu2  ;;  %v4155_v13 = vpop.f32.mrf.mxu3 }
 0x165   : > { %v1011_v15 = vpop.f32.mrf.mxu0 }
 0x166   : > { %v1012_v49 = vadd.f32 %v1011_v15, %v4094_v35  ;;  %v1004_v15 = vadd.f32 %v4099_v43, %v4067_v5 }
 0x167   : > { %v1100_v18 = vpop.f32.mrf.mxu1 }
 0x168   : > { %1050 = vmatmul.bf16.gmra.mxu0 %v3081_v14  ;;  %v1101_v9 = vadd.f32 %v1100_v18, %v1012_v49 }
 0x169   : > { %1228 = vmatmul.bf16.gmra.mxu2 %v3081_v14  ;;  %1317 = vmatmul.bf16.gmra.mxu3 %v3085_v16 }
 0x16a   : > { %1139 = vmatmul.bf16.gmra.mxu1 %v3085_v16 }
 0x16c   : > { %v1189_v20 = vpop.f32.mrf.mxu2  ;;  %v4159_v21 = vpop.f32.mrf.mxu3 }
 0x16d   : > { %v1013_v23 = vpop.f32.mrf.mxu0 }
 0x16e   : > { %v1014_v51 = vadd.f32 %v1013_v23, %v720_v11  ;;  %v1096_v23 = vadd.f32 %v4128_v60, %v1007_v57  ;;  %v1350_v60 = vmul.f32 0.2, %v1098_v58  ;;  %v1187_v57 = vadd.f32 %v4153_v12, %v710_v19 }
 0x16f   : > { %v1102_v25 = vpop.f32.mrf.mxu1  ;;  %v1182_v12 = vadd.f32 %v4124_v55, %v4067_v5 }
 0x170   : > { %v1103_v10 = vadd.f32 %v1102_v25, %v1014_v51  ;;  %v1190_v25 = vadd.f32 %v1189_v20, %v4094_v35  ;;  %v4193_v35 = vpop.permute.xlu2 %809 }
 0x171   : > { %v1271_v55 = vadd.f32 %v4126_v56, %v1182_v12 }
 0x172   : > { %v1354_v3 = vmul.f32 0.2, %v1103_v10  ;;  %v1279_v20 = vadd.f32 %v4159_v21, %v1190_v25  ;;  %v4204_v21 = vpop.permute.xlu1 %769 }
 0x174   : > { %v1191_v33 = vpop.f32.mrf.mxu2  ;;  %v1280_v36 = vpop.f32.mrf.mxu3 }
 0x175   : > { %v1016_v39 = vpop.f32.mrf.mxu0 }
 0x176   : > { %v1017_v41 = vadd.f32 %v1016_v39, %v725_v38  ;;  %v1352_v39 = vmul.f32 0.2, %v1101_v9 }
 0x177   : > { %v1105_v47 = vpop.f32.mrf.mxu1 }
 0x178   : > { %1055 = vmatmul.bf16.gmra.mxu0 %v3089_v37  ;;  %v1106_v52 = vadd.f32 %v1105_v47, %v1017_v41  ;;  %v1348_v47 = vmul.f32 0.2, %v1096_v23  ;;  %v4215_v56 = vpop.permute.xlu2 %784 }
 0x179   : > { %1233 = vmatmul.bf16.gmra.mxu2 %v3089_v37  ;;  %1322 = vmatmul.bf16.gmra.mxu3 %v3093_v40  ;;  %v1192_v37 = vadd.f32 %v1191_v33, %v720_v11  ;;  %v1416_v33 = vmax.f32 %v1101_v9, %v1352_v39 }
 0x17a   : > { %1144 = vmatmul.bf16.gmra.mxu1 %v3093_v40  ;;  %v1356_v14 = vmul.f32 0.2, %v1106_v52 }
 0x17c   : > { %v1194_v59 = vpop.f32.mrf.mxu2  ;;  %v1283_v62 = vpop.f32.mrf.mxu3  ;;  %v1420_v40 = vmax.f32 %v1106_v52, %v1356_v14  ;;  %v1418_v14 = vmax.f32 %v1103_v10, %v1354_v3 }
 0x17d   : > { %v1018_v7 = vpop.f32.mrf.mxu0  ;;  %v1195_v27 = vadd.f32 %v1194_v59, %v725_v38  ;;  %v1093_v38 = vadd.f32 %v4105_v46, %v1004_v15  ;;  %v735_v59 = vpop.permute.xlu0 %734  ;;  %v1185_v46 = vadd.f32 %v4135_v63, %v4130_v61  ;;  %v1412_v15 = vmax.f32 %v1096_v23, %v1348_v47 }
 0x17e   : > { %v1019_v16 = vadd.f32 %v1018_v7, %v4122_v54  ;;  %v1281_v7 = vadd.f32 %v1280_v36, %v1192_v37  ;;  %v1276_v36 = vadd.f32 %v4155_v13, %v1187_v57  ;;  %v1500_v61 = vpack.c.bf16 %v1418_v14, %v1416_v33 }
 0x17f   : > { %v1107_v28 = vpop.f32.mrf.mxu1  ;;  %v1284_v41 = vadd.f32 %v1283_v62, %v1195_v27  ;;  %v1414_v63 = vmax.f32 %v1098_v58, %v1350_v60  ;;  %v1353_v37 = vmul.f32 0.2, %v1279_v20  ;;  %v1347_v57 = vmul.f32 0.2, %v1271_v55 }
 0x180   : > { %v1108_v30 = vadd.f32 %v1107_v28, %v1019_v16  ;;  %v1355_v9 = vmul.f32 0.2, %v1281_v7  ;;  %v1346_v28 = vmul.f32 0.2, %v1093_v38 }
 0x181   : > { %v1357_v62 = vmul.f32 0.2, %v1284_v41  ;;  %v1498_v47 = vpack.c.bf16 %v1414_v63, %v1412_v15 }
 0x182   : > { %v1358_v18 = vmul.f32 0.2, %v1108_v30  ;;  %v1419_v23 = vmax.f32 %v1281_v7, %v1355_v9  ;;  %v1345_v7 = vmul.f32 0.2, %v4103_v45 }
 0x183   : > { %v1421_v39 = vmax.f32 %v1284_v41, %v1357_v62 }
 0x184   : > { %v1196_v49 = vpop.f32.mrf.mxu2  ;;  %v1285_v51 = vpop.f32.mrf.mxu3  ;;  %v1422_v43 = vmax.f32 %v1108_v30, %v1358_v18  ;;  %v1274_v30 = vadd.f32 %v4137_v0, %v1185_v46  ;;  %v1351_v18 = vmul.f32 0.2, %v1276_v36  ;;  %v1417_v0 = vmax.f32 %v1279_v20, %v1353_v37 }
 0x185   : > { %v1197_v4 = vadd.f32 %v1196_v49, %v4122_v54  ;;  %v1021_v11 = vpop.f32.mrf.mxu0  ;;  %v1344_v54 = vmul.f32 0.2, %v4092_v34  ;;  %v1411_v46 = vmax.f32 %v1271_v55, %v1347_v57  ;;  %v1409_v62 = vmax.f32 %v4103_v45, %v1345_v7 }
 0x186   : > { %v1022_v52 = vadd.f32 %v1021_v11, %v735_v59  ;;  %v1502_v6 = vpack.c.bf16 %v1422_v43, %v1420_v40  ;;  %v1349_v43 = vmul.f32 0.2, %v1274_v30 }
 0x187   : > { %v1286_v16 = vadd.f32 %v1285_v51, %v1197_v4  ;;  %v1110_v27 = vpop.f32.mrf.mxu1  ;;  %v1408_v58 = vmax.f32 %v4092_v34, %v1344_v54  ;;  %v1410_v51 = vmax.f32 %v1093_v38, %v1346_v28  ;;  %v1415_v4 = vmax.f32 %v1276_v36, %v1351_v18  ;;  %v4226_v54 = vpop.permute.xlu2 %779 }
 0x188   : > { %v4200_v19 = vadd.f32 %v1110_v27, %v1022_v52  ;;  %1872 = vmatpush.bf16.msrb.mxu0 %v1502_v6  ;;  %v1413_v33 = vmax.f32 %v1274_v30, %v1349_v43  ;;  %v745_v52 = vpop.permute.xlu1 %744  ;;  %v1497_v12 = vpack.c.bf16 %v1411_v46, %v1409_v62 }
 0x189   : > { %v1359_v10 = vmul.f32 0.2, %v1286_v16  ;;  %v1496_v11 = vpack.c.bf16 %v1410_v51, %v1408_v58 }
 0x18a   : > { %5079 = vst [vmem:[#allocation7_spill] sm:$0xff] %v4200_v19  ;;  %v1499_v14 = vpack.c.bf16 %v1415_v4, %v1413_v33  ;;  %v3112_v33 = vld [vmem:[%s5053_s4 + $0x20] sm:$0xf] }
 0x18b   : > { %v1423_v5 = vmax.f32 %v1286_v16, %v1359_v10 }
 0x18c   : > { %v1199_v3 = vpop.f32.mrf.mxu2  ;;  %v1288_v40 = vpop.f32.mrf.mxu3  ;;  %1873 = vmatpush.bf16.msrb.mxu0 %v1500_v61  ;;  %v3261_v61 = vld [vmem:[%s5053_s4 + $0x4] sm:$0xf0] }
 0x18d   : > { %v1200_v13 = vadd.f32 %v1199_v3, %v735_v59  ;;  %v4208_v25 = vpop.f32.mrf.mxu0  ;;  %v1503_v49 = vpack.c.bf16 %v1423_v5, %v1421_v39  ;;  %v1501_v59 = vpack.c.bf16 %v1419_v23, %v1417_v0 }
 0x18f   : > { %v4211_v60 = vadd.f32 %v1288_v40, %v1200_v13  ;;  %2050 = vmatpush.bf16.msrb.mxu2 %v1503_v49  ;;  %v4213_v41 = vpop.f32.mrf.mxu1  ;;  %v3263_v13 = vld [vmem:[%s5053_s4 + $0x14] sm:$0xf0] }
 0x190   : > { %1874 = vmatpush.bf16.msrb.mxu0 %v1498_v47 }
 0x191   : > { %5080 = vst [vmem:[#allocation8_spill] sm:$0xff] %v4211_v60 }
 0x193   : > { %2051 = vmatpush.bf16.msrb.mxu2 %v1501_v59 }
 0x194   : > { %v4218_v34 = vpop.f32.mrf.mxu2  ;;  %v4220_v38 = vpop.f32.mrf.mxu3  ;;  %1875 = vmatpush.bf16.msrb.mxu0 %v1496_v11 }
 0x195   : > { %5081 = vst [vmem:[#allocation9_spill] sm:$0xff] %v4218_v34  ;;  %v1026_v6 = vpop.f32.mrf.mxu0 }
 0x196   : > { %5082 = vst [vmem:[#allocation10_spill] sm:$0xff] %v4220_v38  ;;  %v1027_v20 = vadd.f32 %v1026_v6, %v745_v52 }
 0x197   : > { %2052 = vmatpush.bf16.msrb.mxu2 %v1499_v14  ;;  %v1115_v16 = vpop.f32.mrf.mxu1 }
 0x198   : > { %v4223_v27 = vadd.f32 %v1115_v16, %v1027_v20  ;;  %1876 = vmatpush.bf16.msrb.mxu0 %v4090_v29  ;;  %v3096_v29 = vld [vmem:[%s5053_s4] sm:$0xf] }
 0x19b   : > { %2053 = vmatpush.bf16.msrb.mxu2 %v1497_v12 }
 0x19c   : > { %v1204_v36 = vpop.f32.mrf.mxu2  ;;  %v1293_v9 = vpop.f32.mrf.mxu3  ;;  %1877 = vmatpush.bf16.msrb.mxu0 %v4054_v50  ;;  %v3097_v50 = vor.u32 %v3261_v61, %v3096_v29 }
 0x19d   : > { %v1205_v10 = vadd.f32 %v1204_v36, %v745_v52  ;;  %v4229_v28 = vpop.f32.mrf.mxu0  ;;  %v3265_v52 = vld [vmem:[%s5053_s4 + $0x24] sm:$0xf0] }
 0x19e   : > { %v3113_v6 = vor.u32 %v3265_v52, %v3112_v33 }
 0x19f   : > { %v4231_v15 = vadd.f32 %v1293_v9, %v1205_v10  ;;  %2054 = vmatpush.bf16.msrb.mxu2 %v4101_v44  ;;  %v4234_v45 = vpop.f32.mrf.mxu1  ;;  %v755_v44 = vpop.permute.xlu2 %754 }
 0x1a0   : > { %1878 = vmatpush.bf16.msrb.mxu0 %v4020_v8 }
 0x1a1   : > { %5083 = vst [vmem:[#allocation11_spill] sm:$0xff] %v4231_v15 }
 0x1a3   : > { %2055 = vmatpush.bf16.msrb.mxu2 %v4065_v2 }
 0x1a4   : > { %v4244_v63 = vpop.f32.mrf.mxu2  ;;  %v4246_v30 = vpop.f32.mrf.mxu3  ;;  %1879 = vmatpush.bf16.msrb.mxu0 %v3986_v32 }
 0x1a5   : > { %5084 = vst [vmem:[#allocation12_spill] sm:$0xff] %v4244_v63  ;;  %v1031_v37 = vpop.f32.mrf.mxu0 }
 0x1a6   : > { %5085 = vst [vmem:[#allocation13_spill] sm:$0xff] %v4246_v30  ;;  %v1032_v8 = vadd.f32 %v1031_v37, %v755_v44 }
 0x1a7   : > { %2056 = vmatpush.bf16.msrb.mxu2 %v4031_v24  ;;  %v1120_v39 = vpop.f32.mrf.mxu1  ;;  %1880 = vmatmul.bf16.vlgmr.msrb.gmra.mxu0 %v3097_v50  ;;  %v3104_v24 = vld [vmem:[%s5053_s4 + $0x10] sm:$0xf] }
 0x1a8   : > { %v4250_v5 = vadd.f32 %v1120_v39, %v1032_v8  ;;  %v3105_v49 = vor.u32 %v3263_v13, %v3104_v24 }
 0x1ab   : > { %2057 = vmatpush.bf16.msrb.mxu2 %v3997_v48 }
 0x1ac   : > { %v1209_v55 = vpop.f32.mrf.mxu2  ;;  %v1298_v2 = vpop.f32.mrf.mxu3 }
 0x1ad   : > { %v1210_v3 = vadd.f32 %v1209_v55, %v755_v44  ;;  %v4253_v40 = vpop.f32.mrf.mxu0  ;;  %v3267_v44 = vld [vmem:[%s5053_s4 + $0x34] sm:$0xf0] }
 0x1ae   : > { %2058 = vmatmul.bf16.vlgmr.msrb.gmra.mxu2 %v3097_v50  ;;  %v3120_v50 = vld [vmem:[%s5053_s4 + $0x30] sm:$0xf] }
 0x1af   : > { %v4255_v18 = vadd.f32 %v1298_v2, %v1210_v3  ;;  %v4257_v32 = vpop.f32.mrf.mxu1  ;;  %v3121_v37 = vor.u32 %v3267_v44, %v3120_v50 }
 0x1b1   : > { %5086 = vst [vmem:[#allocation14_spill] sm:$0xff] %v4255_v18 }
 0x1b4   : > { %v4265_v48 = vpop.f32.mrf.mxu2  ;;  %v4267_v23 = vpop.f32.mrf.mxu3 }
 0x1b5   : > { %5087 = vst [vmem:[#allocation15_spill] sm:$0xff] %v4267_v23  ;;  %v1036_v58 = vpop.f32.mrf.mxu0 }
 0x1b6   : > { %v1037_v47 = vadd.f32 %v1036_v58, %v4163_v26  ;;  %v3269_v58 = vld [vmem:[%s5053_s4 + $0x44] sm:$0xf0] }
 0x1b7   : > { %v1125_v51 = vpop.f32.mrf.mxu1  ;;  %1885 = vmatmul.bf16.gmra.mxu0 %v3105_v49 }
 0x1b8   : > { %v4270_v43 = vadd.f32 %v1125_v51, %v1037_v47 }
 0x1bc   : > { %v1214_v0 = vpop.f32.mrf.mxu2  ;;  %v1303_v57 = vpop.f32.mrf.mxu3 }
 0x1bd   : > { %v1215_v59 = vadd.f32 %v1214_v0, %v4163_v26  ;;  %v4273_v4 = vpop.f32.mrf.mxu0 }
 0x1be   : > { %2063 = vmatmul.bf16.gmra.mxu2 %v3105_v49  ;;  %v3128_v49 = vld [vmem:[%s5053_s4 + $0x40] sm:$0xf] }
 0x1bf   : > { %v4275_v11 = vadd.f32 %v1303_v57, %v1215_v59  ;;  %v4277_v7 = vpop.f32.mrf.mxu1  ;;  %v3129_v47 = vor.u32 %v3269_v58, %v3128_v49 }
 0x1c1   : > { %5088 = vst [vmem:[#allocation16_spill] sm:$0xff] %v4275_v11 }
 0x1c4   : > { %v4285_v14 = vpop.f32.mrf.mxu2  ;;  %v4287_v46 = vpop.f32.mrf.mxu3 }
 0x1c5   : > { %v1041_v26 = vpop.f32.mrf.mxu0 }
 0x1c6   : > { %v1042_v20 = vadd.f32 %v1041_v26, %v4187_v31 }
 0x1c7   : > { %v1130_v62 = vpop.f32.mrf.mxu1  ;;  %1890 = vmatmul.bf16.gmra.mxu0 %v3113_v6 }
 0x1c8   : > { %v4290_v16 = vadd.f32 %v1130_v62, %v1042_v20  ;;  %v3136_v20 = vld [vmem:[%s5053_s4 + $0x50] sm:$0xf]  ;;  %v3271_v62 = vld [vmem:[%s5053_s4 + $0x54] sm:$0xf0] }
 0x1cc   : > { %v1219_v12 = vpop.f32.mrf.mxu2  ;;  %v1308_v36 = vpop.f32.mrf.mxu3 }
 0x1cd   : > { %v1220_v9 = vadd.f32 %v1219_v12, %v4187_v31  ;;  %v1043_v10 = vpop.f32.mrf.mxu0  ;;  %v3137_v12 = vor.u32 %v3271_v62, %v3136_v20 }
 0x1ce   : > { %2068 = vmatmul.bf16.gmra.mxu2 %v3113_v6 }
 0x1cf   : > { %v4293_v29 = vadd.f32 %v1308_v36, %v1220_v9  ;;  %v4295_v61 = vpop.f32.mrf.mxu1 }
 0x1d4   : > { %v4303_v8 = vpop.f32.mrf.mxu2  ;;  %v4305_v39 = vpop.f32.mrf.mxu3 }
 0x1d5   : > { %v1046_v31 = vpop.f32.mrf.mxu0 }
 0x1d6   : > { %v1047_v19 = vadd.f32 %v1046_v31, %v4215_v56  ;;  %v1039_v31 = vadd.f32 %v4273_v4, %v4204_v21 }
 0x1d7   : > { %v1135_v55 = vpop.f32.mrf.mxu1  ;;  %1895 = vmatmul.bf16.gmra.mxu0 %v3121_v37 }
 0x1dc   : > { %v4307_v2 = vpop.f32.mrf.mxu2  ;;  %v4309_v3 = vpop.f32.mrf.mxu3 }
 0x1dd   : > { %v1048_v24 = vpop.f32.mrf.mxu0 }
 0x1de   : > { %2073 = vmatmul.bf16.gmra.mxu2 %v3121_v37  ;;  %v1049_v18 = vadd.f32 %v1048_v24, %v4157_v17  ;;  %v3273_v24 = vld [vmem:[%s5053_s4 + $0x64] sm:$0xf0] }
 0x1df   : > { %v1137_v13 = vpop.f32.mrf.mxu1 }
 0x1e4   : > { %v1226_v51 = vpop.f32.mrf.mxu2  ;;  %v4317_v0 = vpop.f32.mrf.mxu3 }
 0x1e5   : > { %v1051_v57 = vpop.f32.mrf.mxu0 }
 0x1e6   : > { %v1052_v58 = vadd.f32 %v1051_v57, %v4139_v1  ;;  %v3144_v57 = vld [vmem:[%s5053_s4 + $0x60] sm:$0xf] }
 0x1e7   : > { %v1140_v59 = vpop.f32.mrf.mxu1  ;;  %1900 = vmatmul.bf16.gmra.mxu0 %v3129_v47 }
 0x1ec   : > { %v1229_v33 = vpop.f32.mrf.mxu2  ;;  %v1318_v52 = vpop.f32.mrf.mxu3 }
 0x1ed   : > { %v1053_v6 = vpop.f32.mrf.mxu0 }
 0x1ee   : > { %2078 = vmatmul.bf16.gmra.mxu2 %v3129_v47  ;;  %v1054_v49 = vadd.f32 %v1053_v6, %v4177_v42 }
 0x1ef   : > { %v1142_v26 = vpop.f32.mrf.mxu1 }
 0x1f0   : > { %v1143_v30 = vadd.f32 %v1142_v26, %v1054_v49  ;;  %v1136_v49 = vadd.f32 %v1135_v55, %v1047_v19  ;;  %v1225_v19 = vadd.f32 %v4307_v2, %v4215_v56  ;;  %v1376_v2 = vmul.f32 0.2, %v4290_v16 }
 0x1f4   : > { %v1231_v36 = vpop.f32.mrf.mxu2  ;;  %v1320_v9 = vpop.f32.mrf.mxu3 }
 0x1f5   : > { %v1056_v50 = vpop.f32.mrf.mxu0  ;;  %v1232_v26 = vadd.f32 %v1231_v36, %v4177_v42 }
 0x1f6   : > { %v1057_v37 = vadd.f32 %v1056_v50, %v4161_v22  ;;  %v1141_v50 = vadd.f32 %v1140_v59, %v1052_v58 }
 0x1f7   : > { %v1145_v44 = vpop.f32.mrf.mxu1  ;;  %1905 = vmatmul.bf16.gmra.mxu0 %v3137_v12 }
 0x1f8   : > { %v1146_v47 = vadd.f32 %v1145_v44, %v1057_v37  ;;  %v3145_v44 = vor.u32 %v3273_v24, %v3144_v57  ;;  %v4343_v37 = vpop.permute.xlu2 %749  ;;  %v1384_v58 = vmul.f32 0.2, %v1141_v50  ;;  %v1372_v57 = vmul.f32 0.2, %v4270_v43 }
 0x1f9   : > { %v1029_v42 = vadd.f32 %v4229_v28, %v4343_v37  ;;  %v1034_v28 = vadd.f32 %v4253_v40, %v4180_v53  ;;  %v1314_v40 = vadd.f32 %v4309_v3, %v1225_v19 }
 0x1fa   : > { %v1388_v11 = vmul.f32 0.2, %v1146_v47 }
 0x1fc   : > { %v1234_v60 = vpop.f32.mrf.mxu2  ;;  %v1323_v15 = vpop.f32.mrf.mxu3 }
 0x1fd   : > { %v1058_v38 = vpop.f32.mrf.mxu0  ;;  %v1235_v62 = vadd.f32 %v1234_v60, %v4161_v22  ;;  %v1386_v22 = vmul.f32 0.2, %v1143_v30 }
 0x1fe   : > { %v1059_v20 = vadd.f32 %v1058_v38, %v4193_v35  ;;  %2083 = vmatmul.bf16.gmra.mxu2 %v3137_v12  ;;  %v1044_v38 = vadd.f32 %v1043_v10, %v4226_v54  ;;  %v1138_v12 = vadd.f32 %v1137_v13, %v1049_v18  ;;  %v1227_v18 = vadd.f32 %v1226_v51, %v4157_v17 }
 0x1ff   : > { %v1147_v34 = vpop.f32.mrf.mxu1  ;;  %v1324_v59 = vadd.f32 %v1323_v15, %v1235_v62  ;;  %v1321_v10 = vadd.f32 %v1320_v9, %v1232_v26  ;;  %v1450_v36 = vmax.f32 %v1143_v30, %v1386_v22  ;;  %v4355_v17 = vadd.f32 %v4277_v7, %v1039_v31 }
 0x200   : > { %v1148_v6 = vadd.f32 %v1147_v34, %v1059_v20  ;;  %v1230_v34 = vadd.f32 %v1229_v33, %v4139_v1  ;;  %v1452_v20 = vmax.f32 %v1146_v47, %v1388_v11  ;;  %v1133_v4 = vadd.f32 %v4295_v61, %v1044_v38 }
 0x201   : > { %v1382_v1 = vmul.f32 0.2, %v1138_v12  ;;  %v1389_v55 = vmul.f32 0.2, %v1324_v59  ;;  %v1316_v30 = vadd.f32 %v4317_v0, %v1227_v18  ;;  %v1387_v61 = vmul.f32 0.2, %v1321_v10 }
 0x202   : > { %v1390_v60 = vmul.f32 0.2, %v1148_v6  ;;  %v1319_v11 = vadd.f32 %v1318_v52, %v1230_v34  ;;  %v1378_v51 = vmul.f32 0.2, %v1133_v4  ;;  %v1374_v3 = vmul.f32 0.2, %v4355_v17 }
 0x203   : > { %v1446_v9 = vmax.f32 %v1138_v12, %v1382_v1  ;;  %v1453_v7 = vmax.f32 %v1324_v59, %v1389_v55  ;;  %v1383_v24 = vmul.f32 0.2, %v1316_v30  ;;  %v1451_v38 = vmax.f32 %v1321_v10, %v1387_v61 }
 0x204   : > { %v1236_v23 = vpop.f32.mrf.mxu2  ;;  %v1454_v63 = vmax.f32 %v1148_v6, %v1390_v60  ;;  %v1325_v15 = vpop.f32.mrf.mxu3  ;;  %v1385_v62 = vmul.f32 0.2, %v1319_v11  ;;  %v1440_v12 = vmax.f32 %v4290_v16, %v1376_v2  ;;  %v1381_v31 = vmul.f32 0.2, %v1314_v40  ;;  %v3152_v16 = vld [vmem:[%s5053_s4 + $0x70] sm:$0xf] }
 0x205   : > { %v1237_v13 = vadd.f32 %v1236_v23, %v4193_v35  ;;  %v1380_v35 = vmul.f32 0.2, %v1136_v49  ;;  %v1448_v23 = vmax.f32 %v1141_v50, %v1384_v58  ;;  %v4363_v50 = vadd.f32 %v4257_v32, %v1034_v28  ;;  %v740_v60 = vpop.permute.xlu1 %739 }
 0x206   : > { %v1518_v33 = vpack.c.bf16 %v1454_v63, %v1452_v20  ;;  %v1222_v63 = vadd.f32 %v4303_v8, %v4226_v54  ;;  %v1217_v54 = vadd.f32 %v4285_v14, %v4204_v21  ;;  %v1442_v32 = vmax.f32 %v1133_v4, %v1378_v51 }
 0x207   : > { %v1326_v47 = vadd.f32 %v1325_v15, %v1237_v13  ;;  %1910 = vmatmul.bf16.gmra.mxu0 %v3145_v44  ;;  %v1516_v52 = vpack.c.bf16 %v1450_v36, %v1448_v23  ;;  %v1444_v8 = vmax.f32 %v1136_v49, %v1380_v35  ;;  %v1449_v34 = vmax.f32 %v1319_v11, %v1385_v62  ;;  %v5091_v35 = vld [vmem:[#allocation16_spill] sm:$0xff] }
 0x208   : > { %1961 = vmatpush.bf16.msrb.mxu1 %v1518_v33  ;;  %v1311_v0 = vadd.f32 %v4305_v39, %v1222_v63  ;;  %v1024_v21 = vadd.f32 %v4208_v25, %v740_v60  ;;  %v1118_v14 = vadd.f32 %v4234_v45, %v1029_v42  ;;  %v1368_v39 = vmul.f32 0.2, %v4250_v5  ;;  %v5090_v33 = vld [vmem:[#allocation15_spill] sm:$0xff] }
 0x209   : > { %v1391_v56 = vmul.f32 0.2, %v1326_v47  ;;  %v1514_v22 = vpack.c.bf16 %v1446_v9, %v1444_v8  ;;  %v1212_v59 = vadd.f32 %v4265_v48, %v4180_v53  ;;  %v1306_v49 = vadd.f32 %v4287_v46, %v1217_v54  ;;  %v5089_v46 = vld [vmem:[#allocation12_spill] sm:$0xff]  ;;  %v5092_v63 = vld [vmem:[#allocation7_spill] sm:$0xff] }
 0x20a   : > { %v1379_v58 = vmul.f32 0.2, %v1311_v0  ;;  %v1517_v25 = vpack.c.bf16 %v1451_v38, %v1449_v34  ;;  %v1447_v20 = vmax.f32 %v1316_v30, %v1383_v24  ;;  %v1370_v45 = vmul.f32 0.2, %v4363_v50  ;;  %v5093_v30 = vld [vmem:[#allocation9_spill] sm:$0xff] }
 0x20b   : > { %v1455_v6 = vmax.f32 %v1326_v47, %v1391_v56  ;;  %v1436_v42 = vmax.f32 %v4270_v43, %v1372_v57  ;;  %v1512_v18 = vpack.c.bf16 %v1442_v32, %v1440_v12  ;;  %v1438_v53 = vmax.f32 %v4355_v17, %v1374_v3  ;;  %v5094_v56 = vld [vmem:[#allocation13_spill] sm:$0xff]  ;;  %v5096_v57 = vld [vmem:[#allocation10_spill] sm:$0xff]  ;;  %v5097_v12 = vld [vmem:[#allocation11_spill] sm:$0xff] }
 0x20c   : > { %1962 = vmatpush.bf16.msrb.mxu1 %v1516_v52  ;;  %v1377_v48 = vmul.f32 0.2, %v4293_v29  ;;  %v1445_v10 = vmax.f32 %v1314_v40, %v1381_v31  ;;  %v1113_v4 = vadd.f32 %v4213_v41, %v1024_v21  ;;  %v1364_v1 = vmul.f32 0.2, %v4223_v27  ;;  %v3160_v32 = vld [vmem:[%s5053_s4 + $0x80] sm:$0xf] }
 0x20d   : > { %v1519_v26 = vpack.c.bf16 %v1455_v6, %v1453_v7  ;;  %v1207_v15 = vadd.f32 %v5089_v46, %v4343_v37  ;;  %v1301_v36 = vadd.f32 %v5090_v33, %v1212_v59  ;;  %v1375_v19 = vmul.f32 0.2, %v1306_v49  ;;  %v5095_v6 = vld [vmem:[#allocation14_spill] sm:$0xff]  ;;  %v3264_v33 = vld [vmem:[%s5053_s4 + $0x24] sm:$0xf] }
 0x20e   : > { %2088 = vmatmul.bf16.gmra.mxu2 %v3145_v44  ;;  %v3275_v44 = vld [vmem:[%s5053_s4 + $0x74] sm:$0xf0]  ;;  %v1515_v43 = vpack.c.bf16 %v1447_v20, %v1445_v10  ;;  %v1443_v11 = vmax.f32 %v1311_v0, %v1379_v58  ;;  %v1366_v55 = vmul.f32 0.2, %v1118_v14  ;;  %v1432_v47 = vmax.f32 %v4250_v5, %v1368_v39  ;;  %v3098_v39 = vld [vmem:[%s5053_s4 + $0x8] sm:$0xf0] }
 0x20f   : > { %2139 = vmatpush.bf16.msrb.mxu3 %v1519_v26  ;;  %v3153_v13 = vor.u32 %v3275_v44, %v3152_v16  ;;  %v1510_v28 = vpack.c.bf16 %v1438_v53, %v1436_v42  ;;  %v1434_v17 = vmax.f32 %v4363_v50, %v1370_v45  ;;  %v1373_v23 = vmul.f32 0.2, %v5091_v35  ;;  %v5098_v16 = vld [vmem:[#allocation8_spill] sm:$0xff]  ;;  %v3262_v10 = vld [vmem:[%s5053_s4 + $0x14] sm:$0xf] }
 0x210   : > { %1963 = vmatpush.bf16.msrb.mxu1 %v1514_v22  ;;  %v1441_v41 = vmax.f32 %v4293_v29, %v1377_v48  ;;  %v1360_v37 = vmul.f32 0.2, %v5092_v63  ;;  %v1202_v61 = vadd.f32 %v5093_v30, %v740_v60  ;;  %v1296_v2 = vadd.f32 %v5094_v56, %v1207_v15  ;;  %v3277_v60 = vld [vmem:[%s5053_s4 + $0x84] sm:$0xf0]  ;;  %v3168_v53 = vld [vmem:[%s5053_s4 + $0x90] sm:$0xf] }
 0x211   : > { %v1371_v51 = vmul.f32 0.2, %v1301_v36  ;;  %v1439_v9 = vmax.f32 %v1306_v49, %v1375_v19  ;;  %v1362_v5 = vmul.f32 0.2, %v1113_v4  ;;  %v1428_v40 = vmax.f32 %v4223_v27, %v1364_v1  ;;  %v3279_v48 = vld [vmem:[%s5053_s4 + $0x94] sm:$0xf0]  ;;  %v4445_v19 = vpop.permute.xlu2 %1554 }
 0x212   : > { %v1513_v52 = vpack.c.bf16 %v1443_v11, %v1441_v41  ;;  %v1508_v62 = vpack.c.bf16 %v1434_v17, %v1432_v47  ;;  %v1430_v7 = vmax.f32 %v1118_v14, %v1366_v55  ;;  %v1369_v50 = vmul.f32 0.2, %v5095_v6  ;;  %v3260_v14 = vld [vmem:[%s5053_s4 + $0x4] sm:$0xf]  ;;  %v3176_v46 = vld [vmem:[%s5053_s4 + $0xa0] sm:$0xf]  ;;  %v4447_v55 = vpop.permute.xlu0 %1559 }
 0x213   : > { %2140 = vmatpush.bf16.msrb.mxu3 %v1517_v25  ;;  %v1437_v29 = vmax.f32 %v5091_v35, %v1373_v23  ;;  %v1291_v54 = vadd.f32 %v5096_v57, %v1202_v61  ;;  %v1367_v8 = vmul.f32 0.2, %v1296_v2  ;;  %v1435_v24 = vmax.f32 %v1301_v36, %v1371_v51  ;;  %v3281_v15 = vld [vmem:[%s5053_s4 + $0xa4] sm:$0xf0]  ;;  %v3114_v36 = vld [vmem:[%s5053_s4 + $0x28] sm:$0xf0] }
 0x214   : > { %1964 = vmatpush.bf16.msrb.mxu1 %v1512_v18  ;;  %v1424_v26 = vmax.f32 %v5092_v63, %v1360_v37  ;;  %v1506_v38 = vpack.c.bf16 %v1430_v7, %v1428_v40  ;;  %v1426_v3 = vmax.f32 %v1113_v4, %v1362_v5  ;;  %v1365_v27 = vmul.f32 0.2, %v5097_v12  ;;  %v3184_v17 = vld [vmem:[%s5053_s4 + $0xb0] sm:$0xf]  ;;  %v3283_v35 = vld [vmem:[%s5053_s4 + $0xb4] sm:$0xf0] }
 0x215   : > { %v1511_v0 = vpack.c.bf16 %v1439_v9, %v1437_v29  ;;  %v1433_v22 = vmax.f32 %v5095_v6, %v1369_v50  ;;  %v1363_v31 = vmul.f32 0.2, %v1291_v54  ;;  %v1431_v21 = vmax.f32 %v1296_v2, %v1367_v8  ;;  %v3266_v41 = vld [vmem:[%s5053_s4 + $0x34] sm:$0xf]  ;;  %v3122_v63 = vld [vmem:[%s5053_s4 + $0x38] sm:$0xf0] }
 0x216   : > { %v1504_v59 = vpack.c.bf16 %v1426_v3, %v1424_v26  ;;  %v1361_v44 = vmul.f32 0.2, %v5098_v16  ;;  %v1429_v49 = vmax.f32 %v5097_v12, %v1365_v27  ;;  %v3161_v58 = vor.u32 %v3277_v60, %v3160_v32  ;;  %v3192_v40 = vld [vmem:[%s5053_s4 + $0xc0] sm:$0xf]  ;;  %v3268_v6 = vld [vmem:[%s5053_s4 + $0x44] sm:$0xf] }
 0x217   : > { %2141 = vmatpush.bf16.msrb.mxu3 %v1515_v43  ;;  %1915 = vmatmul.bf16.gmra.mxu0 %v3153_v13  ;;  %v1509_v34 = vpack.c.bf16 %v1435_v24, %v1433_v22  ;;  %v3101_v25 = vor.u32 %v3260_v14, %v3098_v39  ;;  %v1427_v45 = vmax.f32 %v1291_v54, %v1363_v31  ;;  %v3130_v50 = vld [vmem:[%s5053_s4 + $0x48] sm:$0xf0]  ;;  %v3200_v12 = vld [vmem:[%s5053_s4 + $0xd0] sm:$0xf]  ;;  %v3287_v27 = vld [vmem:[%s5053_s4 + $0xd4] sm:$0xf0] }
 0x218   : > { %1965 = vmatpush.bf16.msrb.mxu1 %v1510_v28  ;;  %v1507_v20 = vpack.c.bf16 %v1431_v21, %v1429_v49  ;;  %v1425_v42 = vmax.f32 %v5098_v16, %v1361_v44  ;;  %v3169_v4 = vor.u32 %v3279_v48, %v3168_v53  ;;  %v3177_v43 = vor.u32 %v3281_v15, %v3176_v46  ;;  %v4451_v28 = vpop.permute.xlu1 %1564  ;;  %v3270_v22 = vld [vmem:[%s5053_s4 + $0x54] sm:$0xf]  ;;  %v3138_v32 = vld [vmem:[%s5053_s4 + $0x58] sm:$0xf0]  ;;  %v3216_v15 = vld [vmem:[%s5053_s4 + $0xf0] sm:$0xf] }
 0x219   : > { %v3117_v11 = vor.u32 %v3264_v33, %v3114_v36  ;;  %v4449_v47 = vpop.permute.xlu2 %1569  ;;  %v3185_v37 = vor.u32 %v3283_v35, %v3184_v17  ;;  %v3125_v30 = vor.u32 %v3266_v41, %v3122_v63  ;;  %v3133_v54 = vor.u32 %v3268_v6, %v3130_v50  ;;  %v3291_v33 = vld [vmem:[%s5053_s4 + $0xf4] sm:$0xf0] }
 0x21a   : > { %v1505_v18 = vpack.c.bf16 %v1427_v45, %v1425_v42  ;;  %v4467_v61 = vpop.permute.xlu0 %1574  ;;  %v3201_v31 = vor.u32 %v3287_v27, %v3200_v12  ;;  %v3141_v21 = vor.u32 %v3270_v22, %v3138_v32  ;;  %v3272_v45 = vld [vmem:[%s5053_s4 + $0x64] sm:$0xf]  ;;  %v3146_v42 = vld [vmem:[%s5053_s4 + $0x68] sm:$0xf0]  ;;  %v3217_v41 = vor.u32 %v3291_v33, %v3216_v15 }
 0x21b   : > { %2142 = vmatpush.bf16.msrb.mxu3 %v1513_v52  ;;  %v3149_v48 = vor.u32 %v3272_v45, %v3146_v42  ;;  %v2356_v45 = vld [vmem:[%s4611_s20] sm:$0xff] }
 0x21c   : > { %1966 = vmatpush.bf16.msrb.mxu1 %v1508_v62  ;;  %v3285_v62 = vld [vmem:[%s5053_s4 + $0xc4] sm:$0xf0]  ;;  %v2388_v15 = vunpack.c.l.bf16 %v2356_v45 }
 0x21d   : > { %v3193_v57 = vor.u32 %v3285_v62, %v3192_v40 }
 0x21e   : > { %2093 = vmatmul.bf16.gmra.mxu2 %v3153_v13  ;;  %v3106_v13 = vld [vmem:[%s5053_s4 + $0x18] sm:$0xf0] }
 0x21f   : > { %2143 = vmatpush.bf16.msrb.mxu3 %v1511_v0  ;;  %v3109_v1 = vor.u32 %v3262_v10, %v3106_v13 }
 0x220   : > { %1967 = vmatpush.bf16.msrb.mxu1 %v1506_v38  ;;  %v4471_v2 = vpop.permute.xlu1 %1579 }
 0x221   : > { %v4469_v56 = vpop.permute.xlu2 %1584 }
 0x222   : > { %v4477_v9 = vpop.permute.xlu0 %1589 }
 0x223   : > { %2144 = vmatpush.bf16.msrb.mxu3 %v1509_v34 }
 0x224   : > { %1968 = vmatpush.bf16.msrb.mxu1 %v1504_v59  ;;  %v4459_v23 = vpop.f32.mrf.mxu0 }
 0x225   : > { %v1882_v12 = vadd.f32 %v4459_v23, %v4445_v19 }
 0x227   : > { %2145 = vmatpush.bf16.msrb.mxu3 %v1507_v20  ;;  %1920 = vmatmul.bf16.gmra.mxu0 %v3161_v58  ;;  %v3289_v20 = vld [vmem:[%s5053_s4 + $0xe4] sm:$0xf0] }
 0x228   : > { %1969 = vmatmul.bf16.vlgmr.msrb.gmra.mxu1 %v3101_v25  ;;  %v4487_v7 = vpop.permute.xlu1 %1594 }
 0x229   : > { %v4479_v5 = vpop.permute.xlu2 %1599 }
 0x22a   : > { %v4499_v0 = vpop.permute.xlu0 %1604 }
 0x22b   : > { %2146 = vmatpush.bf16.msrb.mxu3 %v1505_v18 }
 0x22c   : > { %v4475_v52 = vpop.f32.mrf.mxu0 }
 0x22d   : > { %v1884_v23 = vadd.f32 %v4475_v52, %v4447_v55  ;;  %v3278_v52 = vld [vmem:[%s5053_s4 + $0x94] sm:$0xf] }
 0x22e   : > { %2098 = vmatmul.bf16.gmra.mxu2 %v3161_v58  ;;  %2147 = vmatmul.bf16.vlgmr.msrb.gmra.mxu3 %v3101_v25  ;;  %v3208_v25 = vld [vmem:[%s5053_s4 + $0xe0] sm:$0xf] }
 0x22f   : > { %v3209_v53 = vor.u32 %v3289_v20, %v3208_v25  ;;  %v2357_v20 = vld [vmem:[%s4611_s20 + $0x8] sm:$0xff] }
 0x230   : > { %v4503_v26 = vpop.permute.xlu1 %1609 }
 0x231   : > { %v4473_v51 = vpop.f32.mrf.mxu2  ;;  %v4501_v24 = vpop.permute.xlu2 %1614 }
 0x232   : > { %v4521_v60 = vpop.permute.xlu0 %1619 }
 0x234   : > { %v4497_v8 = vpop.f32.mrf.mxu0 }
 0x237   : > { %1925 = vmatmul.bf16.gmra.mxu0 %v3169_v4 }
 0x238   : > { %1974 = vmatmul.bf16.gmra.mxu1 %v3109_v1  ;;  %v4525_v14 = vpop.permute.xlu1 %1624 }
 0x239   : > { %v4495_v29 = vpop.f32.mrf.mxu2  ;;  %v4523_v34 = vpop.permute.xlu2 %1629 }
 0x23a   : > { %v4531_v16 = vpop.permute.xlu0 %1634 }
 0x23c   : > { %v4507_v3 = vpop.f32.mrf.mxu0 }
 0x23e   : > { %2103 = vmatmul.bf16.gmra.mxu2 %v3169_v4  ;;  %2152 = vmatmul.bf16.gmra.mxu3 %v3109_v1 }
 0x240   : > { %v4535_v49 = vpop.permute.xlu1 %1639 }
 0x241   : > { %v4505_v38 = vpop.f32.mrf.mxu2  ;;  %v4533_v44 = vpop.permute.xlu2 %1644 }
 0x242   : > { %v4553_v10 = vpop.permute.xlu0 %1649 }
 0x244   : > { %v4529_v59 = vpop.f32.mrf.mxu0 }
 0x247   : > { %1930 = vmatmul.bf16.gmra.mxu0 %v3177_v43 }
 0x248   : > { %1979 = vmatmul.bf16.gmra.mxu1 %v3117_v11  ;;  %v4557_v4 = vpop.permute.xlu1 %1654 }
 0x249   : > { %v4527_v39 = vpop.f32.mrf.mxu2  ;;  %v4555_v13 = vpop.permute.xlu2 %1659 }
 0x24a   : > { %v4569_v36 = vpop.permute.xlu0 %1664 }
 0x24c   : > { %v4551_v18 = vpop.f32.mrf.mxu0 }
 0x24e   : > { %2108 = vmatmul.bf16.gmra.mxu2 %v3177_v43  ;;  %2157 = vmatmul.bf16.gmra.mxu3 %v3117_v11  ;;  %v3274_v43 = vld [vmem:[%s5053_s4 + $0x74] sm:$0xf]  ;;  %v3154_v11 = vld [vmem:[%s5053_s4 + $0x78] sm:$0xf0] }
 0x250   : > { %v4579_v35 = vpop.permute.xlu1 %1669 }
 0x251   : > { %v4537_v58 = vpop.f32.mrf.mxu2  ;;  %v4577_v17 = vpop.permute.xlu2 %1674  ;;  %5100 = vst [vmem:[#allocation15_spill] sm:$0xff] %v4579_v35 }
 0x252   : > { %5099 = vst [vmem:[#allocation12_spill] sm:$0xff] %v4577_v17  ;;  %v4585_v40 = vpop.permute.xlu0 %1679 }
 0x253   : > { %5101 = vst [vmem:[#allocation16_spill] sm:$0xff] %v4585_v40 }
 0x254   : > { %v4561_v46 = vpop.f32.mrf.mxu0 }
 0x257   : > { %1935 = vmatmul.bf16.gmra.mxu0 %v3185_v37 }
 0x258   : > { %1984 = vmatmul.bf16.gmra.mxu1 %v3125_v30  ;;  %v4589_v6 = vpop.permute.xlu1 %1684 }
 0x259   : > { %v4559_v1 = vpop.f32.mrf.mxu2  ;;  %v4587_v62 = vpop.permute.xlu2 %1689  ;;  %5103 = vst [vmem:[#allocation9_spill] sm:$0xff] %v4589_v6 }
 0x25a   : > { %5102 = vst [vmem:[#allocation7_spill] sm:$0xff] %v4587_v62  ;;  %v4604_v22 = vpop.permute.xlu0 %1694 }
 0x25b   : > { %5104 = vst [vmem:[#allocation13_spill] sm:$0xff] %v4604_v22 }
 0x25e   : > { %2113 = vmatmul.bf16.gmra.mxu2 %v3185_v37  ;;  %2162 = vmatmul.bf16.gmra.mxu3 %v3125_v30  ;;  %v3157_v37 = vor.u32 %v3274_v43, %v3154_v11  ;;  %v4583_v30 = vpop.f32.mrf.mxu0 }
 0x260   : > { %v4609_v25 = vpop.permute.xlu1 %1699 }
 0x261   : > { %v4581_v63 = vpop.f32.mrf.mxu2  ;;  %5106 = vst [vmem:[#allocation10_spill] sm:$0xff] %v4609_v25  ;;  %v2358_v25 = vld [vmem:[%s4611_s20 + $0x10] sm:$0xff] }
 0x262   : > { %v4617_v43 = vpop.permute.xlu0 %1709  ;;  %v2392_v62 = vunpack.c.l.bf16 %v2358_v25 }
 0x263   : > { %5107 = vst [vmem:[#allocation11_spill] sm:$0xff] %v4617_v43 }
 0x267   : > { %1940 = vmatmul.bf16.gmra.mxu0 %v3193_v57 }
 0x268   : > { %1989 = vmatmul.bf16.gmra.mxu1 %v3133_v54 }
 0x269   : > { %v4591_v50 = vpop.f32.mrf.mxu2 }
 0x26e   : > { %2118 = vmatmul.bf16.gmra.mxu2 %v3193_v57  ;;  %2167 = vmatmul.bf16.gmra.mxu3 %v3133_v54  ;;  %v3276_v57 = vld [vmem:[%s5053_s4 + $0x84] sm:$0xf]  ;;  %v3162_v54 = vld [vmem:[%s5053_s4 + $0x88] sm:$0xf0] }
 0x26f   : > { %v3165_v27 = vor.u32 %v3276_v57, %v3162_v54  ;;  %v2487_v54 = vpop.permute.xlu1 %2486 }
 0x277   : > { %1945 = vmatmul.bf16.gmra.mxu0 %v3201_v31 }
 0x278   : > { %1994 = vmatmul.bf16.gmra.mxu1 %v3141_v21 }
 0x27e   : > { %2123 = vmatmul.bf16.gmra.mxu2 %v3201_v31  ;;  %2172 = vmatmul.bf16.gmra.mxu3 %v3141_v21  ;;  %v4607_v31 = vpop.permute.xlu2 %1704 }
 0x27f   : > { %5105 = vst [vmem:[#allocation14_spill] sm:$0xff] %v4607_v31 }
 0x286   : > { %v2492_v11 = vpop.permute.xlu2 %2491 }
 0x287   : > { %1950 = vmatmul.bf16.gmra.mxu0 %v3209_v53 }
 0x288   : > { %1999 = vmatmul.bf16.gmra.mxu1 %v3149_v48 }
 0x28e   : > { %2128 = vmatmul.bf16.gmra.mxu2 %v3209_v53  ;;  %2177 = vmatmul.bf16.gmra.mxu3 %v3149_v48  ;;  %v2390_v48 = vunpack.c.l.bf16 %v2357_v20 }
 0x297   : > { %1955 = vmatmul.bf16.gmra.mxu0 %v3217_v41 }
 0x298   : > { %2004 = vmatmul.bf16.gmra.mxu1 %v3157_v37 }
 0x29e   : > { %2133 = vmatmul.bf16.gmra.mxu2 %v3217_v41  ;;  %2182 = vmatmul.bf16.gmra.mxu3 %v3157_v37  ;;  %v2060_v41 = vadd.f32 %v4473_v51, %v4445_v19  ;;  %v1887_v19 = vadd.f32 %v4497_v8, %v4451_v28 }
 0x2a5   : > { %v1970_v32 = vpop.f32.mrf.mxu1 }
 0x2a6   : > { %v1971_v21 = vadd.f32 %v1970_v32, %v1882_v12  ;;  %v3170_v32 = vld [vmem:[%s5053_s4 + $0x98] sm:$0xf0] }
 0x2a8   : > { %2009 = vmatmul.bf16.gmra.mxu1 %v3165_v27  ;;  %v2228_v42 = vmul.f32 0.2, %v1971_v21 }
 0x2aa   : > { %v2292_v37 = vmax.f32 %v1971_v21, %v2228_v42  ;;  %v3173_v42 = vor.u32 %v3278_v52, %v3170_v32  ;;  %v1889_v52 = vadd.f32 %v4507_v3, %v4449_v47 }
 0x2ad   : > { %v1972_v53 = vpop.f32.mrf.mxu1 }
 0x2ae   : > { %v1973_v33 = vadd.f32 %v1972_v53, %v1884_v23  ;;  %2187 = vmatmul.bf16.gmra.mxu3 %v3165_v27  ;;  %v2646_v23 = vadd.f32 %v2492_v11, %v2390_v48  ;;  %v2644_v27 = vadd.f32 %v2487_v54, %v2388_v15  ;;  %v4627_v53 = vpop.f32.mrf.mxu0  ;;  %v2062_v48 = vadd.f32 %v4495_v29, %v4447_v55 }
 0x2b0   : > { %v2230_v57 = vmul.f32 0.2, %v1973_v33  ;;  %v2708_v51 = vmul.f32 %v2644_v27, %v2292_v37 }
 0x2b1   : > { %v2148_v12 = vpop.f32.mrf.mxu3 }
 0x2b2   : > { %v2294_v43 = vmax.f32 %v1973_v33, %v2230_v57  ;;  %v2149_v31 = vadd.f32 %v2148_v12, %v2060_v41  ;;  %v2391_v33 = vunpack.c.h.bf16 %v2357_v20  ;;  %v2389_v41 = vunpack.c.h.bf16 %v2356_v45  ;;  %v2497_v57 = vpop.permute.xlu0 %2496 }
 0x2b3   : > { %v2648_v35 = vadd.f32 %v2497_v57, %v2392_v62 }
 0x2b4   : > { %v2710_v21 = vmul.f32 %v2646_v23, %v2294_v43  ;;  %v2229_v15 = vmul.f32 0.2, %v2149_v31  ;;  %v2359_v43 = vld [vmem:[%s4611_s20 + $0x18] sm:$0xff]  ;;  %v2647_v55 = vadd.f32 %v2492_v11, %v2391_v33  ;;  %v2645_v29 = vadd.f32 %v2487_v54, %v2389_v41  ;;  %v3280_v11 = vld [vmem:[%s5053_s4 + $0xa4] sm:$0xf] }
 0x2b5   : > { %v1975_v22 = vpop.f32.mrf.mxu1  ;;  %v2394_v20 = vunpack.c.l.bf16 %v2359_v43  ;;  %v2360_v54 = vld [vmem:[%s4611_s20 + $0x20] sm:$0xff] }
 0x2b6   : > { %v2772_v6 = vadd.f32 %v2710_v21, %v2708_v51  ;;  %v1976_v40 = vadd.f32 %v1975_v22, %v1887_v19  ;;  %v4637_v32 = vpop.f32.mrf.mxu0  ;;  %v2293_v22 = vmax.f32 %v2149_v31, %v2229_v15  ;;  %v2393_v31 = vunpack.c.h.bf16 %v2358_v25 }
 0x2b8   : > { %v2232_v17 = vmul.f32 0.2, %v1976_v40  ;;  %2014 = vmatmul.bf16.gmra.mxu1 %v3173_v42  ;;  %v2709_v3 = vmul.f32 %v2645_v29, %v2293_v22  ;;  %v2649_v22 = vadd.f32 %v2497_v57, %v2393_v31 }
 0x2b9   : > { %v2150_v12 = vpop.f32.mrf.mxu3 }
 0x2ba   : > { %v2296_v8 = vmax.f32 %v1976_v40, %v2232_v17  ;;  %v2151_v37 = vadd.f32 %v2150_v12, %v2062_v48  ;;  %v4639_v17 = vpop.f32.mrf.mxu2  ;;  %v2065_v40 = vadd.f32 %v4505_v38, %v4451_v28  ;;  %v1892_v28 = vadd.f32 %v4529_v59, %v4467_v61 }
 0x2bb   : > { %v2395_v59 = vunpack.c.h.bf16 %v2359_v43 }
 0x2bc   : > { %v2712_v23 = vmul.f32 %v2648_v35, %v2296_v8  ;;  %v2231_v27 = vmul.f32 0.2, %v2151_v37  ;;  %v2502_v35 = vpop.permute.xlu1 %2501 }
 0x2bd   : > { %v1977_v19 = vpop.f32.mrf.mxu1 }
 0x2be   : > { %v2773_v45 = vadd.f32 %v2772_v6, %v2712_v23  ;;  %v2295_v51 = vmax.f32 %v2151_v37, %v2231_v27  ;;  %v1978_v21 = vadd.f32 %v1977_v19, %v1889_v52  ;;  %2192 = vmatmul.bf16.gmra.mxu3 %v3173_v42  ;;  %v3178_v6 = vld [vmem:[%s5053_s4 + $0xa8] sm:$0xf0]  ;;  %v2650_v42 = vadd.f32 %v2502_v35, %v2394_v20  ;;  %v4652_v23 = vpop.f32.mrf.mxu0  ;;  %v2507_v19 = vpop.permute.xlu2 %2506 }
 0x2bf   : > { %v3181_v8 = vor.u32 %v3280_v11, %v3178_v6  ;;  %v2396_v37 = vunpack.c.l.bf16 %v2360_v54  ;;  %v2067_v20 = vadd.f32 %v4527_v39, %v4449_v47 }
 0x2c0   : > { %v2711_v62 = vmul.f32 %v2647_v55, %v2295_v51  ;;  %v2234_v48 = vmul.f32 0.2, %v1978_v21 }
 0x2c1   : > { %v2153_v15 = vpop.f32.mrf.mxu3 }
 0x2c2   : > { %v2809_v33 = vadd.f32 %v2711_v62, %v2709_v3  ;;  %v2298_v41 = vmax.f32 %v1978_v21, %v2234_v48  ;;  %v2154_v12 = vadd.f32 %v2153_v15, %v2065_v40  ;;  %v4656_v40 = vpop.f32.mrf.mxu2  ;;  %v2652_v62 = vadd.f32 %v2507_v19, %v2396_v37  ;;  %v2361_v15 = vld [vmem:[%s4611_s20 + $0x28] sm:$0xff] }
 0x2c3   : > { %v2398_v47 = vunpack.c.l.bf16 %v2361_v15  ;;  %v2397_v37 = vunpack.c.h.bf16 %v2360_v54  ;;  %v1897_v54 = vadd.f32 %v4561_v46, %v4469_v56  ;;  %v2363_v46 = vld [vmem:[%s4611_s20 + $0x38] sm:$0xff] }
 0x2c4   : > { %v2714_v38 = vmul.f32 %v2650_v42, %v2298_v41  ;;  %v2233_v25 = vmul.f32 0.2, %v2154_v12  ;;  %v2651_v42 = vadd.f32 %v2502_v35, %v2395_v59  ;;  %v3282_v35 = vld [vmem:[%s5053_s4 + $0xb4] sm:$0xf] }
 0x2c5   : > { %v1980_v52 = vpop.f32.mrf.mxu1  ;;  %v2653_v59 = vadd.f32 %v2507_v19, %v2397_v37 }
 0x2c6   : > { %v2774_v27 = vadd.f32 %v2773_v45, %v2714_v38  ;;  %v2297_v55 = vmax.f32 %v2154_v12, %v2233_v25  ;;  %v1981_v29 = vadd.f32 %v1980_v52, %v1892_v28  ;;  %v1894_v45 = vadd.f32 %v4551_v18, %v4471_v2  ;;  %v2512_v52 = vpop.permute.xlu0 %2511 }
 0x2c7   : > { %v2070_v28 = vadd.f32 %v4537_v58, %v4467_v61  ;;  %v2362_v61 = vld [vmem:[%s4611_s20 + $0x30] sm:$0xff] }
 0x2c8   : > { %v2713_v51 = vmul.f32 %v2649_v22, %v2297_v55  ;;  %v2236_v21 = vmul.f32 0.2, %v1981_v29  ;;  %2019 = vmatmul.bf16.gmra.mxu1 %v3181_v8  ;;  %v3186_v22 = vld [vmem:[%s5053_s4 + $0xb8] sm:$0xf0] }
 0x2c9   : > { %v2155_v3 = vpop.f32.mrf.mxu3 }
 0x2ca   : > { %v2810_v48 = vadd.f32 %v2809_v33, %v2713_v51  ;;  %v2300_v57 = vmax.f32 %v1981_v29, %v2236_v21  ;;  %v2156_v31 = vadd.f32 %v2155_v3, %v2067_v20  ;;  %v4663_v33 = vpop.f32.mrf.mxu0  ;;  %v4672_v58 = vpop.f32.mrf.mxu2  ;;  %v3189_v21 = vor.u32 %v3282_v35, %v3186_v22 }
 0x2cc   : > { %v2716_v11 = vmul.f32 %v2652_v62, %v2300_v57  ;;  %v2235_v6 = vmul.f32 0.2, %v2156_v31  ;;  %v2400_v62 = vunpack.c.l.bf16 %v2362_v61 }
 0x2cd   : > { %v1982_v41 = vpop.f32.mrf.mxu1 }
 0x2ce   : > { %v2775_v39 = vadd.f32 %v2774_v27, %v2716_v11  ;;  %v2299_v12 = vmax.f32 %v2156_v31, %v2235_v6  ;;  %v1983_v43 = vadd.f32 %v1982_v41, %v1894_v45  ;;  %2197 = vmatmul.bf16.gmra.mxu3 %v3181_v8  ;;  %v2654_v27 = vadd.f32 %v2512_v52, %v2398_v47  ;;  %v2517_v41 = vpop.permute.xlu1 %2516 }
 0x2d0   : > { %v2715_v38 = vmul.f32 %v2651_v42, %v2299_v12  ;;  %v2238_v25 = vmul.f32 0.2, %v1983_v43  ;;  %v2399_v42 = vunpack.c.h.bf16 %v2361_v15  ;;  %v2656_v12 = vadd.f32 %v2517_v41, %v2400_v62 }
 0x2d1   : > { %v2158_v18 = vpop.f32.mrf.mxu3 }
 0x2d2   : > { %v2811_v8 = vadd.f32 %v2810_v48, %v2715_v38  ;;  %v2302_v55 = vmax.f32 %v1983_v43, %v2238_v25  ;;  %v2159_v29 = vadd.f32 %v2158_v18, %v2070_v28  ;;  %v2072_v48 = vadd.f32 %v4559_v1, %v4471_v2  ;;  %v4679_v43 = vpop.f32.mrf.mxu0  ;;  %v4683_v2 = vpop.f32.mrf.mxu2 }
 0x2d3   : > { %v2402_v18 = vunpack.c.l.bf16 %v2363_v46  ;;  %v2655_v35 = vadd.f32 %v2512_v52, %v2399_v42  ;;  %v3194_v52 = vld [vmem:[%s5053_s4 + $0xc8] sm:$0xf0] }
 0x2d4   : > { %v2718_v20 = vmul.f32 %v2654_v27, %v2302_v55  ;;  %v2237_v51 = vmul.f32 0.2, %v2159_v29 }
 0x2d5   : > { %v1985_v3 = vpop.f32.mrf.mxu1 }
 0x2d6   : > { %v2776_v57 = vadd.f32 %v2775_v39, %v2718_v20  ;;  %v2301_v31 = vmax.f32 %v2159_v29, %v2237_v51  ;;  %v1986_v45 = vadd.f32 %v1985_v3, %v1897_v54  ;;  %v1899_v39 = vadd.f32 %v4583_v30, %v4477_v9  ;;  %v2522_v54 = vpop.permute.xlu2 %2521  ;;  %v3284_v51 = vld [vmem:[%s5053_s4 + $0xc4] sm:$0xf] }
 0x2d7   : > { %v2401_v20 = vunpack.c.h.bf16 %v2362_v61 }
 0x2d8   : > { %v2717_v11 = vmul.f32 %v2653_v59, %v2301_v31  ;;  %v2240_v6 = vmul.f32 0.2, %v1986_v45  ;;  %2024 = vmatmul.bf16.gmra.mxu1 %v3189_v21  ;;  %v2658_v59 = vadd.f32 %v2522_v54, %v2402_v18 }
 0x2d9   : > { %v2160_v47 = vpop.f32.mrf.mxu3 }
 0x2da   : > { %v2812_v28 = vadd.f32 %v2811_v8, %v2717_v11  ;;  %v2304_v19 = vmax.f32 %v1986_v45, %v2240_v6  ;;  %v2161_v38 = vadd.f32 %v2160_v47, %v2072_v48  ;;  %v2075_v8 = vadd.f32 %v4581_v63, %v4469_v56  ;;  %v4696_v63 = vpop.f32.mrf.mxu0 }
 0x2db   : > { %v1902_v56 = vadd.f32 %v4627_v53, %v4487_v7  ;;  %v3197_v45 = vor.u32 %v3284_v51, %v3194_v52  ;;  %v2657_v48 = vadd.f32 %v2517_v41, %v2401_v20  ;;  %v2403_v53 = vunpack.c.h.bf16 %v2363_v46  ;;  %v2532_v51 = vpop.permute.xlu1 %2531 }
 0x2dc   : > { %v2720_v25 = vmul.f32 %v2656_v12, %v2304_v19  ;;  %v2239_v37 = vmul.f32 0.2, %v2161_v38  ;;  %v4698_v19 = vpop.f32.mrf.mxu2  ;;  %v2080_v52 = vadd.f32 %v4639_v17, %v4487_v7  ;;  %v1907_v7 = vadd.f32 %v4652_v23, %v4499_v0 }
 0x2dd   : > { %v1987_v1 = vpop.f32.mrf.mxu1 }
 0x2de   : > { %v2777_v15 = vadd.f32 %v2776_v57, %v2720_v25  ;;  %v2303_v22 = vmax.f32 %v2161_v38, %v2239_v37  ;;  %v1988_v27 = vadd.f32 %v1987_v1, %v1899_v39  ;;  %2202 = vmatmul.bf16.gmra.mxu3 %v3189_v21  ;;  %v2364_v57 = vld [vmem:[%s4611_s20 + $0x40] sm:$0xff]  ;;  %v2527_v25 = vpop.permute.xlu0 %2526 }
 0x2df   : > { %v2404_v6 = vunpack.c.l.bf16 %v2364_v57 }
 0x2e0   : > { %v2719_v55 = vmul.f32 %v2655_v35, %v2303_v22  ;;  %v2242_v29 = vmul.f32 0.2, %v1988_v27  ;;  %v2365_v22 = vld [vmem:[%s4611_s20 + $0x48] sm:$0xff] }
 0x2e1   : > { %v2163_v30 = vpop.f32.mrf.mxu3  ;;  %v2660_v18 = vadd.f32 %v2527_v25, %v2404_v6  ;;  %v2407_v23 = vunpack.c.h.bf16 %v2365_v22 }
 0x2e2   : > { %v2813_v3 = vadd.f32 %v2812_v28, %v2719_v55  ;;  %v2306_v62 = vmax.f32 %v1988_v27, %v2242_v29  ;;  %v2164_v21 = vadd.f32 %v2163_v30, %v2075_v8  ;;  %v2077_v28 = vadd.f32 %v4591_v50, %v4477_v9  ;;  %v4705_v50 = vpop.f32.mrf.mxu0 }
 0x2e3   : > { %v2659_v55 = vadd.f32 %v2522_v54, %v2403_v53  ;;  %v2406_v9 = vunpack.c.l.bf16 %v2365_v22  ;;  %v3286_v54 = vld [vmem:[%s5053_s4 + $0xd4] sm:$0xf]  ;;  %v2082_v53 = vadd.f32 %v4656_v40, %v4479_v5  ;;  %v2663_v40 = vadd.f32 %v2532_v51, %v2407_v23 }
 0x2e4   : > { %v2722_v61 = vmul.f32 %v2658_v59, %v2306_v62  ;;  %v2241_v31 = vmul.f32 0.2, %v2164_v21  ;;  %v2405_v62 = vunpack.c.h.bf16 %v2364_v57 }
 0x2e5   : > { %v1990_v11 = vpop.f32.mrf.mxu1 }
 0x2e6   : > { %v2778_v42 = vadd.f32 %v2777_v15, %v2722_v61  ;;  %v2305_v47 = vmax.f32 %v2164_v21, %v2241_v31  ;;  %v1991_v12 = vadd.f32 %v1990_v11, %v1902_v56  ;;  %v1904_v15 = vadd.f32 %v4637_v32, %v4479_v5  ;;  %v4709_v32 = vpop.f32.mrf.mxu2  ;;  %v3202_v56 = vld [vmem:[%s5053_s4 + $0xd8] sm:$0xf0]  ;;  %v2366_v61 = vld [vmem:[%s4611_s20 + $0x50] sm:$0xff] }
 0x2e7   : > { %v2662_v31 = vadd.f32 %v2532_v51, %v2406_v9  ;;  %v3205_v6 = vor.u32 %v3286_v54, %v3202_v56  ;;  %v1909_v9 = vadd.f32 %v4663_v33, %v4503_v26  ;;  %v2409_v54 = vunpack.c.h.bf16 %v2366_v61  ;;  %v2542_v56 = vpop.permute.xlu0 %2541  ;;  %v3288_v33 = vld [vmem:[%s5053_s4 + $0xe4] sm:$0xf]  ;;  %v3210_v51 = vld [vmem:[%s5053_s4 + $0xe8] sm:$0xf0] }
 0x2e8   : > { %v2721_v38 = vmul.f32 %v2657_v48, %v2305_v47  ;;  %v2244_v39 = vmul.f32 0.2, %v1991_v12  ;;  %2029 = vmatmul.bf16.gmra.mxu1 %v3197_v45 }
 0x2e9   : > { %v2165_v37 = vpop.f32.mrf.mxu3 }
 0x2ea   : > { %v2814_v1 = vadd.f32 %v2813_v3, %v2721_v38  ;;  %v2308_v41 = vmax.f32 %v1991_v12, %v2244_v39  ;;  %v2166_v35 = vadd.f32 %v2165_v37, %v2077_v28  ;;  %v2661_v12 = vadd.f32 %v2527_v25, %v2405_v62  ;;  %v4722_v37 = vpop.f32.mrf.mxu0  ;;  %v2367_v25 = vld [vmem:[%s4611_s20 + $0x58] sm:$0xff] }
 0x2ec   : > { %v2724_v27 = vmul.f32 %v2660_v18, %v2308_v41  ;;  %v2243_v8 = vmul.f32 0.2, %v2166_v35  ;;  %v2537_v41 = vpop.permute.xlu2 %2536 }
 0x2ed   : > { %v1992_v29 = vpop.f32.mrf.mxu1 }
 0x2ee   : > { %v2779_v20 = vadd.f32 %v2778_v42, %v2724_v27  ;;  %v2307_v46 = vmax.f32 %v2166_v35, %v2243_v8  ;;  %v1993_v30 = vadd.f32 %v1992_v29, %v1904_v15  ;;  %2207 = vmatmul.bf16.gmra.mxu3 %v3197_v45  ;;  %v2408_v42 = vunpack.c.l.bf16 %v2366_v61  ;;  %v4725_v29 = vpop.f32.mrf.mxu2 }
 0x2f0   : > { %v2723_v59 = vmul.f32 %v2659_v55, %v2307_v46  ;;  %v2246_v3 = vmul.f32 0.2, %v1993_v30  ;;  %v2664_v15 = vadd.f32 %v2537_v41, %v2408_v42  ;;  %v2665_v42 = vadd.f32 %v2537_v41, %v2409_v54 }
 0x2f1   : > { %v2168_v21 = vpop.f32.mrf.mxu3 }
 0x2f2   : > { %v2815_v45 = vadd.f32 %v2814_v1, %v2723_v59  ;;  %v2310_v48 = vmax.f32 %v1993_v30, %v2246_v3  ;;  %v2169_v11 = vadd.f32 %v2168_v21, %v2080_v52  ;;  %v2410_v30 = vunpack.c.l.bf16 %v2367_v25 }
 0x2f3   : > { %v2085_v3 = vadd.f32 %v4672_v58, %v4499_v0  ;;  %v2368_v0 = vld [vmem:[%s4611_s20 + $0x60] sm:$0xff]  ;;  %v1912_v58 = vadd.f32 %v4679_v43, %v4501_v24  ;;  %v2547_v43 = vpop.permute.xlu1 %2546 }
 0x2f4   : > { %v2726_v17 = vmul.f32 %v2662_v31, %v2310_v48  ;;  %v2245_v57 = vmul.f32 0.2, %v2169_v11  ;;  %v4737_v48 = vpop.f32.mrf.mxu0  ;;  %v2413_v54 = vunpack.c.h.bf16 %v2368_v0 }
 0x2f5   : > { %v1995_v47 = vpop.f32.mrf.mxu1 }
 0x2f6   : > { %v2780_v28 = vadd.f32 %v2779_v20, %v2726_v17  ;;  %v2309_v38 = vmax.f32 %v2169_v11, %v2245_v57  ;;  %v1996_v39 = vadd.f32 %v1995_v47, %v1907_v7  ;;  %v4742_v47 = vpop.f32.mrf.mxu2 }
 0x2f8   : > { %v2725_v18 = vmul.f32 %v2661_v12, %v2309_v38  ;;  %v2248_v1 = vmul.f32 0.2, %v1996_v39  ;;  %2034 = vmatmul.bf16.gmra.mxu1 %v3205_v6 }
 0x2f9   : > { %v2170_v35 = vpop.f32.mrf.mxu3 }
 0x2fa   : > { %v2816_v27 = vadd.f32 %v2815_v45, %v2725_v18  ;;  %v2312_v8 = vmax.f32 %v1996_v39, %v2248_v1  ;;  %v2171_v55 = vadd.f32 %v2170_v35, %v2082_v53  ;;  %v2666_v45 = vadd.f32 %v2542_v56, %v2410_v30 }
 0x2fb   : > { %v2087_v18 = vadd.f32 %v4683_v2, %v4503_v26  ;;  %v2411_v35 = vunpack.c.h.bf16 %v2367_v25 }
 0x2fc   : > { %v2728_v20 = vmul.f32 %v2664_v15, %v2312_v8  ;;  %v2247_v5 = vmul.f32 0.2, %v2171_v55 }
 0x2fd   : > { %v1997_v46 = vpop.f32.mrf.mxu1  ;;  %v2667_v2 = vadd.f32 %v2542_v56, %v2411_v35  ;;  %v3218_v56 = vld [vmem:[%s5053_s4 + $0xf8] sm:$0xf0] }
 0x2fe   : > { %v2781_v52 = vadd.f32 %v2780_v28, %v2728_v20  ;;  %v2311_v59 = vmax.f32 %v2171_v55, %v2247_v5  ;;  %v1998_v22 = vadd.f32 %v1997_v46, %v1909_v9  ;;  %2212 = vmatmul.bf16.gmra.mxu3 %v3205_v6  ;;  %v3213_v6 = vor.u32 %v3288_v33, %v3210_v51  ;;  %v4749_v5 = vpop.f32.mrf.mxu0  ;;  %v3290_v33 = vld [vmem:[%s5053_s4 + $0xf4] sm:$0xf] }
 0x2ff   : > { %v2412_v28 = vunpack.c.l.bf16 %v2368_v0  ;;  %v1914_v20 = vadd.f32 %v4696_v63, %v4521_v60  ;;  %v2552_v63 = vpop.permute.xlu2 %2551  ;;  %v3221_v0 = vor.u32 %v3290_v33, %v3218_v56 }
 0x300   : > { %v2727_v62 = vmul.f32 %v2663_v40, %v2311_v59  ;;  %v2250_v21 = vmul.f32 0.2, %v1998_v22 }
 0x301   : > { %v2173_v31 = vpop.f32.mrf.mxu3  ;;  %v2668_v8 = vadd.f32 %v2547_v43, %v2412_v28 }
 0x302   : > { %v2817_v11 = vadd.f32 %v2816_v27, %v2727_v62  ;;  %v2314_v7 = vmax.f32 %v1998_v22, %v2250_v21  ;;  %v2174_v17 = vadd.f32 %v2173_v31, %v2085_v3  ;;  %v2369_v27 = vld [vmem:[%s4611_s20 + $0x68] sm:$0xff]  ;;  %v4751_v22 = vpop.f32.mrf.mxu2  ;;  %v2090_v3 = vadd.f32 %v4698_v19, %v4501_v24 }
 0x303   : > { %v2414_v30 = vunpack.c.l.bf16 %v2369_v27  ;;  %v1917_v24 = vadd.f32 %v4705_v50, %v4525_v14  ;;  %v2415_v50 = vunpack.c.h.bf16 %v2369_v27 }
 0x304   : > { %v2730_v61 = vmul.f32 %v2666_v45, %v2314_v7  ;;  %v2249_v57 = vmul.f32 0.2, %v2174_v17 }
 0x305   : > { %v2000_v12 = vpop.f32.mrf.mxu1  ;;  %v2670_v51 = vadd.f32 %v2552_v63, %v2414_v30 }
 0x306   : > { %v2782_v38 = vadd.f32 %v2781_v52, %v2730_v61  ;;  %v2313_v39 = vmax.f32 %v2174_v17, %v2249_v57  ;;  %v2001_v53 = vadd.f32 %v2000_v12, %v1912_v58  ;;  %v2370_v17 = vld [vmem:[%s4611_s20 + $0x70] sm:$0xff]  ;;  %v2669_v61 = vadd.f32 %v2547_v43, %v2413_v54 }
 0x308   : > { %v2729_v1 = vmul.f32 %v2665_v42, %v2313_v39  ;;  %v2252_v23 = vmul.f32 0.2, %v2001_v53  ;;  %2039 = vmatmul.bf16.gmra.mxu1 %v3213_v6  ;;  %v4764_v42 = vpop.f32.mrf.mxu0  ;;  %v2557_v39 = vpop.permute.xlu0 %2556 }
 0x309   : > { %v2175_v15 = vpop.f32.mrf.mxu3 }
 0x30a   : > { %v2818_v55 = vadd.f32 %v2817_v11, %v2729_v1  ;;  %v2316_v41 = vmax.f32 %v2001_v53, %v2252_v23  ;;  %v2176_v9 = vadd.f32 %v2175_v15, %v2087_v18  ;;  %v2092_v53 = vadd.f32 %v4709_v32, %v4521_v60  ;;  %v4768_v23 = vpop.f32.mrf.mxu2 }
 0x30c   : > { %v2732_v40 = vmul.f32 %v2668_v8, %v2316_v41  ;;  %v2251_v46 = vmul.f32 0.2, %v2176_v9  ;;  %v2371_v41 = vld [vmem:[%s4611_s20 + $0x78] sm:$0xff] }
 0x30d   : > { %v2002_v26 = vpop.f32.mrf.mxu1  ;;  %v2418_v32 = vunpack.c.l.bf16 %v2371_v41 }
 0x30e   : > { %v2783_v52 = vadd.f32 %v2782_v38, %v2732_v40  ;;  %v2315_v59 = vmax.f32 %v2176_v9, %v2251_v46  ;;  %v2003_v25 = vadd.f32 %v2002_v26, %v1914_v20  ;;  %2217 = vmatmul.bf16.gmra.mxu3 %v3213_v6  ;;  %v2416_v6 = vunpack.c.l.bf16 %v2370_v17 }
 0x30f   : > { %v1919_v9 = vadd.f32 %v4722_v37, %v4523_v34  ;;  %v2671_v46 = vadd.f32 %v2552_v63, %v2415_v50 }
 0x310   : > { %v2731_v62 = vmul.f32 %v2667_v2, %v2315_v59  ;;  %v2254_v21 = vmul.f32 0.2, %v2003_v25  ;;  %v2672_v43 = vadd.f32 %v2557_v39, %v2416_v6  ;;  %v2095_v2 = vadd.f32 %v4725_v29, %v4525_v14 }
 0x311   : > { %v2178_v31 = vpop.f32.mrf.mxu3  ;;  %v2419_v6 = vunpack.c.h.bf16 %v2371_v41 }
 0x312   : > { %v2819_v45 = vadd.f32 %v2818_v55, %v2731_v62  ;;  %v2318_v11 = vmax.f32 %v2003_v25, %v2254_v21  ;;  %v2179_v7 = vadd.f32 %v2178_v31, %v2090_v3  ;;  %v2417_v3 = vunpack.c.h.bf16 %v2370_v17  ;;  %v2562_v62 = vpop.permute.xlu1 %2561  ;;  %v2372_v21 = vld [vmem:[%s4611_s20 + $0x80] sm:$0xff]  ;;  %v4778_v56 = vpop.f32.mrf.mxu2 }
 0x313   : > { %v2674_v54 = vadd.f32 %v2562_v62, %v2418_v32  ;;  %v2420_v14 = vunpack.c.l.bf16 %v2372_v21 }
 0x314   : > { %v2734_v19 = vmul.f32 %v2670_v51, %v2318_v11  ;;  %v2253_v58 = vmul.f32 0.2, %v2179_v7  ;;  %v1922_v51 = vadd.f32 %v4737_v48, %v4531_v16 }
 0x315   : > { %v2005_v57 = vpop.f32.mrf.mxu1 }
 0x316   : > { %v2784_v12 = vadd.f32 %v2783_v52, %v2734_v19  ;;  %v2317_v28 = vmax.f32 %v2179_v7, %v2253_v58  ;;  %v2006_v38 = vadd.f32 %v2005_v57, %v1917_v24  ;;  %v4775_v52 = vpop.f32.mrf.mxu0  ;;  %v2673_v7 = vadd.f32 %v2557_v39, %v2417_v3  ;;  %v2567_v57 = vpop.permute.xlu2 %2566 }
 0x317   : > { %v2097_v58 = vadd.f32 %v4742_v47, %v4523_v34  ;;  %v1924_v39 = vadd.f32 %v4749_v5, %v4535_v49 }
 0x318   : > { %v2733_v18 = vmul.f32 %v2669_v61, %v2317_v28  ;;  %v2256_v1 = vmul.f32 0.2, %v2006_v38  ;;  %2044 = vmatmul.bf16.gmra.mxu1 %v3221_v0  ;;  %v2676_v28 = vadd.f32 %v2567_v57, %v2420_v14 }
 0x319   : > { %v2180_v35 = vpop.f32.mrf.mxu3 }
 0x31a   : > { %v2820_v15 = vadd.f32 %v2819_v45, %v2733_v18  ;;  %v2320_v8 = vmax.f32 %v2006_v38, %v2256_v1  ;;  %v2181_v55 = vadd.f32 %v2180_v35, %v2092_v53  ;;  %v2373_v1 = vld [vmem:[%s4611_s20 + $0x88] sm:$0xff]  ;;  %v2577_v14 = vpop.permute.xlu1 %2576 }
 0x31b   : > { %v2422_v47 = vunpack.c.l.bf16 %v2373_v1 }
 0x31c   : > { %v2736_v20 = vmul.f32 %v2672_v43, %v2320_v8  ;;  %v2255_v40 = vmul.f32 0.2, %v2181_v55  ;;  %v2675_v43 = vadd.f32 %v2562_v62, %v2419_v6 }
 0x31d   : > { %v2007_v60 = vpop.f32.mrf.mxu1 }
 0x31e   : > { %v2785_v30 = vadd.f32 %v2784_v12, %v2736_v20  ;;  %v2319_v26 = vmax.f32 %v2181_v55, %v2255_v40  ;;  %v2008_v27 = vadd.f32 %v2007_v60, %v1919_v9  ;;  %2222 = vmatmul.bf16.gmra.mxu3 %v3221_v0  ;;  %v4784_v38 = vpop.f32.mrf.mxu0  ;;  %v2100_v9 = vadd.f32 %v4751_v22, %v4531_v16  ;;  %v2572_v60 = vpop.permute.xlu0 %2571 }
 0x31f   : > { %v2678_v5 = vadd.f32 %v2572_v60, %v2422_v47 }
 0x320   : > { %v2735_v59 = vmul.f32 %v2671_v46, %v2319_v26  ;;  %v2258_v25 = vmul.f32 0.2, %v2008_v27  ;;  %v2421_v46 = vunpack.c.h.bf16 %v2372_v21 }
 0x321   : > { %v2183_v37 = vpop.f32.mrf.mxu3 }
 0x322   : > { %v2821_v31 = vadd.f32 %v2820_v15, %v2735_v59  ;;  %v2322_v63 = vmax.f32 %v2008_v27, %v2258_v25  ;;  %v2184_v33 = vadd.f32 %v2183_v37, %v2095_v2  ;;  %v4789_v15 = vpop.f32.mrf.mxu2  ;;  %v2374_v2 = vld [vmem:[%s4611_s20 + $0x90] sm:$0xff]  ;;  %v1927_v59 = vadd.f32 %v4764_v42, %v4533_v44 }
 0x323   : > { %v2677_v37 = vadd.f32 %v2567_v57, %v2421_v46  ;;  %v2424_v22 = vunpack.c.l.bf16 %v2374_v2 }
 0x324   : > { %v2738_v45 = vmul.f32 %v2674_v54, %v2322_v63  ;;  %v2257_v11 = vmul.f32 0.2, %v2184_v33 }
 0x325   : > { %v2010_v29 = vpop.f32.mrf.mxu1 }
 0x326   : > { %v2786_v24 = vadd.f32 %v2785_v30, %v2738_v45  ;;  %v2321_v17 = vmax.f32 %v2184_v33, %v2257_v11  ;;  %v2011_v19 = vadd.f32 %v2010_v29, %v1922_v51  ;;  %v4796_v25 = vpop.f32.mrf.mxu0  ;;  %v2102_v33 = vadd.f32 %v4768_v23, %v4535_v49  ;;  %v2375_v29 = vld [vmem:[%s4611_s20 + $0x98] sm:$0xff] }
 0x327   : > { %v2423_v11 = vunpack.c.h.bf16 %v2373_v1  ;;  %v2426_v57 = vunpack.c.l.bf16 %v2375_v29 }
 0x328   : > { %v2737_v0 = vmul.f32 %v2673_v7, %v2321_v17  ;;  %v2260_v61 = vmul.f32 0.2, %v2011_v19  ;;  %v2680_v7 = vadd.f32 %v2577_v14, %v2424_v22 }
 0x329   : > { %v2185_v12 = vpop.f32.mrf.mxu3 }
 0x32a   : > { %v2822_v48 = vadd.f32 %v2821_v31, %v2737_v0  ;;  %v2324_v53 = vmax.f32 %v2011_v19, %v2260_v61  ;;  %v2186_v18 = vadd.f32 %v2185_v12, %v2097_v58  ;;  %v2109_v63 = vpop.f32.mrf.mxu2  ;;  %v1929_v58 = vadd.f32 %v4775_v52, %v4553_v10 }
 0x32b   : > { %v2679_v12 = vadd.f32 %v2572_v60, %v2423_v11 }
 0x32c   : > { %v2740_v50 = vmul.f32 %v2676_v28, %v2324_v53  ;;  %v2259_v35 = vmul.f32 0.2, %v2186_v18  ;;  %v2582_v53 = vpop.permute.xlu2 %2581 }
 0x32d   : > { %v2012_v34 = vpop.f32.mrf.mxu1 }
 0x32e   : > { %v2787_v8 = vadd.f32 %v2786_v24, %v2740_v50  ;;  %v2323_v55 = vmax.f32 %v2186_v18, %v2259_v35  ;;  %v2013_v41 = vadd.f32 %v2012_v34, %v1924_v39  ;;  %v4803_v49 = vpop.f32.mrf.mxu0  ;;  %v2105_v18 = vadd.f32 %v4778_v56, %v4533_v44 }
 0x32f   : > { %v2425_v50 = vunpack.c.h.bf16 %v2374_v2  ;;  %v2427_v2 = vunpack.c.h.bf16 %v2375_v29 }
 0x330   : > { %v2739_v20 = vmul.f32 %v2675_v43, %v2323_v55  ;;  %v2262_v40 = vmul.f32 0.2, %v2013_v41  ;;  %v2682_v43 = vadd.f32 %v2582_v53, %v2426_v57  ;;  %v2376_v55 = vld [vmem:[%s4611_s20 + $0xa0] sm:$0xff] }
 0x331   : > { %v2188_v32 = vpop.f32.mrf.mxu3  ;;  %v2428_v60 = vunpack.c.l.bf16 %v2376_v55 }
 0x332   : > { %v2823_v30 = vadd.f32 %v2822_v48, %v2739_v20  ;;  %v2326_v26 = vmax.f32 %v2013_v41, %v2262_v40  ;;  %v2189_v27 = vadd.f32 %v2188_v32, %v2100_v9  ;;  %v4807_v35 = vpop.f32.mrf.mxu2  ;;  %v1932_v41 = vadd.f32 %v4784_v38, %v4557_v4 }
 0x333   : > { %v2681_v40 = vadd.f32 %v2577_v14, %v2425_v50  ;;  %v2429_v14 = vunpack.c.h.bf16 %v2376_v55 }
 0x334   : > { %v2742_v3 = vmul.f32 %v2678_v5, %v2326_v26  ;;  %v2261_v62 = vmul.f32 0.2, %v2189_v27  ;;  %v2107_v5 = vadd.f32 %v4789_v15, %v4553_v10  ;;  %v2110_v15 = vadd.f32 %v2109_v63, %v4557_v4  ;;  %v2597_v55 = vpop.permute.xlu2 %2596 }
 0x335   : > { %v2015_v16 = vpop.f32.mrf.mxu1 }
 0x336   : > { %v2788_v54 = vadd.f32 %v2787_v8, %v2742_v3  ;;  %v2325_v21 = vmax.f32 %v2189_v27, %v2261_v62  ;;  %v2016_v31 = vadd.f32 %v2015_v16, %v1927_v59  ;;  %v2587_v59 = vpop.permute.xlu0 %2586 }
 0x337   : > { %v2684_v62 = vadd.f32 %v2587_v59, %v2428_v60  ;;  %v2379_v60 = vld [vmem:[%s4611_s20 + $0xb8] sm:$0xff] }
 0x338   : > { %v2741_v51 = vmul.f32 %v2677_v37, %v2325_v21  ;;  %v2264_v45 = vmul.f32 0.2, %v2016_v31 }
 0x339   : > { %v2190_v42 = vpop.f32.mrf.mxu3 }
 0x33a   : > { %v2824_v24 = vadd.f32 %v2823_v30, %v2741_v51  ;;  %v2328_v17 = vmax.f32 %v2016_v31, %v2264_v45  ;;  %v2191_v19 = vadd.f32 %v2190_v42, %v2102_v33  ;;  %v4814_v30 = vpop.f32.mrf.mxu0  ;;  %v4816_v22 = vpop.f32.mrf.mxu2  ;;  %v2683_v33 = vadd.f32 %v2582_v53, %v2427_v2 }
 0x33c   : > { %v2744_v0 = vmul.f32 %v2680_v7, %v2328_v17  ;;  %v2263_v61 = vmul.f32 0.2, %v2191_v19 }
 0x33d   : > { %v2017_v6 = vpop.f32.mrf.mxu1 }
 0x33e   : > { %v2789_v23 = vadd.f32 %v2788_v54, %v2744_v0  ;;  %v2327_v28 = vmax.f32 %v2191_v19, %v2263_v61  ;;  %v2018_v48 = vadd.f32 %v2017_v6, %v1929_v58  ;;  %v2685_v58 = vadd.f32 %v2587_v59, %v2429_v14  ;;  %v2380_v59 = vld [vmem:[%s4611_s20 + $0xc0] sm:$0xff] }
 0x340   : > { %v2743_v1 = vmul.f32 %v2679_v12, %v2327_v28  ;;  %v2266_v39 = vmul.f32 0.2, %v2018_v48 }
 0x341   : > { %v2193_v52 = vpop.f32.mrf.mxu3 }
 0x342   : > { %v2825_v34 = vadd.f32 %v2824_v24, %v2743_v1  ;;  %v2330_v47 = vmax.f32 %v2018_v48, %v2266_v39  ;;  %v2194_v8 = vadd.f32 %v2193_v52, %v2105_v18  ;;  %v4821_v42 = vpop.f32.mrf.mxu0  ;;  %v4823_v17 = vpop.f32.mrf.mxu2 }
 0x343   : > { %v2592_v1 = vpop.permute.xlu1 %2591 }
 0x344   : > { %v2746_v9 = vmul.f32 %v2682_v43, %v2330_v47  ;;  %v2265_v20 = vmul.f32 0.2, %v2194_v8 }
 0x345   : > { %v2020_v46 = vpop.f32.mrf.mxu1 }
 0x346   : > { %v2790_v44 = vadd.f32 %v2789_v23, %v2746_v9  ;;  %v2329_v56 = vmax.f32 %v2194_v8, %v2265_v20  ;;  %v2021_v32 = vadd.f32 %v2020_v46, %v1932_v41  ;;  %v2378_v9 = vld [vmem:[%s4611_s20 + $0xb0] sm:$0xff] }
 0x347   : > { %v2432_v46 = vunpack.c.l.bf16 %v2378_v9 }
 0x348   : > { %v2745_v26 = vmul.f32 %v2681_v40, %v2329_v56  ;;  %v2268_v27 = vmul.f32 0.2, %v2021_v32  ;;  %v2377_v40 = vld [vmem:[%s4611_s20 + $0xa8] sm:$0xff] }
 0x349   : > { %v2195_v3 = vpop.f32.mrf.mxu3  ;;  %v2431_v2 = vunpack.c.h.bf16 %v2377_v40 }
 0x34a   : > { %v2826_v38 = vadd.f32 %v2825_v34, %v2745_v26  ;;  %v2332_v37 = vmax.f32 %v2021_v32, %v2268_v27  ;;  %v2196_v16 = vadd.f32 %v2195_v3, %v2107_v5  ;;  %v4829_v12 = vpop.f32.mrf.mxu0  ;;  %v4831_v63 = vpop.f32.mrf.mxu2  ;;  %v2433_v5 = vunpack.c.h.bf16 %v2378_v9 }
 0x34b   : > { %v2602_v34 = vpop.permute.xlu0 %2601  ;;  %v2607_v47 = vpop.permute.xlu1 %2606  ;;  %v2430_v27 = vunpack.c.l.bf16 %v2377_v40 }
 0x34c   : > { %v2748_v54 = vmul.f32 %v2684_v62, %v2332_v37  ;;  %v2267_v21 = vmul.f32 0.2, %v2196_v16  ;;  %v1934_v62 = vadd.f32 %v4796_v25, %v4555_v13  ;;  %v2435_v37 = vunpack.c.h.bf16 %v2379_v60 }
 0x34d   : > { %v2022_v31 = vpop.f32.mrf.mxu1  ;;  %v2437_v25 = vunpack.c.h.bf16 %v2380_v59 }
 0x34e   : > { %v4818_v51 = vadd.f32 %v2790_v44, %v2748_v54  ;;  %v2331_v10 = vmax.f32 %v2196_v16, %v2267_v21  ;;  %v2381_v44 = vld [vmem:[%s4611_s20 + $0xc8] sm:$0xff]  ;;  %v2612_v16 = vpop.permute.xlu2 %2611  ;;  %v4870_v21 = vadd.f32 %v2597_v55, %v2432_v46  ;;  %v4893_v46 = vld [vmem:[%s4611_s20 + $0xe0] sm:$0xff] }
 0x34f   : > { %v2438_v54 = vunpack.c.l.bf16 %v2381_v44  ;;  %v2439_v14 = vunpack.c.h.bf16 %v2381_v44  ;;  %5113 = vst [vmem:[#allocation19_spill] sm:$0xff] %v4893_v46 }
 0x350   : > { %v2747_v45 = vmul.f32 %v2683_v33, %v2331_v10  ;;  %v2382_v33 = vld [vmem:[%s4611_s20 + $0xd0] sm:$0xff]  ;;  %v1937_v10 = vadd.f32 %v4803_v49, %v4569_v36 }
 0x351   : > { %v2198_v11 = vpop.f32.mrf.mxu3  ;;  %v4890_v40 = vadd.f32 %v2612_v16, %v2438_v54  ;;  %v2444_v54 = vunpack.c.l.bf16 %v4893_v46 }
 0x352   : > { %v2827_v29 = vadd.f32 %v2826_v38, %v2747_v45  ;;  %v2199_v7 = vadd.f32 %v2198_v11, %v2110_v15  ;;  %v4837_v48 = vpop.f32.mrf.mxu0  ;;  %v4839_v53 = vpop.f32.mrf.mxu2  ;;  %v2434_v38 = vunpack.c.l.bf16 %v2379_v60  ;;  %v2023_v15 = vadd.f32 %v2022_v31, %v1934_v62  ;;  %v4896_v60 = vld [vmem:[%s4611_s20 + $0xe8] sm:$0xff] }
 0x353   : > { %v2617_v26 = vpop.permute.xlu0 %2616  ;;  %v4866_v3 = vpop.permute.xlu1 %2621  ;;  %v4877_v11 = vadd.f32 %v2597_v55, %v2433_v5  ;;  %v4888_v31 = vadd.f32 %v2602_v34, %v2435_v37  ;;  %v2440_v55 = vunpack.c.l.bf16 %v2382_v33  ;;  %5114 = vst [vmem:[#allocation20_spill] sm:$0xff] %v4896_v60  ;;  %v2441_v5 = vunpack.c.h.bf16 %v2382_v33 }
 0x354   : > { %v2269_v24 = vmul.f32 0.2, %v2199_v7  ;;  %v4886_v9 = vadd.f32 %v2602_v34, %v2434_v38  ;;  %v4906_v62 = vadd.f32 %v2607_v47, %v2437_v25  ;;  %v5118_v38 = vld [vmem:[#allocation12_spill] sm:$0xff] }
 0x355   : > { %v2025_v19 = vpop.f32.mrf.mxu1  ;;  %5109 = vst [vmem:[#allocation17_spill] sm:$0xff] %v4877_v11  ;;  %v1942_v37 = vadd.f32 %v4821_v42, %v5118_v38 }
 0x356   : > { %v2333_v0 = vmax.f32 %v2199_v7, %v2269_v24  ;;  %v4880_v7 = vld [vmem:[%s4611_s20 + $0xd8] sm:$0xff]  ;;  %v2686_v24 = vadd.f32 %v2592_v1, %v2430_v27  ;;  %v2026_v49 = vadd.f32 %v2025_v19, %v1937_v10  ;;  %v4900_v27 = vld [vmem:[%s4611_s20 + $0xf0] sm:$0xff]  ;;  %5117 = vst [vmem:[#allocation23_spill] sm:$0xff] %v4906_v62  ;;  %v2446_v10 = vunpack.c.l.bf16 %v4896_v60  ;;  %v4935_v62 = vpop.permute.xlu2 %2626 }
 0x357   : > { %5110 = vst [vmem:[#allocation18_spill] sm:$0xff] %v4880_v7 }
 0x358   : > { %v2749_v61 = vmul.f32 %v2685_v58, %v2333_v0  ;;  %v4882_v58 = vadd.f32 %v2592_v1, %v2431_v2  ;;  %v5111_v0 = vld [vmem:[#allocation15_spill] sm:$0xff]  ;;  %v2442_v1 = vunpack.c.l.bf16 %v4880_v7  ;;  %5115 = vst [vmem:[#allocation21_spill] sm:$0xff] %v4900_v27 }
 0x359   : > { %v4825_v57 = vpop.f32.mrf.mxu3  ;;  %5112 = vst [vmem:[#allocation15_spill] sm:$0xff] %v4888_v31  ;;  %v4914_v31 = vld [vmem:[%s4611_s20 + $0xf8] sm:$0xff]  ;;  %s2846_s20 = sld [smem:[#allocation2]] }
 0x35a   : > { %v4827_v6 = vadd.f32 %v2827_v29, %v2749_v61  ;;  %v4845_v50 = vpop.f32.mrf.mxu0  ;;  %v4849_v43 = vpop.f32.mrf.mxu2  ;;  %v2436_v29 = vunpack.c.l.bf16 %v2380_v59  ;;  %v1939_v61 = vadd.f32 %v4814_v30, %v5111_v0  ;;  %v2270_v30 = vmul.f32 0.2, %v2023_v15 }
 0x35b   : > { %v4902_v59 = vadd.f32 %v2612_v16, %v2439_v14  ;;  %v4918_v16 = vadd.f32 %v2617_v26, %v2440_v55  ;;  %v4920_v14 = vpop.permute.xlu0 %2631  ;;  %v4929_v33 = vadd.f32 %v4866_v3, %v2442_v1  ;;  %v4931_v60 = vpop.permute.xlu1 %2636 }
 0x35c   : > { %5108 = vst [vmem:[#allocation8_spill] sm:$0xff] %v4827_v6  ;;  %v4904_v34 = vadd.f32 %v2607_v47, %v2436_v29  ;;  %v2448_v47 = vunpack.c.l.bf16 %v4900_v27  ;;  %v5120_v29 = vld [vmem:[#allocation16_spill] sm:$0xff]  ;;  %v2334_v7 = vmax.f32 %v2023_v15, %v2270_v30  ;;  %v4946_v1 = vadd.f32 %v4920_v14, %v2446_v10  ;;  %v5122_v27 = vld [vmem:[#allocation7_spill] sm:$0xff] }
 0x35d   : > { %v2027_v4 = vpop.f32.mrf.mxu1  ;;  %5116 = vst [vmem:[#allocation22_spill] sm:$0xff] %v4902_v59  ;;  %v1944_v42 = vadd.f32 %v4829_v12, %v5120_v29  ;;  %v5121_v12 = vld [vmem:[#allocation9_spill] sm:$0xff]  ;;  %v2112_v15 = vadd.f32 %v4807_v35, %v4555_v13  ;;  %v1949_v11 = vadd.f32 %v4845_v50, %v5122_v27  ;;  %v2117_v13 = vadd.f32 %v4823_v17, %v5111_v0 }
 0x35e   : > { %v2028_v19 = vadd.f32 %v2027_v4, %v1939_v61  ;;  %v2272_v4 = vmul.f32 0.2, %v2026_v49  ;;  %5119 = vst [vmem:[#allocation12_spill] sm:$0xff] %v4920_v14  ;;  %v4926_v61 = vadd.f32 %v2617_v26, %v2441_v5  ;;  %v4943_v5 = vadd.f32 %v4935_v62, %v2444_v54  ;;  %v5123_v35 = vld [vmem:[#allocation13_spill] sm:$0xff] }
 0x35f   : > { %v2750_v54 = vmul.f32 %v2686_v24, %v2334_v7  ;;  %v2201_v10 = vadd.f32 %v4825_v57, %v2112_v15  ;;  %v5124_v7 = vld [vmem:[#allocation10_spill] sm:$0xff] }
 0x360   : > { %v2274_v59 = vmul.f32 0.2, %v2028_v19  ;;  %v2336_v30 = vmax.f32 %v2026_v49, %v2272_v4 }
 0x361   : > { %v4833_v23 = vpop.f32.mrf.mxu3 }
 0x362   : > { %v4856_v20 = vpop.f32.mrf.mxu0  ;;  %v4861_v56 = vpop.f32.mrf.mxu2 }
 0x363   : > { %v1952_v49 = vadd.f32 %v4856_v20, %v5123_v35 }
 0x365   : > { %v4835_v28 = vpop.f32.mrf.mxu1 }
 0x366   : > { %v2031_v25 = vadd.f32 %v4835_v28, %v1942_v37  ;;  %v1947_v28 = vadd.f32 %v4837_v48, %v5121_v12  ;;  %v4951_v37 = vadd.f32 %v4931_v60, %v2448_v47 }
 0x368   : > { %v2276_v46 = vmul.f32 0.2, %v2031_v25 }
 0x369   : > { %v4841_v18 = vpop.f32.mrf.mxu3 }
 0x36a   : > { %v1953_v44 = vpop.f32.mrf.mxu0  ;;  %v4916_v6 = vpop.f32.mrf.mxu2  ;;  %v2340_v17 = vmax.f32 %v2031_v25, %v2276_v46  ;;  %v2127_v46 = vadd.f32 %v4861_v56, %v5122_v27 }
 0x36b   : > { %v1954_v24 = vadd.f32 %v1953_v44, %v5124_v7 }
 0x36d   : > { %v4843_v39 = vpop.f32.mrf.mxu1 }
 0x36e   : > { %v2033_v26 = vadd.f32 %v4843_v39, %v1944_v42  ;;  %v2115_v39 = vadd.f32 %v4816_v22, %v4569_v36  ;;  %v2338_v42 = vmax.f32 %v2028_v19, %v2274_v59  ;;  %v2122_v36 = vadd.f32 %v4839_v53, %v5120_v29 }
 0x36f   : > { %v2752_v22 = vmul.f32 %v4870_v21, %v2336_v30  ;;  %v2792_v59 = vadd.f32 %v4818_v51, %v2750_v54  ;;  %v2125_v53 = vadd.f32 %v4849_v43, %v5121_v12  ;;  %v5125_v51 = vld [vmem:[#allocation14_spill] sm:$0xff] }
 0x370   : > { %v2278_v47 = vmul.f32 0.2, %v2033_v26  ;;  %v2204_v57 = vadd.f32 %v4833_v23, %v2115_v39 }
 0x371   : > { %v4847_v52 = vpop.f32.mrf.mxu3  ;;  %v2793_v44 = vadd.f32 %v2792_v59, %v2752_v22 }
 0x372   : > { %v1956_v4 = vpop.f32.mrf.mxu0  ;;  %v2131_v20 = vpop.f32.mrf.mxu2  ;;  %v2342_v21 = vmax.f32 %v2033_v26, %v2278_v47 }
 0x373   : > { %v1957_v25 = vadd.f32 %v1956_v4, %v5125_v51  ;;  %v2132_v22 = vadd.f32 %v2131_v20, %v5124_v7 }
 0x375   : > { %v4851_v8 = vpop.f32.mrf.mxu1 }
 0x376   : > { %v2036_v48 = vadd.f32 %v4851_v8, %v1947_v28  ;;  %v2120_v8 = vadd.f32 %v4831_v63, %v5118_v38  ;;  %v2271_v28 = vmul.f32 0.2, %v2201_v10  ;;  %v2206_v63 = vadd.f32 %v4841_v18, %v2117_v13 }
 0x378   : > { %v2280_v0 = vmul.f32 0.2, %v2036_v48  ;;  %v2209_v29 = vadd.f32 %v4847_v52, %v2120_v8  ;;  %v2335_v30 = vmax.f32 %v2201_v10, %v2271_v28  ;;  %v2275_v54 = vmul.f32 0.2, %v2206_v63 }
 0x379   : > { %v4853_v41 = vpop.f32.mrf.mxu3  ;;  %v2130_v52 = vadd.f32 %v4916_v6, %v5123_v35 }
 0x37a   : > { %v2344_v15 = vmax.f32 %v2036_v48, %v2280_v0  ;;  %v2211_v43 = vadd.f32 %v4853_v41, %v2122_v36  ;;  %v2277_v13 = vmul.f32 0.2, %v2209_v29  ;;  %v1958_v48 = vpop.f32.mrf.mxu0  ;;  %v2751_v41 = vmul.f32 %v4882_v58, %v2335_v30  ;;  %v5127_v0 = vld [vmem:[#allocation17_spill] sm:$0xff] }
 0x37b   : > { %v2339_v8 = vmax.f32 %v2206_v63, %v2275_v54 }
 0x37c   : > { %v2760_v10 = vmul.f32 %v4918_v16, %v2344_v15  ;;  %v5130_v15 = vld [vmem:[#allocation23_spill] sm:$0xff] }
 0x37d   : > { %v4863_v32 = vpop.f32.mrf.mxu1 }
 0x37e   : > { %v2038_v50 = vadd.f32 %v4863_v32, %v1949_v11  ;;  %v2754_v32 = vmul.f32 %v4886_v9, %v2338_v42  ;;  %v2756_v9 = vmul.f32 %v4904_v34, %v2340_v17  ;;  %v2134_v17 = vpop.f32.mrf.mxu2 }
 0x380   : > { %v2282_v38 = vmul.f32 0.2, %v2038_v50  ;;  %v2794_v39 = vadd.f32 %v2793_v44, %v2754_v32 }
 0x381   : > { %v4875_v45 = vpop.f32.mrf.mxu3 }
 0x382   : > { %v2346_v26 = vmax.f32 %v2038_v50, %v2282_v38  ;;  %v2214_v34 = vadd.f32 %v4875_v45, %v2125_v53  ;;  %v5126_v45 = vld [vmem:[#allocation11_spill] sm:$0xff] }
 0x384   : > { %v2762_v35 = vmul.f32 %v4929_v33, %v2346_v26  ;;  %v2281_v59 = vmul.f32 0.2, %v2214_v34  ;;  %v5132_v26 = vld [vmem:[#allocation22_spill] sm:$0xff] }
 0x385   : > { %v2040_v2 = vpop.f32.mrf.mxu1 }
 0x386   : > { %v2041_v19 = vadd.f32 %v2040_v2, %v1952_v49  ;;  %v2273_v2 = vmul.f32 0.2, %v2204_v57  ;;  %v2795_v49 = vadd.f32 %v2794_v39, %v2756_v9 }
 0x388   : > { %v2284_v18 = vmul.f32 0.2, %v2041_v19  ;;  %v2337_v42 = vmax.f32 %v2204_v57, %v2273_v2 }
 0x389   : > { %v4933_v55 = vpop.f32.mrf.mxu3 }
 0x38a   : > { %v2348_v4 = vmax.f32 %v2041_v19, %v2284_v18  ;;  %v2216_v50 = vadd.f32 %v4933_v55, %v2127_v46  ;;  %v2753_v16 = vmul.f32 %v5127_v0, %v2337_v42  ;;  %v2341_v19 = vmax.f32 %v2209_v29, %v2277_v13  ;;  %v5128_v55 = vld [vmem:[#allocation8_spill] sm:$0xff] }
 0x38b   : > { %v2829_v53 = vadd.f32 %v5128_v55, %v2751_v41  ;;  %v2135_v29 = vadd.f32 %v2134_v17, %v5125_v51 }
 0x38c   : > { %v2764_v58 = vmul.f32 %v4943_v5, %v2348_v4  ;;  %v2283_v38 = vmul.f32 0.2, %v2216_v50  ;;  %v2757_v5 = vmul.f32 %v5130_v15, %v2341_v19  ;;  %v5139_v19 = vld [vmem:[#allocation12_spill] sm:$0xff] }
 0x38d   : > { %v2042_v14 = vpop.f32.mrf.mxu1  ;;  %v2830_v9 = vadd.f32 %v2829_v53, %v2753_v16 }
 0x38e   : > { %v2043_v23 = vadd.f32 %v2042_v14, %v1954_v24  ;;  %v2758_v14 = vmul.f32 %v4890_v40, %v2342_v21  ;;  %v2279_v40 = vmul.f32 0.2, %v2211_v43  ;;  %v1959_v24 = vadd.f32 %v1958_v48, %v5126_v45  ;;  %v5129_v21 = vld [vmem:[#allocation15_spill] sm:$0xff]  ;;  %v5133_v48 = vld [vmem:[#allocation18_spill] sm:$0xff] }
 0x38f   : > { %v2755_v7 = vmul.f32 %v5129_v21, %v2339_v8 }
 0x390   : > { %v2286_v56 = vmul.f32 0.2, %v2043_v23  ;;  %v2796_v6 = vadd.f32 %v2795_v49, %v2758_v14  ;;  %v2343_v20 = vmax.f32 %v2211_v43, %v2279_v40  ;;  %v5131_v43 = vunpack.c.l.bf16 %v4914_v31 }
 0x391   : > { %v2218_v11 = vpop.f32.mrf.mxu3  ;;  %v2831_v14 = vadd.f32 %v2830_v9, %v2755_v7  ;;  %v5134_v49 = vunpack.c.h.bf16 %v5133_v48 }
 0x392   : > { %v2350_v57 = vmax.f32 %v2043_v23, %v2286_v56  ;;  %v2797_v28 = vadd.f32 %v2796_v6, %v2760_v10  ;;  %v2219_v32 = vadd.f32 %v2218_v11, %v2130_v52  ;;  %v2642_v23 = vpop.permute.xlu2 %2641  ;;  %v2345_v11 = vmax.f32 %v2214_v34, %v2281_v59  ;;  %v5135_v10 = vld [vmem:[#allocation20_spill] sm:$0xff] }
 0x393   : > { %v2759_v56 = vmul.f32 %v5132_v26, %v2343_v20  ;;  %v2699_v34 = vadd.f32 %v4866_v3, %v5134_v49  ;;  %v2447_v4 = vunpack.c.h.bf16 %v5135_v10 }
 0x394   : > { %v2798_v46 = vadd.f32 %v2797_v28, %v2762_v35  ;;  %v2766_v44 = vmul.f32 %v4946_v1, %v2350_v57  ;;  %v2285_v30 = vmul.f32 0.2, %v2219_v32  ;;  %v2347_v1 = vmax.f32 %v2216_v50, %v2283_v38  ;;  %v5138_v35 = vld [vmem:[#allocation21_spill] sm:$0xff] }
 0x395   : > { %v2045_v12 = vpop.f32.mrf.mxu1  ;;  %v2449_v57 = vunpack.c.h.bf16 %v5138_v35  ;;  %v2703_v59 = vadd.f32 %v5139_v19, %v2447_v4 }
 0x396   : > { %v2046_v27 = vadd.f32 %v2045_v12, %v1957_v25  ;;  %v2799_v18 = vadd.f32 %v2798_v46, %v2764_v58  ;;  %v2706_v12 = vadd.f32 %v2642_v23, %v5131_v43  ;;  %v2349_v41 = vmax.f32 %v2219_v32, %v2285_v30 }
 0x397   : > { %v2763_v0 = vmul.f32 %v2699_v34, %v2347_v1  ;;  %v2705_v55 = vadd.f32 %v4931_v60, %v2449_v57 }
 0x398   : > { %v2288_v47 = vmul.f32 0.2, %v2046_v27  ;;  %v2800_v52 = vadd.f32 %v2799_v18, %v2766_v44 }
 0x399   : > { %v2220_v36 = vpop.f32.mrf.mxu3 }
 0x39a   : > { %v2352_v63 = vmax.f32 %v2046_v27, %v2288_v47  ;;  %v2221_v2 = vadd.f32 %v2220_v36, %v2132_v22  ;;  %v2761_v47 = vmul.f32 %v4926_v61, %v2345_v11  ;;  %v5136_v22 = vld [vmem:[#allocation19_spill] sm:$0xff] }
 0x39b   : > { %v5137_v50 = vunpack.c.h.bf16 %v5136_v22 }
 0x39c   : > { %v2768_v39 = vmul.f32 %v4951_v37, %v2352_v63  ;;  %v2287_v42 = vmul.f32 0.2, %v2221_v2  ;;  %v2832_v37 = vadd.f32 %v2831_v14, %v2757_v5  ;;  %v2451_v63 = vunpack.c.h.bf16 %v4914_v31 }
 0x39d   : > { %v2047_v33 = vpop.f32.mrf.mxu1  ;;  %v2701_v6 = vadd.f32 %v4935_v62, %v5137_v50  ;;  %v2847_v14 = vstv %s2846_s20  ;;  %s3355_s20 = scalar_lea.hbm %s5057_s8, 8 }
 0x39e   : > { %v2048_v25 = vadd.f32 %v2047_v33, %v1959_v24  ;;  %v2801_v8 = vadd.f32 %v2800_v52, %v2768_v39  ;;  %v2136_v24 = vpop.f32.mrf.mxu2  ;;  %v2833_v17 = vadd.f32 %v2832_v37, %v2759_v56  ;;  %v2351_v16 = vmax.f32 %v2221_v2, %v2287_v42  ;;  %p3357_p4 = scmp.lt.s32.totalorder %s3355_s20, %s3351_s22 }
 0x39f   : > { %v2137_v28 = vadd.f32 %v2136_v24, %v5126_v45  ;;  %v2765_v58 = vmul.f32 %v2701_v6, %v2349_v41  ;;  %v2707_v44 = vadd.f32 %v2642_v23, %v2451_v63 }
 0x3a0   : > { %v2290_v54 = vmul.f32 0.2, %v2048_v25  ;;  %v2834_v61 = vadd.f32 %v2833_v17, %v2761_v47  ;;  %v2767_v21 = vmul.f32 %v2703_v59, %v2351_v16  ;;  %p3358_p5 = por %p3357_p4, %p3356_p3 }
 0x3a1   : > { %v2223_v27 = vpop.f32.mrf.mxu3 }
 0x3a2   : > { %v2354_v51 = vmax.f32 %v2048_v25, %v2290_v54  ;;  %v2224_v13 = vadd.f32 %v2223_v27, %v2135_v29  ;;  %v2835_v62 = vadd.f32 %v2834_v61, %v2763_v0  ;;  %p3359_p7 = pnand %p3358_p5, %p3354_p2 }
 0x3a4   : > { %v2770_v40 = vmul.f32 %v2706_v12, %v2354_v51  ;;  %v2289_v36 = vmul.f32 0.2, %v2224_v13  ;;  %v2836_v38 = vadd.f32 %v2835_v62, %v2765_v58  ;;  %v2856_v12 = vlaneseq }
 0x3a6   : > { %v2802_v3 = vadd.f32 %v2801_v8, %v2770_v40  ;;  %v2353_v32 = vmax.f32 %v2224_v13, %v2289_v36  ;;  %v2837_v2 = vadd.f32 %v2836_v38, %v2767_v21  ;;  %vm2858_vm1 = vcmp.lt.s32.totalorder %v2856_v12, 256 }
 0x3a8   : > { %v2803_v7 = vrot.slane %v2802_v3, 4  ;;  %v2769_v33 = vmul.f32 %v2705_v55, %v2353_v32 }
 0x3a9   : > { %v2225_v53 = vpop.f32.mrf.mxu3 }
 0x3aa   : > { %v2226_v20 = vadd.f32 %v2225_v53, %v2137_v28  ;;  %v2804_v45 = vadd.f32 %v2803_v7, %v2802_v3  ;;  %v2838_v29 = vadd.f32 %v2837_v2, %v2769_v33 }
 0x3ac   : > { %v2291_v46 = vmul.f32 0.2, %v2226_v20  ;;  %v2805_v15 = vrot.slane %v2804_v45, 2 }
 0x3ae   : > { %v2355_v25 = vmax.f32 %v2226_v20, %v2291_v46  ;;  %v2806_v60 = vadd.f32 %v2805_v15, %v2804_v45 }
 0x3b0   : > { %v2771_v9 = vmul.f32 %v2707_v44, %v2355_v25  ;;  %v2807_v30 = vrot.slane %v2806_v60, 1 }
 0x3b2   : > { %v2839_v31 = vadd.f32 %v2838_v29, %v2771_v9  ;;  %v2808_v43 = vadd.f32 %v2807_v30, %v2806_v60 }
 0x3b4   : > { %v2840_v5 = vrot.slane %v2839_v31, 4  ;;  %v2848_v56 = vadd.f32 %v2847_v14, %v2808_v43 }
 0x3b6   : > { %v2841_v11 = vadd.f32 %v2840_v5, %v2839_v31 }
 0x3b8   : > { %v2842_v18 = vrot.slane %v2841_v11, 2 }
 0x3ba   : > { %v2843_v39 = vadd.f32 %v2842_v18, %v2841_v11 }
 0x3bc   : > { %v2844_v54 = vrot.slane %v2843_v39, 1 }
 0x3be   : > { %v2845_v23 = vadd.f32 %v2844_v54, %v2843_v39 }
 0x3c0   : > { %v2849_v26 = vadd.f32 %v2847_v14, %v2845_v23 }
 0x3c2   : > { %v2852_v1 = vrot.slane %v2849_v26, 7 }
 0x3c4   : > { %v2854_v27 = vsel %vm2853_vm0, %v2848_v56, %v2852_v1 }
 0x3c5   : > { %2860 = vst.msk [vmem:[%s482_s13] sm:$0x3] %vm2858_vm1, %v2854_v27 }
 0x3c6   : > { %3362 = shalt.err (!%p3359_p7)
}
 0x3c7   : > { %3292 = dma.vmem_to_hbm [thread:$0]  (%p3487_p6), %s2875_s14, 32, %s2877_s19, %s2862_s7  }
 0x3c8 PF: > { %p3298_p9 = scmp.ge.s32.totalorder %s3397_s10, 2  ;;  %s2888_s18 = sand.u32 1, %s3385_s29  }
 0x3c9   : > { %s2889_s27 = scalar_lea.sflag [#allocation5], %s2888_s18 }
 0x3ca   : > { %p3295_p10 = pnand %p3298_p9, %p3491_p8 }
 0x3cc   : > { %p3296_p11 = pneg %p3295_p10 }
 0x3ce   : > { %3380 = dma.done.wait (%p3296_p11), %s2889_s27, 32  }
 0x3cf   : > { %3382 = vsyncadd (%p3296_p11), %s2889_s27, 4294967264  ;;  %p19_p12 = scmp.ge.s32.totalorder %s3473_s12, 6   ;;  %s5140_s29 = smov %s3389_s30 }
 0x3d0   : > { %s5141_s30 = smov %s3393_s9  ;;  %s5142_s9 = smov %s3485_s15 }
 0x3d1   : > { %s5143_s10 = smov %s3473_s12  ;;  %21 = sbr.rel (!%p19_p12) target bundleno = 5 (0x5), region = 133 }
 0x3d6   :  { %2895 = vsyncpa [#allocation5], 1 }
 0x3d7   :  { %2897 = vsyncpa [#allocation5 + $0x1], 1 }

</bundles_post_ra>
